<compile_context>
chip_gen: v7x
topology: tpu7x:2x2x1
jax: 0.10.0
libtpu: 0.0.40
codegen_flags: <defaults>
</compile_context>

<pallas_src>
import functools
import math

import jax
import jax.numpy as jnp
from jax.experimental import pallas as pl
from jax.experimental.pallas import tpu as pltpu


# ----------------------------------------------------------------------------
# Config (toy GPT-2; mirrors ClipCaptionModel with prefix_length <= 10 -> MLP)
# ----------------------------------------------------------------------------
class Config:
    vocab = 64
    n_embd = 32          # gpt_embedding_size
    n_head = 4
    n_layer = 2
    n_positions = 32
    prefix_size = 16
    prefix_length = 4    # <= 10 -> clip_project is MLP (Linear-Tanh-Linear)
    vocab_pad = 128      # lane-dense lm_head output width (>= vocab, mult of 128)


# ----------------------------------------------------------------------------
# Fused forward kernel: one grid step == one sequence (batch element).
# ----------------------------------------------------------------------------
def _clip_caption_kernel(
    # scalar prefetch (SMEM)
    tok_ref,                       # (B*T,) int32
    # tensor inputs (VMEM, resident across grid steps)
    prefix_ref,                    # (1, 1, P)
    wte_ref,                       # (V, D)
    wpe_ref,                       # (n_positions, D)
    cp_w1_ref, cp_b1_ref,          # (P, mid), (1, mid)
    cp_w2_ref, cp_b2_ref,          # (PL, mid, D), (PL, D)
    ln1_g_ref, ln1_b_ref,          # (n_layer, D) x 2
    attn_w_ref, attn_b_ref,        # (n_layer, 3, H, D, Dh), (n_layer, 3, H, Dh)
    proj_w_ref, proj_b_ref,        # (n_layer, H, Dh, D), (n_layer, D)
    ln2_g_ref, ln2_b_ref,          # (n_layer, D) x 2
    fc_w_ref, fc_b_ref,            # (n_layer, D, 4D), (n_layer, 4D)
    fcproj_w_ref, fcproj_b_ref,    # (n_layer, 4D, D), (n_layer, D)
    lnf_g_ref, lnf_b_ref,          # (1, D) x 2
    lm_w_ref,                      # (D, Vp)  tied wte.T, zero-padded to Vp lanes
    # output
    logits_ref,                    # (1, L, Vp)
    # scratch
    x_ref,                         # VMEM (L, D) f32 -- resident hidden state
    *,
    n_layer, n_head, seq_T, prefix_len, eps,
):
    b = pl.program_id(0)
    L, D = x_ref.shape
    Dh = D // n_head
    scale = 1.0 / math.sqrt(Dh)

    def layer_norm(x, g, beta):
        mu = jnp.mean(x, axis=-1, keepdims=True)
        var = jnp.mean(jnp.square(x - mu), axis=-1, keepdims=True)
        return (x - mu) * jax.lax.rsqrt(var + eps) * g + beta

    def gelu_new(y):  # GPT-2 "gelu_new" (tanh approximation)
        return 0.5 * y * (1.0 + jnp.tanh(
            0.7978845608028654 * (y + 0.044715 * y * y * y)))

    # --- clip_project MLP (Linear -> Tanh -> Linear), .view(prefix_len, D) ------
    pref = prefix_ref[0]                                              # (1, P)
    h1 = jnp.tanh(
        jnp.dot(pref, cp_w1_ref[...], preferred_element_type=jnp.float32)
        + cp_b1_ref[...])                                             # (1, mid)
    for p in range(prefix_len):
        row = (jnp.dot(h1, cp_w2_ref[p], preferred_element_type=jnp.float32)
               + cp_b2_ref[p])                                        # (1, D)
        x_ref[p, :] = row[0]

    # --- token embedding: SMEM-indexed dynamic row gather from wte --------------
    for t in range(seq_T):
        tok = tok_ref[b * seq_T + t]
        x_ref[prefix_len + t, :] = wte_ref[tok, :]

    # --- positional embedding ----------------------------------------------------
    x_ref[...] = x_ref[...] + wpe_ref[0:L, :]

    # --- causal mask (shared across layers / heads) ------------------------------
    qi = jax.lax.broadcasted_iota(jnp.int32, (L, L), 0)
    ki = jax.lax.broadcasted_iota(jnp.int32, (L, L), 1)
    causal = ki <= qi

    # --- transformer blocks (statically unrolled) --------------------------------
    for l in range(n_layer):
        x = x_ref[...]                                                # (L, D)

        # attention sub-block
        hn = layer_norm(x, ln1_g_ref[l], ln1_b_ref[l])
        attn_out = jnp.zeros((L, D), jnp.float32)
        for h in range(n_head):
            q = (jnp.dot(hn, attn_w_ref[l, 0, h],
                         preferred_element_type=jnp.float32) + attn_b_ref[l, 0, h])
            k = (jnp.dot(hn, attn_w_ref[l, 1, h],
                         preferred_element_type=jnp.float32) + attn_b_ref[l, 1, h])
            v = (jnp.dot(hn, attn_w_ref[l, 2, h],
                         preferred_element_type=jnp.float32) + attn_b_ref[l, 2, h])
            s = jnp.dot(q, k.T, preferred_element_type=jnp.float32) * scale
            s = jnp.where(causal, s, -1e9)
            s = s - jnp.max(s, axis=-1, keepdims=True)
            pr = jnp.exp(s)
            pr = pr / jnp.sum(pr, axis=-1, keepdims=True)
            ho = jnp.dot(pr, v, preferred_element_type=jnp.float32)   # (L, Dh)
            # (concat_h ho_h) @ W == sum_h ho_h @ W[h*Dh:(h+1)*Dh, :]  -> no concat
            attn_out = attn_out + jnp.dot(
                ho, proj_w_ref[l, h], preferred_element_type=jnp.float32)
        x = x + attn_out + proj_b_ref[l]

        # MLP sub-block
        hn = layer_norm(x, ln2_g_ref[l], ln2_b_ref[l])
        m = (jnp.dot(hn, fc_w_ref[l], preferred_element_type=jnp.float32)
             + fc_b_ref[l])
        m = gelu_new(m)
        m = (jnp.dot(m, fcproj_w_ref[l], preferred_element_type=jnp.float32)
             + fcproj_b_ref[l])
        x_ref[...] = x + m

    # --- final LN + tied lm_head (lane-dense: vocab padded to Vp=128) ------------
    xf = layer_norm(x_ref[...], lnf_g_ref[0], lnf_b_ref[0])
    logits_ref[0] = jnp.dot(xf, lm_w_ref[...], preferred_element_type=jnp.float32)


# ----------------------------------------------------------------------------
# Wrapper
# ----------------------------------------------------------------------------
def clip_caption_forward(tokens, prefix, params, cfg):
    """tokens:(B,T) int32, prefix:(B,prefix_size) -> logits (B, prefix_len+T, vocab)."""
    B, T = tokens.shape
    D, V, Vp = cfg.n_embd, cfg.vocab, cfg.vocab_pad
    PL_ = cfg.prefix_length
    L = PL_ + T
    assert L <= cfg.n_positions

    kernel = functools.partial(
        _clip_caption_kernel,
        n_layer=cfg.n_layer, n_head=cfg.n_head,
        seq_T=T, prefix_len=PL_, eps=1e-5)

    prefix3d = prefix.reshape(B, 1, cfg.prefix_size)
    tokens_flat = tokens.reshape(-1).astype(jnp.int32)

    tensor_inputs = [
        prefix3d,
        params["wte"], params["wpe"],
        params["cp_w1"], params["cp_b1"], params["cp_w2"], params["cp_b2"],
        params["ln1_g"], params["ln1_b"],
        params["attn_w"], params["attn_b"],
        params["proj_w"], params["proj_b"],
        params["ln2_g"], params["ln2_b"],
        params["fc_w"], params["fc_b"],
        params["fcproj_w"], params["fcproj_b"],
        params["ln_f_g"], params["ln_f_b"],
        params["lm_w"],
    ]

    def _resident(arr):
        nd = arr.ndim
        return pl.BlockSpec(arr.shape, lambda b, tok, _z=(0,) * nd: _z)

    in_specs = [pl.BlockSpec((1, 1, cfg.prefix_size), lambda b, tok: (b, 0, 0))]
    in_specs += [_resident(a) for a in tensor_inputs[1:]]

    out_padded = pl.pallas_call(
        kernel,
        out_shape=jax.ShapeDtypeStruct((B, L, Vp), jnp.float32),
        grid_spec=pltpu.PrefetchScalarGridSpec(
            num_scalar_prefetch=1,
            grid=(B,),
            in_specs=in_specs,
            out_specs=pl.BlockSpec((1, L, Vp), lambda b, tok: (b, 0, 0)),
            scratch_shapes=[pltpu.VMEM((L, D), jnp.float32)],
        ),
        compiler_params=pltpu.CompilerParams(
            dimension_semantics=("parallel",)),
    )(tokens_flat, *tensor_inputs)

    return out_padded[:, :, :V]


# ----------------------------------------------------------------------------
# Parameter init (weights restructured once, at init, into kernel-friendly layouts)
# ----------------------------------------------------------------------------
def init_params(cfg, key):
    ks = iter(jax.random.split(key, 64))
    nrm = lambda shape: 0.02 * jax.random.normal(next(ks), shape, jnp.float32)
    D, V, Vp = cfg.n_embd, cfg.vocab, cfg.vocab_pad
    H, nl = cfg.n_head, cfg.n_layer
    Dh = D // H
    PL_ = cfg.prefix_length
    mid = D * PL_ // 2
    out = D * PL_

    wte = nrm((V, D))
    params = {
        "wte": wte,
        "wpe": nrm((cfg.n_positions, D)),
        "ln_f_g": 1.0 + nrm((1, D)),
        "ln_f_b": nrm((1, D)),
        # per-layer params stacked along a leading layer axis
        "ln1_g": 1.0 + nrm((nl, D)),
        "ln1_b": nrm((nl, D)),
        "ln2_g": 1.0 + nrm((nl, D)),
        "ln2_b": nrm((nl, D)),
        "proj_b": nrm((nl, D)),
        "fc_w": nrm((nl, D, 4 * D)),
        "fc_b": nrm((nl, 4 * D)),
        "fcproj_w": nrm((nl, 4 * D, D)),
        "fcproj_b": nrm((nl, D)),
    }

    # attention weights: generate in conventional (D, 3D) layout, restructure once
    attn_w_raw = nrm((nl, D, 3 * D))
    attn_b_raw = nrm((nl, 3 * D))
    params["attn_w"] = attn_w_raw.reshape(nl, D, 3, H, Dh).transpose(0, 2, 3, 1, 4)
    params["attn_b"] = attn_b_raw.reshape(nl, 3, H, Dh)
    proj_w_raw = nrm((nl, D, D))
    params["proj_w"] = proj_w_raw.reshape(nl, H, Dh, D)

    # clip_project MLP (prefix_size -> D*PL/2 -> Tanh -> D*PL); W2 restructured so
    # `.view(-1, prefix_length, D)` becomes a per-position (mid, D) slab.
    params["cp_w1"] = nrm((cfg.prefix_size, mid))
    params["cp_b1"] = nrm((1, mid))
    cp_w2_raw = nrm((mid, out))
    cp_b2_raw = nrm((out,))
    params["cp_w2"] = cp_w2_raw.reshape(mid, PL_, D).transpose(1, 0, 2)   # (PL,mid,D)
    params["cp_b2"] = cp_b2_raw.reshape(PL_, D)

    # tied lm_head weight, precomputed & zero-padded to a lane-dense vocab axis
    params["lm_w"] = jnp.zeros((D, Vp), jnp.float32).at[:, :V].set(wte.T)
    return params


# ----------------------------------------------------------------------------
# Pure-JAX reference (matches the PyTorch module semantics) for validation
# ----------------------------------------------------------------------------
def reference_forward(tokens, prefix, params, cfg):
    B, T = tokens.shape
    D, H = cfg.n_embd, cfg.n_head
    Dh = D // H
    PL_ = cfg.prefix_length
    V = cfg.vocab
    eps = 1e-5
    scale = 1.0 / math.sqrt(Dh)

    def ln(x, g, b):
        mu = jnp.mean(x, axis=-1, keepdims=True)
        var = jnp.mean(jnp.square(x - mu), axis=-1, keepdims=True)
        return (x - mu) * jax.lax.rsqrt(var + eps) * g + b

    def gelu_new(y):
        return 0.5 * y * (1.0 + jnp.tanh(
            0.7978845608028654 * (y + 0.044715 * y * y * y)))

    emb_text = params["wte"][tokens]                                      # (B,T,D)
    h1 = jnp.tanh(prefix @ params["cp_w1"] + params["cp_b1"])             # (B,mid)
    prefix_proj = (jnp.einsum("bm,pmd->bpd", h1, params["cp_w2"])
                   + params["cp_b2"][None])                               # (B,PL,D)
    x = jnp.concatenate([prefix_proj, emb_text], axis=1)                  # (B,L,D)
    L = PL_ + T
    x = x + params["wpe"][:L][None]

    qi = jax.lax.broadcasted_iota(jnp.int32, (L, L), 0)
    ki = jax.lax.broadcasted_iota(jnp.int32, (L, L), 1)
    causal = ki <= qi

    for l in range(cfg.n_layer):
        hn = ln(x, params["ln1_g"][l], params["ln1_b"][l])
        wq, wk, wv = (params["attn_w"][l, c] for c in range(3))           # (H,D,Dh)
        bq, bk, bv = (params["attn_b"][l, c] for c in range(3))           # (H,Dh)
        q = jnp.einsum("bli,hid->bhld", hn, wq) + bq[None, :, None, :]
        k = jnp.einsum("bli,hid->bhld", hn, wk) + bk[None, :, None, :]
        v = jnp.einsum("bli,hid->bhld", hn, wv) + bv[None, :, None, :]
        s = jnp.einsum("bhqd,bhkd->bhqk", q, k) * scale
        s = jnp.where(causal, s, -1e9)
        s = s - jnp.max(s, axis=-1, keepdims=True)
        p = jnp.exp(s)
        p = p / jnp.sum(p, axis=-1, keepdims=True)
        a = jnp.einsum("bhqk,bhkd->bhqd", p, v)
        x = x + jnp.einsum("bhld,hdo->blo", a, params["proj_w"][l]) + params["proj_b"][l]
        hn = ln(x, params["ln2_g"][l], params["ln2_b"][l])
        m = gelu_new(hn @ params["fc_w"][l] + params["fc_b"][l])
        x = x + m @ params["fcproj_w"][l] + params["fcproj_b"][l]

    xf = ln(x, params["ln_f_g"][0], params["ln_f_b"][0])
    return xf @ params["lm_w"][:, :V]


if __name__ == "__main__":
    cfg = Config()
    key = jax.random.PRNGKey(0)
    k_param, k_tok, k_pref = jax.random.split(key, 3)

    params = init_params(cfg, k_param)

    B, T = 2, 8
    tokens = jax.random.randint(k_tok, (B, T), 0, cfg.vocab, dtype=jnp.int32)
    prefix = jax.random.normal(k_pref, (B, cfg.prefix_size), jnp.float32)

    fwd = jax.jit(functools.partial(clip_caption_forward, cfg=cfg))
    logits = jax.block_until_ready(fwd(tokens, prefix, params))

    expected_shape = (B, cfg.prefix_length + T, cfg.vocab)
    assert logits.shape == expected_shape, (logits.shape, expected_shape)
    assert bool(jnp.all(jnp.isfinite(logits)))

    with jax.default_matmul_precision("float32"):
        ref = reference_forward(tokens, prefix, params, cfg)
    err = float(jnp.max(jnp.abs(logits - ref)))
    assert err < 1e-2, f"kernel vs reference max abs err {err}"

    print("KERNEL_OK")
</pallas_src>

<mosaic_0001>
module attributes {stable_mosaic.version = 11 : i64} {
  func.func @_clip_caption_kernel(%arg0: i32, %arg1: memref<16xi32, #tpu.memory_space<smem>>, %arg2: memref<1x1x16xf32, #tpu.memory_space<vmem>>, %arg3: memref<64x32xf32, #tpu.memory_space<vmem>>, %arg4: memref<32x32xf32, #tpu.memory_space<vmem>>, %arg5: memref<16x64xf32, #tpu.memory_space<vmem>>, %arg6: memref<1x64xf32, #tpu.memory_space<vmem>>, %arg7: memref<4x64x32xf32, #tpu.memory_space<vmem>>, %arg8: memref<4x32xf32, #tpu.memory_space<vmem>>, %arg9: memref<2x32xf32, #tpu.memory_space<vmem>>, %arg10: memref<2x32xf32, #tpu.memory_space<vmem>>, %arg11: memref<2x3x4x32x8xf32, #tpu.memory_space<vmem>>, %arg12: memref<2x3x4x8xf32, #tpu.memory_space<vmem>>, %arg13: memref<2x4x8x32xf32, #tpu.memory_space<vmem>>, %arg14: memref<2x32xf32, #tpu.memory_space<vmem>>, %arg15: memref<2x32xf32, #tpu.memory_space<vmem>>, %arg16: memref<2x32xf32, #tpu.memory_space<vmem>>, %arg17: memref<2x32x128xf32, #tpu.memory_space<vmem>>, %arg18: memref<2x128xf32, #tpu.memory_space<vmem>>, %arg19: memref<2x128x32xf32, #tpu.memory_space<vmem>>, %arg20: memref<2x32xf32, #tpu.memory_space<vmem>>, %arg21: memref<1x32xf32, #tpu.memory_space<vmem>>, %arg22: memref<1x32xf32, #tpu.memory_space<vmem>>, %arg23: memref<32x128xf32, #tpu.memory_space<vmem>>, %arg24: memref<1x12x128xf32, #tpu.memory_space<vmem>>, %arg25: memref<12x32xf32, #tpu.memory_space<vmem>>) attributes {dimension_semantics = [#tpu.dimension_semantics<parallel>], iteration_bounds = array<i64: 2>, scalar_prefetch = 1 : i64, scratch_operands = 1 : i64, tpu.core_type = #tpu.core_type<tc>, window_params = [{transform_indices = @transform_0, window_bounds = array<i64: 1, 1, 16>}, {pipeline_mode = #tpu.pipeline_mode<synchronous>, transform_indices = @transform_1, window_bounds = array<i64: 64, 32>}, {pipeline_mode = #tpu.pipeline_mode<synchronous>, transform_indices = @transform_2, window_bounds = array<i64: 32, 32>}, {pipeline_mode = #tpu.pipeline_mode<synchronous>, transform_indices = @transform_3, window_bounds = array<i64: 16, 64>}, {pipeline_mode = #tpu.pipeline_mode<synchronous>, transform_indices = @transform_4, window_bounds = array<i64: 1, 64>}, {pipeline_mode = #tpu.pipeline_mode<synchronous>, transform_indices = @transform_5, window_bounds = array<i64: 4, 64, 32>}, {pipeline_mode = #tpu.pipeline_mode<synchronous>, transform_indices = @transform_6, window_bounds = array<i64: 4, 32>}, {pipeline_mode = #tpu.pipeline_mode<synchronous>, transform_indices = @transform_7, window_bounds = array<i64: 2, 32>}, {pipeline_mode = #tpu.pipeline_mode<synchronous>, transform_indices = @transform_8, window_bounds = array<i64: 2, 32>}, {pipeline_mode = #tpu.pipeline_mode<synchronous>, transform_indices = @transform_9, window_bounds = array<i64: 2, 3, 4, 32, 8>}, {pipeline_mode = #tpu.pipeline_mode<synchronous>, transform_indices = @transform_10, window_bounds = array<i64: 2, 3, 4, 8>}, {pipeline_mode = #tpu.pipeline_mode<synchronous>, transform_indices = @transform_11, window_bounds = array<i64: 2, 4, 8, 32>}, {pipeline_mode = #tpu.pipeline_mode<synchronous>, transform_indices = @transform_12, window_bounds = array<i64: 2, 32>}, {pipeline_mode = #tpu.pipeline_mode<synchronous>, transform_indices = @transform_13, window_bounds = array<i64: 2, 32>}, {pipeline_mode = #tpu.pipeline_mode<synchronous>, transform_indices = @transform_14, window_bounds = array<i64: 2, 32>}, {pipeline_mode = #tpu.pipeline_mode<synchronous>, transform_indices = @transform_15, window_bounds = array<i64: 2, 32, 128>}, {pipeline_mode = #tpu.pipeline_mode<synchronous>, transform_indices = @transform_16, window_bounds = array<i64: 2, 128>}, {pipeline_mode = #tpu.pipeline_mode<synchronous>, transform_indices = @transform_17, window_bounds = array<i64: 2, 128, 32>}, {pipeline_mode = #tpu.pipeline_mode<synchronous>, transform_indices = @transform_18, window_bounds = array<i64: 2, 32>}, {pipeline_mode = #tpu.pipeline_mode<synchronous>, transform_indices = @transform_19, window_bounds = array<i64: 1, 32>}, {pipeline_mode = #tpu.pipeline_mode<synchronous>, transform_indices = @transform_20, window_bounds = array<i64: 1, 32>}, {pipeline_mode = #tpu.pipeline_mode<synchronous>, transform_indices = @transform_21, window_bounds = array<i64: 32, 128>}, {transform_indices = @transform_22, window_bounds = array<i64: 1, 12, 128>}]} {
    %c0 = arith.constant 0 : index
    %c0_0 = arith.constant 0 : index
    %c0_1 = arith.constant 0 : index
    %0 = vector.load %arg2[%c0, %c0_0, %c0_1] : memref<1x1x16xf32, #tpu.memory_space<vmem>>, vector<1x1x16xf32>
    %1 = vector.shape_cast %0 : vector<1x1x16xf32> to vector<1x16xf32>
    %c0_2 = arith.constant 0 : index
    %c0_3 = arith.constant 0 : index
    %2 = vector.load %arg5[%c0_2, %c0_3] : memref<16x64xf32, #tpu.memory_space<vmem>>, vector<16x64xf32>
    %cst = arith.constant dense<0.000000e+00> : vector<1x64xf32>
    %3 = tpu.matmul %1, %2, %cst {dimension_numbers = #tpu.dot_dimension_numbers<[1], [0], [0], [1], [0, 0, 1, 1], [], []>} : vector<1x16xf32>, vector<16x64xf32>, vector<1x64xf32> -> vector<1x64xf32>
    %c0_4 = arith.constant 0 : index
    %c0_5 = arith.constant 0 : index
    %4 = vector.load %arg6[%c0_4, %c0_5] : memref<1x64xf32, #tpu.memory_space<vmem>>, vector<1x64xf32>
    %5 = arith.addf %3, %4 : vector<1x64xf32>
    %6 = math.tanh %5 : vector<1x64xf32>
    %c0_6 = arith.constant 0 : index
    %c0_7 = arith.constant 0 : index
    %c0_8 = arith.constant 0 : index
    %7 = vector.load %arg7[%c0_6, %c0_7, %c0_8] : memref<4x64x32xf32, #tpu.memory_space<vmem>>, vector<1x64x32xf32>
    %8 = vector.shape_cast %7 : vector<1x64x32xf32> to vector<64x32xf32>
    %cst_9 = arith.constant dense<0.000000e+00> : vector<1x32xf32>
    %9 = tpu.matmul %6, %8, %cst_9 {dimension_numbers = #tpu.dot_dimension_numbers<[1], [0], [0], [1], [0, 0, 1, 1], [], []>} : vector<1x64xf32>, vector<64x32xf32>, vector<1x32xf32> -> vector<1x32xf32>
    %c0_10 = arith.constant 0 : index
    %c0_11 = arith.constant 0 : index
    %10 = vector.load %arg8[%c0_10, %c0_11] : memref<4x32xf32, #tpu.memory_space<vmem>>, vector<1x32xf32>
    %11 = vector.shape_cast %10 : vector<1x32xf32> to vector<32xf32>
    %12 = vector.shape_cast %11 : vector<32xf32> to vector<1x32xf32>
    %13 = arith.addf %9, %12 : vector<1x32xf32>
    %14 = vector.shape_cast %13 : vector<1x32xf32> to vector<32xf32>
    %c0_12 = arith.constant 0 : index
    %c0_13 = arith.constant 0 : index
    %15 = vector.load %arg25[%c0_12, %c0_13] : memref<12x32xf32, #tpu.memory_space<vmem>>, vector<1x32xf32>
    %16 = vector.shape_cast %15 : vector<1x32xf32> to vector<32xf32>
    %17 = vector.shape_cast %14 : vector<32xf32> to vector<1x32xf32>
    tpu.vector_store %arg25[%c0_12, %c0_13], %17 {strides = array<i32>} : memref<12x32xf32, #tpu.memory_space<vmem>>, vector<1x32xf32>,
    %c1 = arith.constant 1 : index
    %c0_14 = arith.constant 0 : index
    %c0_15 = arith.constant 0 : index
    %18 = vector.load %arg7[%c1, %c0_14, %c0_15] : memref<4x64x32xf32, #tpu.memory_space<vmem>>, vector<1x64x32xf32>
    %19 = vector.shape_cast %18 : vector<1x64x32xf32> to vector<64x32xf32>
    %cst_16 = arith.constant dense<0.000000e+00> : vector<1x32xf32>
    %20 = tpu.matmul %6, %19, %cst_16 {dimension_numbers = #tpu.dot_dimension_numbers<[1], [0], [0], [1], [0, 0, 1, 1], [], []>} : vector<1x64xf32>, vector<64x32xf32>, vector<1x32xf32> -> vector<1x32xf32>
    %c1_17 = arith.constant 1 : index
    %c0_18 = arith.constant 0 : index
    %21 = vector.load %arg8[%c1_17, %c0_18] : memref<4x32xf32, #tpu.memory_space<vmem>>, vector<1x32xf32>
    %22 = vector.shape_cast %21 : vector<1x32xf32> to vector<32xf32>
    %23 = vector.shape_cast %22 : vector<32xf32> to vector<1x32xf32>
    %24 = arith.addf %20, %23 : vector<1x32xf32>
    %25 = vector.shape_cast %24 : vector<1x32xf32> to vector<32xf32>
    %c1_19 = arith.constant 1 : index
    %c0_20 = arith.constant 0 : index
    %26 = vector.load %arg25[%c1_19, %c0_20] : memref<12x32xf32, #tpu.memory_space<vmem>>, vector<1x32xf32>
    %27 = vector.shape_cast %26 : vector<1x32xf32> to vector<32xf32>
    %28 = vector.shape_cast %25 : vector<32xf32> to vector<1x32xf32>
    tpu.vector_store %arg25[%c1_19, %c0_20], %28 {strides = array<i32>} : memref<12x32xf32, #tpu.memory_space<vmem>>, vector<1x32xf32>,
    %c2 = arith.constant 2 : index
    %c0_21 = arith.constant 0 : index
    %c0_22 = arith.constant 0 : index
    %29 = vector.load %arg7[%c2, %c0_21, %c0_22] : memref<4x64x32xf32, #tpu.memory_space<vmem>>, vector<1x64x32xf32>
    %30 = vector.shape_cast %29 : vector<1x64x32xf32> to vector<64x32xf32>
    %cst_23 = arith.constant dense<0.000000e+00> : vector<1x32xf32>
    %31 = tpu.matmul %6, %30, %cst_23 {dimension_numbers = #tpu.dot_dimension_numbers<[1], [0], [0], [1], [0, 0, 1, 1], [], []>} : vector<1x64xf32>, vector<64x32xf32>, vector<1x32xf32> -> vector<1x32xf32>
    %c2_24 = arith.constant 2 : index
    %c0_25 = arith.constant 0 : index
    %32 = vector.load %arg8[%c2_24, %c0_25] : memref<4x32xf32, #tpu.memory_space<vmem>>, vector<1x32xf32>
    %33 = vector.shape_cast %32 : vector<1x32xf32> to vector<32xf32>
    %34 = vector.shape_cast %33 : vector<32xf32> to vector<1x32xf32>
    %35 = arith.addf %31, %34 : vector<1x32xf32>
    %36 = vector.shape_cast %35 : vector<1x32xf32> to vector<32xf32>
    %c2_26 = arith.constant 2 : index
    %c0_27 = arith.constant 0 : index
    %37 = vector.load %arg25[%c2_26, %c0_27] : memref<12x32xf32, #tpu.memory_space<vmem>>, vector<1x32xf32>
    %38 = vector.shape_cast %37 : vector<1x32xf32> to vector<32xf32>
    %39 = vector.shape_cast %36 : vector<32xf32> to vector<1x32xf32>
    tpu.vector_store %arg25[%c2_26, %c0_27], %39 {strides = array<i32>} : memref<12x32xf32, #tpu.memory_space<vmem>>, vector<1x32xf32>,
    %c3 = arith.constant 3 : index
    %c0_28 = arith.constant 0 : index
    %c0_29 = arith.constant 0 : index
    %40 = vector.load %arg7[%c3, %c0_28, %c0_29] : memref<4x64x32xf32, #tpu.memory_space<vmem>>, vector<1x64x32xf32>
    %41 = vector.shape_cast %40 : vector<1x64x32xf32> to vector<64x32xf32>
    %cst_30 = arith.constant dense<0.000000e+00> : vector<1x32xf32>
    %42 = tpu.matmul %6, %41, %cst_30 {dimension_numbers = #tpu.dot_dimension_numbers<[1], [0], [0], [1], [0, 0, 1, 1], [], []>} : vector<1x64xf32>, vector<64x32xf32>, vector<1x32xf32> -> vector<1x32xf32>
    %c3_31 = arith.constant 3 : index
    %c0_32 = arith.constant 0 : index
    %43 = vector.load %arg8[%c3_31, %c0_32] : memref<4x32xf32, #tpu.memory_space<vmem>>, vector<1x32xf32>
    %44 = vector.shape_cast %43 : vector<1x32xf32> to vector<32xf32>
    %45 = vector.shape_cast %44 : vector<32xf32> to vector<1x32xf32>
    %46 = arith.addf %42, %45 : vector<1x32xf32>
    %47 = vector.shape_cast %46 : vector<1x32xf32> to vector<32xf32>
    %c3_33 = arith.constant 3 : index
    %c0_34 = arith.constant 0 : index
    %48 = vector.load %arg25[%c3_33, %c0_34] : memref<12x32xf32, #tpu.memory_space<vmem>>, vector<1x32xf32>
    %49 = vector.shape_cast %48 : vector<1x32xf32> to vector<32xf32>
    %50 = vector.shape_cast %47 : vector<32xf32> to vector<1x32xf32>
    tpu.vector_store %arg25[%c3_33, %c0_34], %50 {strides = array<i32>} : memref<12x32xf32, #tpu.memory_space<vmem>>, vector<1x32xf32>,
    %c8_i32 = arith.constant 8 : i32
    %51 = arith.muli %arg0, %c8_i32 : i32
    %c0_i32 = arith.constant 0 : i32
    %52 = arith.addi %51, %c0_i32 : i32
    %53 = arith.index_cast %52 : i32 to index
    %54 = memref.load %arg1[%53] : memref<16xi32, #tpu.memory_space<smem>>
    %55 = arith.index_cast %54 : i32 to index
    %c0_35 = arith.constant 0 : index
    %56 = vector.load %arg3[%55, %c0_35] : memref<64x32xf32, #tpu.memory_space<vmem>>, vector<1x32xf32>
    %57 = vector.shape_cast %56 : vector<1x32xf32> to vector<32xf32>
    %c4 = arith.constant 4 : index
    %c0_36 = arith.constant 0 : index
    %58 = vector.load %arg25[%c4, %c0_36] : memref<12x32xf32, #tpu.memory_space<vmem>>, vector<1x32xf32>
    %59 = vector.shape_cast %58 : vector<1x32xf32> to vector<32xf32>
    %60 = vector.shape_cast %57 : vector<32xf32> to vector<1x32xf32>
    tpu.vector_store %arg25[%c4, %c0_36], %60 {strides = array<i32>} : memref<12x32xf32, #tpu.memory_space<vmem>>, vector<1x32xf32>,
    %c8_i32_37 = arith.constant 8 : i32
    %61 = arith.muli %arg0, %c8_i32_37 : i32
    %c1_i32 = arith.constant 1 : i32
    %62 = arith.addi %61, %c1_i32 : i32
    %63 = arith.index_cast %62 : i32 to index
    %64 = memref.load %arg1[%63] : memref<16xi32, #tpu.memory_space<smem>>
    %65 = arith.index_cast %64 : i32 to index
    %c0_38 = arith.constant 0 : index
    %66 = vector.load %arg3[%65, %c0_38] : memref<64x32xf32, #tpu.memory_space<vmem>>, vector<1x32xf32>
    %67 = vector.shape_cast %66 : vector<1x32xf32> to vector<32xf32>
    %c5 = arith.constant 5 : index
    %c0_39 = arith.constant 0 : index
    %68 = vector.load %arg25[%c5, %c0_39] : memref<12x32xf32, #tpu.memory_space<vmem>>, vector<1x32xf32>
    %69 = vector.shape_cast %68 : vector<1x32xf32> to vector<32xf32>
    %70 = vector.shape_cast %67 : vector<32xf32> to vector<1x32xf32>
    tpu.vector_store %arg25[%c5, %c0_39], %70 {strides = array<i32>} : memref<12x32xf32, #tpu.memory_space<vmem>>, vector<1x32xf32>,
    %c8_i32_40 = arith.constant 8 : i32
    %71 = arith.muli %arg0, %c8_i32_40 : i32
    %c2_i32 = arith.constant 2 : i32
    %72 = arith.addi %71, %c2_i32 : i32
    %73 = arith.index_cast %72 : i32 to index
    %74 = memref.load %arg1[%73] : memref<16xi32, #tpu.memory_space<smem>>
    %75 = arith.index_cast %74 : i32 to index
    %c0_41 = arith.constant 0 : index
    %76 = vector.load %arg3[%75, %c0_41] : memref<64x32xf32, #tpu.memory_space<vmem>>, vector<1x32xf32>
    %77 = vector.shape_cast %76 : vector<1x32xf32> to vector<32xf32>
    %c6 = arith.constant 6 : index
    %c0_42 = arith.constant 0 : index
    %78 = vector.load %arg25[%c6, %c0_42] : memref<12x32xf32, #tpu.memory_space<vmem>>, vector<1x32xf32>
    %79 = vector.shape_cast %78 : vector<1x32xf32> to vector<32xf32>
    %80 = vector.shape_cast %77 : vector<32xf32> to vector<1x32xf32>
    tpu.vector_store %arg25[%c6, %c0_42], %80 {strides = array<i32>} : memref<12x32xf32, #tpu.memory_space<vmem>>, vector<1x32xf32>,
    %c8_i32_43 = arith.constant 8 : i32
    %81 = arith.muli %arg0, %c8_i32_43 : i32
    %c3_i32 = arith.constant 3 : i32
    %82 = arith.addi %81, %c3_i32 : i32
    %83 = arith.index_cast %82 : i32 to index
    %84 = memref.load %arg1[%83] : memref<16xi32, #tpu.memory_space<smem>>
    %85 = arith.index_cast %84 : i32 to index
    %c0_44 = arith.constant 0 : index
    %86 = vector.load %arg3[%85, %c0_44] : memref<64x32xf32, #tpu.memory_space<vmem>>, vector<1x32xf32>
    %87 = vector.shape_cast %86 : vector<1x32xf32> to vector<32xf32>
    %c7 = arith.constant 7 : index
    %c0_45 = arith.constant 0 : index
    %88 = vector.load %arg25[%c7, %c0_45] : memref<12x32xf32, #tpu.memory_space<vmem>>, vector<1x32xf32>
    %89 = vector.shape_cast %88 : vector<1x32xf32> to vector<32xf32>
    %90 = vector.shape_cast %87 : vector<32xf32> to vector<1x32xf32>
    tpu.vector_store %arg25[%c7, %c0_45], %90 {strides = array<i32>} : memref<12x32xf32, #tpu.memory_space<vmem>>, vector<1x32xf32>,
    %c8_i32_46 = arith.constant 8 : i32
    %91 = arith.muli %arg0, %c8_i32_46 : i32
    %c4_i32 = arith.constant 4 : i32
    %92 = arith.addi %91, %c4_i32 : i32
    %93 = arith.index_cast %92 : i32 to index
    %94 = memref.load %arg1[%93] : memref<16xi32, #tpu.memory_space<smem>>
    %95 = arith.index_cast %94 : i32 to index
    %c0_47 = arith.constant 0 : index
    %96 = vector.load %arg3[%95, %c0_47] : memref<64x32xf32, #tpu.memory_space<vmem>>, vector<1x32xf32>
    %97 = vector.shape_cast %96 : vector<1x32xf32> to vector<32xf32>
    %c8 = arith.constant 8 : index
    %c0_48 = arith.constant 0 : index
    %98 = vector.load %arg25[%c8, %c0_48] : memref<12x32xf32, #tpu.memory_space<vmem>>, vector<1x32xf32>
    %99 = vector.shape_cast %98 : vector<1x32xf32> to vector<32xf32>
    %100 = vector.shape_cast %97 : vector<32xf32> to vector<1x32xf32>
    tpu.vector_store %arg25[%c8, %c0_48], %100 {strides = array<i32>} : memref<12x32xf32, #tpu.memory_space<vmem>>, vector<1x32xf32>,
    %c8_i32_49 = arith.constant 8 : i32
    %101 = arith.muli %arg0, %c8_i32_49 : i32
    %c5_i32 = arith.constant 5 : i32
    %102 = arith.addi %101, %c5_i32 : i32
    %103 = arith.index_cast %102 : i32 to index
    %104 = memref.load %arg1[%103] : memref<16xi32, #tpu.memory_space<smem>>
    %105 = arith.index_cast %104 : i32 to index
    %c0_50 = arith.constant 0 : index
    %106 = vector.load %arg3[%105, %c0_50] : memref<64x32xf32, #tpu.memory_space<vmem>>, vector<1x32xf32>
    %107 = vector.shape_cast %106 : vector<1x32xf32> to vector<32xf32>
    %c9 = arith.constant 9 : index
    %c0_51 = arith.constant 0 : index
    %108 = vector.load %arg25[%c9, %c0_51] : memref<12x32xf32, #tpu.memory_space<vmem>>, vector<1x32xf32>
    %109 = vector.shape_cast %108 : vector<1x32xf32> to vector<32xf32>
    %110 = vector.shape_cast %107 : vector<32xf32> to vector<1x32xf32>
    tpu.vector_store %arg25[%c9, %c0_51], %110 {strides = array<i32>} : memref<12x32xf32, #tpu.memory_space<vmem>>, vector<1x32xf32>,
    %c8_i32_52 = arith.constant 8 : i32
    %111 = arith.muli %arg0, %c8_i32_52 : i32
    %c6_i32 = arith.constant 6 : i32
    %112 = arith.addi %111, %c6_i32 : i32
    %113 = arith.index_cast %112 : i32 to index
    %114 = memref.load %arg1[%113] : memref<16xi32, #tpu.memory_space<smem>>
    %115 = arith.index_cast %114 : i32 to index
    %c0_53 = arith.constant 0 : index
    %116 = vector.load %arg3[%115, %c0_53] : memref<64x32xf32, #tpu.memory_space<vmem>>, vector<1x32xf32>
    %117 = vector.shape_cast %116 : vector<1x32xf32> to vector<32xf32>
    %c10 = arith.constant 10 : index
    %c0_54 = arith.constant 0 : index
    %118 = vector.load %arg25[%c10, %c0_54] : memref<12x32xf32, #tpu.memory_space<vmem>>, vector<1x32xf32>
    %119 = vector.shape_cast %118 : vector<1x32xf32> to vector<32xf32>
    %120 = vector.shape_cast %117 : vector<32xf32> to vector<1x32xf32>
    tpu.vector_store %arg25[%c10, %c0_54], %120 {strides = array<i32>} : memref<12x32xf32, #tpu.memory_space<vmem>>, vector<1x32xf32>,
    %c8_i32_55 = arith.constant 8 : i32
    %121 = arith.muli %arg0, %c8_i32_55 : i32
    %c7_i32 = arith.constant 7 : i32
    %122 = arith.addi %121, %c7_i32 : i32
    %123 = arith.index_cast %122 : i32 to index
    %124 = memref.load %arg1[%123] : memref<16xi32, #tpu.memory_space<smem>>
    %125 = arith.index_cast %124 : i32 to index
    %c0_56 = arith.constant 0 : index
    %126 = vector.load %arg3[%125, %c0_56] : memref<64x32xf32, #tpu.memory_space<vmem>>, vector<1x32xf32>
    %127 = vector.shape_cast %126 : vector<1x32xf32> to vector<32xf32>
    %c11 = arith.constant 11 : index
    %c0_57 = arith.constant 0 : index
    %128 = vector.load %arg25[%c11, %c0_57] : memref<12x32xf32, #tpu.memory_space<vmem>>, vector<1x32xf32>
    %129 = vector.shape_cast %128 : vector<1x32xf32> to vector<32xf32>
    %130 = vector.shape_cast %127 : vector<32xf32> to vector<1x32xf32>
    tpu.vector_store %arg25[%c11, %c0_57], %130 {strides = array<i32>} : memref<12x32xf32, #tpu.memory_space<vmem>>, vector<1x32xf32>,
    %c0_58 = arith.constant 0 : index
    %c0_59 = arith.constant 0 : index
    %131 = vector.load %arg25[%c0_58, %c0_59] : memref<12x32xf32, #tpu.memory_space<vmem>>, vector<12x32xf32>
    %c0_60 = arith.constant 0 : index
    %c0_61 = arith.constant 0 : index
    %132 = vector.load %arg4[%c0_60, %c0_61] : memref<32x32xf32, #tpu.memory_space<vmem>>, vector<12x32xf32>
    %133 = arith.addf %131, %132 : vector<12x32xf32>
    %c0_62 = arith.constant 0 : index
    %c0_63 = arith.constant 0 : index
    %134 = vector.load %arg25[%c0_62, %c0_63] : memref<12x32xf32, #tpu.memory_space<vmem>>, vector<12x32xf32>
    tpu.vector_store %arg25[%c0_62, %c0_63], %133 {strides = array<i32>} : memref<12x32xf32, #tpu.memory_space<vmem>>, vector<12x32xf32>,
    %135 = tpu.iota {dimensions = array<i32: 0>} : vector<12x12xi32>
    %136 = tpu.iota {dimensions = array<i32: 1>} : vector<12x12xi32>
    %137 = arith.cmpi sle, %136, %135 : vector<12x12xi32>
    %c0_64 = arith.constant 0 : index
    %c0_65 = arith.constant 0 : index
    %138 = vector.load %arg25[%c0_64, %c0_65] : memref<12x32xf32, #tpu.memory_space<vmem>>, vector<12x32xf32>
    %c0_66 = arith.constant 0 : index
    %c0_67 = arith.constant 0 : index
    %139 = vector.load %arg9[%c0_66, %c0_67] : memref<2x32xf32, #tpu.memory_space<vmem>>, vector<1x32xf32>
    %140 = vector.shape_cast %139 : vector<1x32xf32> to vector<32xf32>
    %c0_68 = arith.constant 0 : index
    %c0_69 = arith.constant 0 : index
    %141 = vector.load %arg10[%c0_68, %c0_69] : memref<2x32xf32, #tpu.memory_space<vmem>>, vector<1x32xf32>
    %142 = vector.shape_cast %141 : vector<1x32xf32> to vector<32xf32>
    %cst_70 = arith.constant dense<0.000000e+00> : vector<12xf32>
    %143 = vector.multi_reduction <add>, %138, %cst_70 [1] : vector<12x32xf32> to vector<12xf32>
    %144 = vector.shape_cast %143 : vector<12xf32> to vector<12x1xf32>
    %cst_71 = arith.constant 3.200000e+01 : f32
    %145 = vector.broadcast %cst_71 : f32 to vector<12x1xf32>
    %146 = arith.divf %144, %145 : vector<12x1xf32>
    %147 = vector.broadcast %146 : vector<12x1xf32> to vector<12x32xf32>
    %148 = arith.subf %138, %147 : vector<12x32xf32>
    %149 = arith.mulf %148, %148 : vector<12x32xf32>
    %cst_72 = arith.constant dense<0.000000e+00> : vector<12xf32>
    %150 = vector.multi_reduction <add>, %149, %cst_72 [1] : vector<12x32xf32> to vector<12xf32>
    %151 = vector.shape_cast %150 : vector<12xf32> to vector<12x1xf32>
    %cst_73 = arith.constant 3.200000e+01 : f32
    %152 = vector.broadcast %cst_73 : f32 to vector<12x1xf32>
    %153 = arith.divf %151, %152 : vector<12x1xf32>
    %154 = vector.broadcast %146 : vector<12x1xf32> to vector<12x32xf32>
    %155 = arith.subf %138, %154 : vector<12x32xf32>
    %cst_74 = arith.constant 9.99999974E-6 : f32
    %156 = vector.broadcast %cst_74 : f32 to vector<12x1xf32>
    %157 = arith.addf %153, %156 : vector<12x1xf32>
    %158 = math.rsqrt %157 : vector<12x1xf32>
    %159 = vector.broadcast %158 : vector<12x1xf32> to vector<12x32xf32>
    %160 = arith.mulf %155, %159 : vector<12x32xf32>
    %161 = vector.shape_cast %140 : vector<32xf32> to vector<1x32xf32>
    %162 = vector.broadcast %161 : vector<1x32xf32> to vector<12x32xf32>
    %163 = arith.mulf %160, %162 : vector<12x32xf32>
    %164 = vector.shape_cast %142 : vector<32xf32> to vector<1x32xf32>
    %165 = vector.broadcast %164 : vector<1x32xf32> to vector<12x32xf32>
    %166 = arith.addf %163, %165 : vector<12x32xf32>
    %cst_75 = arith.constant 0.000000e+00 : f32
    %167 = vector.broadcast %cst_75 : f32 to vector<12x32xf32>
    %c0_76 = arith.constant 0 : index
    %c0_77 = arith.constant 0 : index
    %c0_78 = arith.constant 0 : index
    %c0_79 = arith.constant 0 : index
    %c0_80 = arith.constant 0 : index
    %168 = vector.load %arg11[%c0_76, %c0_77, %c0_78, %c0_79, %c0_80] : memref<2x3x4x32x8xf32, #tpu.memory_space<vmem>>, vector<1x1x1x32x8xf32>
    %169 = vector.shape_cast %168 : vector<1x1x1x32x8xf32> to vector<32x8xf32>
    %cst_81 = arith.constant dense<0.000000e+00> : vector<12x8xf32>
    %170 = tpu.matmul %166, %169, %cst_81 {dimension_numbers = #tpu.dot_dimension_numbers<[1], [0], [0], [1], [0, 0, 1, 1], [], []>} : vector<12x32xf32>, vector<32x8xf32>, vector<12x8xf32> -> vector<12x8xf32>
    %c0_82 = arith.constant 0 : index
    %c0_83 = arith.constant 0 : index
    %c0_84 = arith.constant 0 : index
    %c0_85 = arith.constant 0 : index
    %171 = vector.load %arg12[%c0_82, %c0_83, %c0_84, %c0_85] : memref<2x3x4x8xf32, #tpu.memory_space<vmem>>, vector<1x1x1x8xf32>
    %172 = vector.shape_cast %171 : vector<1x1x1x8xf32> to vector<8xf32>
    %173 = vector.shape_cast %172 : vector<8xf32> to vector<1x8xf32>
    %174 = vector.broadcast %173 : vector<1x8xf32> to vector<12x8xf32>
    %175 = arith.addf %170, %174 : vector<12x8xf32>
    %c0_86 = arith.constant 0 : index
    %c1_87 = arith.constant 1 : index
    %c0_88 = arith.constant 0 : index
    %c0_89 = arith.constant 0 : index
    %c0_90 = arith.constant 0 : index
    %176 = vector.load %arg11[%c0_86, %c1_87, %c0_88, %c0_89, %c0_90] : memref<2x3x4x32x8xf32, #tpu.memory_space<vmem>>, vector<1x1x1x32x8xf32>
    %177 = vector.shape_cast %176 : vector<1x1x1x32x8xf32> to vector<32x8xf32>
    %cst_91 = arith.constant dense<0.000000e+00> : vector<12x8xf32>
    %178 = tpu.matmul %166, %177, %cst_91 {dimension_numbers = #tpu.dot_dimension_numbers<[1], [0], [0], [1], [0, 0, 1, 1], [], []>} : vector<12x32xf32>, vector<32x8xf32>, vector<12x8xf32> -> vector<12x8xf32>
    %c0_92 = arith.constant 0 : index
    %c1_93 = arith.constant 1 : index
    %c0_94 = arith.constant 0 : index
    %c0_95 = arith.constant 0 : index
    %179 = vector.load %arg12[%c0_92, %c1_93, %c0_94, %c0_95] : memref<2x3x4x8xf32, #tpu.memory_space<vmem>>, vector<1x1x1x8xf32>
    %180 = vector.shape_cast %179 : vector<1x1x1x8xf32> to vector<8xf32>
    %181 = vector.shape_cast %180 : vector<8xf32> to vector<1x8xf32>
    %182 = vector.broadcast %181 : vector<1x8xf32> to vector<12x8xf32>
    %183 = arith.addf %178, %182 : vector<12x8xf32>
    %c0_96 = arith.constant 0 : index
    %c2_97 = arith.constant 2 : index
    %c0_98 = arith.constant 0 : index
    %c0_99 = arith.constant 0 : index
    %c0_100 = arith.constant 0 : index
    %184 = vector.load %arg11[%c0_96, %c2_97, %c0_98, %c0_99, %c0_100] : memref<2x3x4x32x8xf32, #tpu.memory_space<vmem>>, vector<1x1x1x32x8xf32>
    %185 = vector.shape_cast %184 : vector<1x1x1x32x8xf32> to vector<32x8xf32>
    %cst_101 = arith.constant dense<0.000000e+00> : vector<12x8xf32>
    %186 = tpu.matmul %166, %185, %cst_101 {dimension_numbers = #tpu.dot_dimension_numbers<[1], [0], [0], [1], [0, 0, 1, 1], [], []>} : vector<12x32xf32>, vector<32x8xf32>, vector<12x8xf32> -> vector<12x8xf32>
    %c0_102 = arith.constant 0 : index
    %c2_103 = arith.constant 2 : index
    %c0_104 = arith.constant 0 : index
    %c0_105 = arith.constant 0 : index
    %187 = vector.load %arg12[%c0_102, %c2_103, %c0_104, %c0_105] : memref<2x3x4x8xf32, #tpu.memory_space<vmem>>, vector<1x1x1x8xf32>
    %188 = vector.shape_cast %187 : vector<1x1x1x8xf32> to vector<8xf32>
    %189 = vector.shape_cast %188 : vector<8xf32> to vector<1x8xf32>
    %190 = vector.broadcast %189 : vector<1x8xf32> to vector<12x8xf32>
    %191 = arith.addf %186, %190 : vector<12x8xf32>
    %192 = tpu.transpose %183, [1, 0] : vector<12x8xf32> -> vector<8x12xf32>
    %cst_106 = arith.constant dense<0.000000e+00> : vector<12x12xf32>
    %193 = tpu.matmul %175, %192, %cst_106 {dimension_numbers = #tpu.dot_dimension_numbers<[1], [0], [0], [1], [0, 0, 1, 1], [], []>} : vector<12x8xf32>, vector<8x12xf32>, vector<12x12xf32> -> vector<12x12xf32>
    %cst_107 = arith.constant 0.353553385 : f32
    %194 = vector.broadcast %cst_107 : f32 to vector<12x12xf32>
    %195 = arith.mulf %193, %194 : vector<12x12xf32>
    %cst_108 = arith.constant -1.000000e+09 : f32
    %196 = vector.broadcast %cst_108 : f32 to vector<12x12xf32>
    %197 = arith.select %137, %195, %196 : vector<12x12xi1>, vector<12x12xf32>
    %cst_109 = arith.constant dense<0xFF800000> : vector<12xf32>
    %198 = vector.multi_reduction <maximumf>, %197, %cst_109 [1] : vector<12x12xf32> to vector<12xf32>
    %199 = vector.shape_cast %198 : vector<12xf32> to vector<12x1xf32>
    %200 = vector.broadcast %199 : vector<12x1xf32> to vector<12x12xf32>
    %201 = arith.subf %197, %200 : vector<12x12xf32>
    %202 = math.exp %201 : vector<12x12xf32>
    %cst_110 = arith.constant dense<0.000000e+00> : vector<12xf32>
    %203 = vector.multi_reduction <add>, %202, %cst_110 [1] : vector<12x12xf32> to vector<12xf32>
    %204 = vector.shape_cast %203 : vector<12xf32> to vector<12x1xf32>
    %205 = vector.broadcast %204 : vector<12x1xf32> to vector<12x12xf32>
    %206 = arith.divf %202, %205 : vector<12x12xf32>
    %cst_111 = arith.constant dense<0.000000e+00> : vector<12x8xf32>
    %207 = tpu.matmul %206, %191, %cst_111 {dimension_numbers = #tpu.dot_dimension_numbers<[1], [0], [0], [1], [0, 0, 1, 1], [], []>} : vector<12x12xf32>, vector<12x8xf32>, vector<12x8xf32> -> vector<12x8xf32>
    %c0_112 = arith.constant 0 : index
    %c0_113 = arith.constant 0 : index
    %c0_114 = arith.constant 0 : index
    %c0_115 = arith.constant 0 : index
    %208 = vector.load %arg13[%c0_112, %c0_113, %c0_114, %c0_115] : memref<2x4x8x32xf32, #tpu.memory_space<vmem>>, vector<1x1x8x32xf32>
    %209 = vector.shape_cast %208 : vector<1x1x8x32xf32> to vector<8x32xf32>
    %cst_116 = arith.constant dense<0.000000e+00> : vector<12x32xf32>
    %210 = tpu.matmul %207, %209, %cst_116 {dimension_numbers = #tpu.dot_dimension_numbers<[1], [0], [0], [1], [0, 0, 1, 1], [], []>} : vector<12x8xf32>, vector<8x32xf32>, vector<12x32xf32> -> vector<12x32xf32>
    %211 = arith.addf %167, %210 : vector<12x32xf32>
    %c0_117 = arith.constant 0 : index
    %c0_118 = arith.constant 0 : index
    %c1_119 = arith.constant 1 : index
    %c0_120 = arith.constant 0 : index
    %c0_121 = arith.constant 0 : index
    %212 = vector.load %arg11[%c0_117, %c0_118, %c1_119, %c0_120, %c0_121] : memref<2x3x4x32x8xf32, #tpu.memory_space<vmem>>, vector<1x1x1x32x8xf32>
    %213 = vector.shape_cast %212 : vector<1x1x1x32x8xf32> to vector<32x8xf32>
    %cst_122 = arith.constant dense<0.000000e+00> : vector<12x8xf32>
    %214 = tpu.matmul %166, %213, %cst_122 {dimension_numbers = #tpu.dot_dimension_numbers<[1], [0], [0], [1], [0, 0, 1, 1], [], []>} : vector<12x32xf32>, vector<32x8xf32>, vector<12x8xf32> -> vector<12x8xf32>
    %c0_123 = arith.constant 0 : index
    %c0_124 = arith.constant 0 : index
    %c1_125 = arith.constant 1 : index
    %c0_126 = arith.constant 0 : index
    %215 = vector.load %arg12[%c0_123, %c0_124, %c1_125, %c0_126] : memref<2x3x4x8xf32, #tpu.memory_space<vmem>>, vector<1x1x1x8xf32>
    %216 = vector.shape_cast %215 : vector<1x1x1x8xf32> to vector<8xf32>
    %217 = vector.shape_cast %216 : vector<8xf32> to vector<1x8xf32>
    %218 = vector.broadcast %217 : vector<1x8xf32> to vector<12x8xf32>
    %219 = arith.addf %214, %218 : vector<12x8xf32>
    %c0_127 = arith.constant 0 : index
    %c1_128 = arith.constant 1 : index
    %c1_129 = arith.constant 1 : index
    %c0_130 = arith.constant 0 : index
    %c0_131 = arith.constant 0 : index
    %220 = vector.load %arg11[%c0_127, %c1_128, %c1_129, %c0_130, %c0_131] : memref<2x3x4x32x8xf32, #tpu.memory_space<vmem>>, vector<1x1x1x32x8xf32>
    %221 = vector.shape_cast %220 : vector<1x1x1x32x8xf32> to vector<32x8xf32>
    %cst_132 = arith.constant dense<0.000000e+00> : vector<12x8xf32>
    %222 = tpu.matmul %166, %221, %cst_132 {dimension_numbers = #tpu.dot_dimension_numbers<[1], [0], [0], [1], [0, 0, 1, 1], [], []>} : vector<12x32xf32>, vector<32x8xf32>, vector<12x8xf32> -> vector<12x8xf32>
    %c0_133 = arith.constant 0 : index
    %c1_134 = arith.constant 1 : index
    %c1_135 = arith.constant 1 : index
    %c0_136 = arith.constant 0 : index
    %223 = vector.load %arg12[%c0_133, %c1_134, %c1_135, %c0_136] : memref<2x3x4x8xf32, #tpu.memory_space<vmem>>, vector<1x1x1x8xf32>
    %224 = vector.shape_cast %223 : vector<1x1x1x8xf32> to vector<8xf32>
    %225 = vector.shape_cast %224 : vector<8xf32> to vector<1x8xf32>
    %226 = vector.broadcast %225 : vector<1x8xf32> to vector<12x8xf32>
    %227 = arith.addf %222, %226 : vector<12x8xf32>
    %c0_137 = arith.constant 0 : index
    %c2_138 = arith.constant 2 : index
    %c1_139 = arith.constant 1 : index
    %c0_140 = arith.constant 0 : index
    %c0_141 = arith.constant 0 : index
    %228 = vector.load %arg11[%c0_137, %c2_138, %c1_139, %c0_140, %c0_141] : memref<2x3x4x32x8xf32, #tpu.memory_space<vmem>>, vector<1x1x1x32x8xf32>
    %229 = vector.shape_cast %228 : vector<1x1x1x32x8xf32> to vector<32x8xf32>
    %cst_142 = arith.constant dense<0.000000e+00> : vector<12x8xf32>
    %230 = tpu.matmul %166, %229, %cst_142 {dimension_numbers = #tpu.dot_dimension_numbers<[1], [0], [0], [1], [0, 0, 1, 1], [], []>} : vector<12x32xf32>, vector<32x8xf32>, vector<12x8xf32> -> vector<12x8xf32>
    %c0_143 = arith.constant 0 : index
    %c2_144 = arith.constant 2 : index
    %c1_145 = arith.constant 1 : index
    %c0_146 = arith.constant 0 : index
    %231 = vector.load %arg12[%c0_143, %c2_144, %c1_145, %c0_146] : memref<2x3x4x8xf32, #tpu.memory_space<vmem>>, vector<1x1x1x8xf32>
    %232 = vector.shape_cast %231 : vector<1x1x1x8xf32> to vector<8xf32>
    %233 = vector.shape_cast %232 : vector<8xf32> to vector<1x8xf32>
    %234 = vector.broadcast %233 : vector<1x8xf32> to vector<12x8xf32>
    %235 = arith.addf %230, %234 : vector<12x8xf32>
    %236 = tpu.transpose %227, [1, 0] : vector<12x8xf32> -> vector<8x12xf32>
    %cst_147 = arith.constant dense<0.000000e+00> : vector<12x12xf32>
    %237 = tpu.matmul %219, %236, %cst_147 {dimension_numbers = #tpu.dot_dimension_numbers<[1], [0], [0], [1], [0, 0, 1, 1], [], []>} : vector<12x8xf32>, vector<8x12xf32>, vector<12x12xf32> -> vector<12x12xf32>
    %cst_148 = arith.constant 0.353553385 : f32
    %238 = vector.broadcast %cst_148 : f32 to vector<12x12xf32>
    %239 = arith.mulf %237, %238 : vector<12x12xf32>
    %cst_149 = arith.constant -1.000000e+09 : f32
    %240 = vector.broadcast %cst_149 : f32 to vector<12x12xf32>
    %241 = arith.select %137, %239, %240 : vector<12x12xi1>, vector<12x12xf32>
    %cst_150 = arith.constant dense<0xFF800000> : vector<12xf32>
    %242 = vector.multi_reduction <maximumf>, %241, %cst_150 [1] : vector<12x12xf32> to vector<12xf32>
    %243 = vector.shape_cast %242 : vector<12xf32> to vector<12x1xf32>
    %244 = vector.broadcast %243 : vector<12x1xf32> to vector<12x12xf32>
    %245 = arith.subf %241, %244 : vector<12x12xf32>
    %246 = math.exp %245 : vector<12x12xf32>
    %cst_151 = arith.constant dense<0.000000e+00> : vector<12xf32>
    %247 = vector.multi_reduction <add>, %246, %cst_151 [1] : vector<12x12xf32> to vector<12xf32>
    %248 = vector.shape_cast %247 : vector<12xf32> to vector<12x1xf32>
    %249 = vector.broadcast %248 : vector<12x1xf32> to vector<12x12xf32>
    %250 = arith.divf %246, %249 : vector<12x12xf32>
    %cst_152 = arith.constant dense<0.000000e+00> : vector<12x8xf32>
    %251 = tpu.matmul %250, %235, %cst_152 {dimension_numbers = #tpu.dot_dimension_numbers<[1], [0], [0], [1], [0, 0, 1, 1], [], []>} : vector<12x12xf32>, vector<12x8xf32>, vector<12x8xf32> -> vector<12x8xf32>
    %c0_153 = arith.constant 0 : index
    %c1_154 = arith.constant 1 : index
    %c0_155 = arith.constant 0 : index
    %c0_156 = arith.constant 0 : index
    %252 = vector.load %arg13[%c0_153, %c1_154, %c0_155, %c0_156] : memref<2x4x8x32xf32, #tpu.memory_space<vmem>>, vector<1x1x8x32xf32>
    %253 = vector.shape_cast %252 : vector<1x1x8x32xf32> to vector<8x32xf32>
    %cst_157 = arith.constant dense<0.000000e+00> : vector<12x32xf32>
    %254 = tpu.matmul %251, %253, %cst_157 {dimension_numbers = #tpu.dot_dimension_numbers<[1], [0], [0], [1], [0, 0, 1, 1], [], []>} : vector<12x8xf32>, vector<8x32xf32>, vector<12x32xf32> -> vector<12x32xf32>
    %255 = arith.addf %211, %254 : vector<12x32xf32>
    %c0_158 = arith.constant 0 : index
    %c0_159 = arith.constant 0 : index
    %c2_160 = arith.constant 2 : index
    %c0_161 = arith.constant 0 : index
    %c0_162 = arith.constant 0 : index
    %256 = vector.load %arg11[%c0_158, %c0_159, %c2_160, %c0_161, %c0_162] : memref<2x3x4x32x8xf32, #tpu.memory_space<vmem>>, vector<1x1x1x32x8xf32>
    %257 = vector.shape_cast %256 : vector<1x1x1x32x8xf32> to vector<32x8xf32>
    %cst_163 = arith.constant dense<0.000000e+00> : vector<12x8xf32>
    %258 = tpu.matmul %166, %257, %cst_163 {dimension_numbers = #tpu.dot_dimension_numbers<[1], [0], [0], [1], [0, 0, 1, 1], [], []>} : vector<12x32xf32>, vector<32x8xf32>, vector<12x8xf32> -> vector<12x8xf32>
    %c0_164 = arith.constant 0 : index
    %c0_165 = arith.constant 0 : index
    %c2_166 = arith.constant 2 : index
    %c0_167 = arith.constant 0 : index
    %259 = vector.load %arg12[%c0_164, %c0_165, %c2_166, %c0_167] : memref<2x3x4x8xf32, #tpu.memory_space<vmem>>, vector<1x1x1x8xf32>
    %260 = vector.shape_cast %259 : vector<1x1x1x8xf32> to vector<8xf32>
    %261 = vector.shape_cast %260 : vector<8xf32> to vector<1x8xf32>
    %262 = vector.broadcast %261 : vector<1x8xf32> to vector<12x8xf32>
    %263 = arith.addf %258, %262 : vector<12x8xf32>
    %c0_168 = arith.constant 0 : index
    %c1_169 = arith.constant 1 : index
    %c2_170 = arith.constant 2 : index
    %c0_171 = arith.constant 0 : index
    %c0_172 = arith.constant 0 : index
    %264 = vector.load %arg11[%c0_168, %c1_169, %c2_170, %c0_171, %c0_172] : memref<2x3x4x32x8xf32, #tpu.memory_space<vmem>>, vector<1x1x1x32x8xf32>
    %265 = vector.shape_cast %264 : vector<1x1x1x32x8xf32> to vector<32x8xf32>
    %cst_173 = arith.constant dense<0.000000e+00> : vector<12x8xf32>
    %266 = tpu.matmul %166, %265, %cst_173 {dimension_numbers = #tpu.dot_dimension_numbers<[1], [0], [0], [1], [0, 0, 1, 1], [], []>} : vector<12x32xf32>, vector<32x8xf32>, vector<12x8xf32> -> vector<12x8xf32>
    %c0_174 = arith.constant 0 : index
    %c1_175 = arith.constant 1 : index
    %c2_176 = arith.constant 2 : index
    %c0_177 = arith.constant 0 : index
    %267 = vector.load %arg12[%c0_174, %c1_175, %c2_176, %c0_177] : memref<2x3x4x8xf32, #tpu.memory_space<vmem>>, vector<1x1x1x8xf32>
    %268 = vector.shape_cast %267 : vector<1x1x1x8xf32> to vector<8xf32>
    %269 = vector.shape_cast %268 : vector<8xf32> to vector<1x8xf32>
    %270 = vector.broadcast %269 : vector<1x8xf32> to vector<12x8xf32>
    %271 = arith.addf %266, %270 : vector<12x8xf32>
    %c0_178 = arith.constant 0 : index
    %c2_179 = arith.constant 2 : index
    %c2_180 = arith.constant 2 : index
    %c0_181 = arith.constant 0 : index
    %c0_182 = arith.constant 0 : index
    %272 = vector.load %arg11[%c0_178, %c2_179, %c2_180, %c0_181, %c0_182] : memref<2x3x4x32x8xf32, #tpu.memory_space<vmem>>, vector<1x1x1x32x8xf32>
    %273 = vector.shape_cast %272 : vector<1x1x1x32x8xf32> to vector<32x8xf32>
    %cst_183 = arith.constant dense<0.000000e+00> : vector<12x8xf32>
    %274 = tpu.matmul %166, %273, %cst_183 {dimension_numbers = #tpu.dot_dimension_numbers<[1], [0], [0], [1], [0, 0, 1, 1], [], []>} : vector<12x32xf32>, vector<32x8xf32>, vector<12x8xf32> -> vector<12x8xf32>
    %c0_184 = arith.constant 0 : index
    %c2_185 = arith.constant 2 : index
    %c2_186 = arith.constant 2 : index
    %c0_187 = arith.constant 0 : index
    %275 = vector.load %arg12[%c0_184, %c2_185, %c2_186, %c0_187] : memref<2x3x4x8xf32, #tpu.memory_space<vmem>>, vector<1x1x1x8xf32>
    %276 = vector.shape_cast %275 : vector<1x1x1x8xf32> to vector<8xf32>
    %277 = vector.shape_cast %276 : vector<8xf32> to vector<1x8xf32>
    %278 = vector.broadcast %277 : vector<1x8xf32> to vector<12x8xf32>
    %279 = arith.addf %274, %278 : vector<12x8xf32>
    %280 = tpu.transpose %271, [1, 0] : vector<12x8xf32> -> vector<8x12xf32>
    %cst_188 = arith.constant dense<0.000000e+00> : vector<12x12xf32>
    %281 = tpu.matmul %263, %280, %cst_188 {dimension_numbers = #tpu.dot_dimension_numbers<[1], [0], [0], [1], [0, 0, 1, 1], [], []>} : vector<12x8xf32>, vector<8x12xf32>, vector<12x12xf32> -> vector<12x12xf32>
    %cst_189 = arith.constant 0.353553385 : f32
    %282 = vector.broadcast %cst_189 : f32 to vector<12x12xf32>
    %283 = arith.mulf %281, %282 : vector<12x12xf32>
    %cst_190 = arith.constant -1.000000e+09 : f32
    %284 = vector.broadcast %cst_190 : f32 to vector<12x12xf32>
    %285 = arith.select %137, %283, %284 : vector<12x12xi1>, vector<12x12xf32>
    %cst_191 = arith.constant dense<0xFF800000> : vector<12xf32>
    %286 = vector.multi_reduction <maximumf>, %285, %cst_191 [1] : vector<12x12xf32> to vector<12xf32>
    %287 = vector.shape_cast %286 : vector<12xf32> to vector<12x1xf32>
    %288 = vector.broadcast %287 : vector<12x1xf32> to vector<12x12xf32>
    %289 = arith.subf %285, %288 : vector<12x12xf32>
    %290 = math.exp %289 : vector<12x12xf32>
    %cst_192 = arith.constant dense<0.000000e+00> : vector<12xf32>
    %291 = vector.multi_reduction <add>, %290, %cst_192 [1] : vector<12x12xf32> to vector<12xf32>
    %292 = vector.shape_cast %291 : vector<12xf32> to vector<12x1xf32>
    %293 = vector.broadcast %292 : vector<12x1xf32> to vector<12x12xf32>
    %294 = arith.divf %290, %293 : vector<12x12xf32>
    %cst_193 = arith.constant dense<0.000000e+00> : vector<12x8xf32>
    %295 = tpu.matmul %294, %279, %cst_193 {dimension_numbers = #tpu.dot_dimension_numbers<[1], [0], [0], [1], [0, 0, 1, 1], [], []>} : vector<12x12xf32>, vector<12x8xf32>, vector<12x8xf32> -> vector<12x8xf32>
    %c0_194 = arith.constant 0 : index
    %c2_195 = arith.constant 2 : index
    %c0_196 = arith.constant 0 : index
    %c0_197 = arith.constant 0 : index
    %296 = vector.load %arg13[%c0_194, %c2_195, %c0_196, %c0_197] : memref<2x4x8x32xf32, #tpu.memory_space<vmem>>, vector<1x1x8x32xf32>
    %297 = vector.shape_cast %296 : vector<1x1x8x32xf32> to vector<8x32xf32>
    %cst_198 = arith.constant dense<0.000000e+00> : vector<12x32xf32>
    %298 = tpu.matmul %295, %297, %cst_198 {dimension_numbers = #tpu.dot_dimension_numbers<[1], [0], [0], [1], [0, 0, 1, 1], [], []>} : vector<12x8xf32>, vector<8x32xf32>, vector<12x32xf32> -> vector<12x32xf32>
    %299 = arith.addf %255, %298 : vector<12x32xf32>
    %c0_199 = arith.constant 0 : index
    %c0_200 = arith.constant 0 : index
    %c3_201 = arith.constant 3 : index
    %c0_202 = arith.constant 0 : index
    %c0_203 = arith.constant 0 : index
    %300 = vector.load %arg11[%c0_199, %c0_200, %c3_201, %c0_202, %c0_203] : memref<2x3x4x32x8xf32, #tpu.memory_space<vmem>>, vector<1x1x1x32x8xf32>
    %301 = vector.shape_cast %300 : vector<1x1x1x32x8xf32> to vector<32x8xf32>
    %cst_204 = arith.constant dense<0.000000e+00> : vector<12x8xf32>
    %302 = tpu.matmul %166, %301, %cst_204 {dimension_numbers = #tpu.dot_dimension_numbers<[1], [0], [0], [1], [0, 0, 1, 1], [], []>} : vector<12x32xf32>, vector<32x8xf32>, vector<12x8xf32> -> vector<12x8xf32>
    %c0_205 = arith.constant 0 : index
    %c0_206 = arith.constant 0 : index
    %c3_207 = arith.constant 3 : index
    %c0_208 = arith.constant 0 : index
    %303 = vector.load %arg12[%c0_205, %c0_206, %c3_207, %c0_208] : memref<2x3x4x8xf32, #tpu.memory_space<vmem>>, vector<1x1x1x8xf32>
    %304 = vector.shape_cast %303 : vector<1x1x1x8xf32> to vector<8xf32>
    %305 = vector.shape_cast %304 : vector<8xf32> to vector<1x8xf32>
    %306 = vector.broadcast %305 : vector<1x8xf32> to vector<12x8xf32>
    %307 = arith.addf %302, %306 : vector<12x8xf32>
    %c0_209 = arith.constant 0 : index
    %c1_210 = arith.constant 1 : index
    %c3_211 = arith.constant 3 : index
    %c0_212 = arith.constant 0 : index
    %c0_213 = arith.constant 0 : index
    %308 = vector.load %arg11[%c0_209, %c1_210, %c3_211, %c0_212, %c0_213] : memref<2x3x4x32x8xf32, #tpu.memory_space<vmem>>, vector<1x1x1x32x8xf32>
    %309 = vector.shape_cast %308 : vector<1x1x1x32x8xf32> to vector<32x8xf32>
    %cst_214 = arith.constant dense<0.000000e+00> : vector<12x8xf32>
    %310 = tpu.matmul %166, %309, %cst_214 {dimension_numbers = #tpu.dot_dimension_numbers<[1], [0], [0], [1], [0, 0, 1, 1], [], []>} : vector<12x32xf32>, vector<32x8xf32>, vector<12x8xf32> -> vector<12x8xf32>
    %c0_215 = arith.constant 0 : index
    %c1_216 = arith.constant 1 : index
    %c3_217 = arith.constant 3 : index
    %c0_218 = arith.constant 0 : index
    %311 = vector.load %arg12[%c0_215, %c1_216, %c3_217, %c0_218] : memref<2x3x4x8xf32, #tpu.memory_space<vmem>>, vector<1x1x1x8xf32>
    %312 = vector.shape_cast %311 : vector<1x1x1x8xf32> to vector<8xf32>
    %313 = vector.shape_cast %312 : vector<8xf32> to vector<1x8xf32>
    %314 = vector.broadcast %313 : vector<1x8xf32> to vector<12x8xf32>
    %315 = arith.addf %310, %314 : vector<12x8xf32>
    %c0_219 = arith.constant 0 : index
    %c2_220 = arith.constant 2 : index
    %c3_221 = arith.constant 3 : index
    %c0_222 = arith.constant 0 : index
    %c0_223 = arith.constant 0 : index
    %316 = vector.load %arg11[%c0_219, %c2_220, %c3_221, %c0_222, %c0_223] : memref<2x3x4x32x8xf32, #tpu.memory_space<vmem>>, vector<1x1x1x32x8xf32>
    %317 = vector.shape_cast %316 : vector<1x1x1x32x8xf32> to vector<32x8xf32>
    %cst_224 = arith.constant dense<0.000000e+00> : vector<12x8xf32>
    %318 = tpu.matmul %166, %317, %cst_224 {dimension_numbers = #tpu.dot_dimension_numbers<[1], [0], [0], [1], [0, 0, 1, 1], [], []>} : vector<12x32xf32>, vector<32x8xf32>, vector<12x8xf32> -> vector<12x8xf32>
    %c0_225 = arith.constant 0 : index
    %c2_226 = arith.constant 2 : index
    %c3_227 = arith.constant 3 : index
    %c0_228 = arith.constant 0 : index
    %319 = vector.load %arg12[%c0_225, %c2_226, %c3_227, %c0_228] : memref<2x3x4x8xf32, #tpu.memory_space<vmem>>, vector<1x1x1x8xf32>
    %320 = vector.shape_cast %319 : vector<1x1x1x8xf32> to vector<8xf32>
    %321 = vector.shape_cast %320 : vector<8xf32> to vector<1x8xf32>
    %322 = vector.broadcast %321 : vector<1x8xf32> to vector<12x8xf32>
    %323 = arith.addf %318, %322 : vector<12x8xf32>
    %324 = tpu.transpose %315, [1, 0] : vector<12x8xf32> -> vector<8x12xf32>
    %cst_229 = arith.constant dense<0.000000e+00> : vector<12x12xf32>
    %325 = tpu.matmul %307, %324, %cst_229 {dimension_numbers = #tpu.dot_dimension_numbers<[1], [0], [0], [1], [0, 0, 1, 1], [], []>} : vector<12x8xf32>, vector<8x12xf32>, vector<12x12xf32> -> vector<12x12xf32>
    %cst_230 = arith.constant 0.353553385 : f32
    %326 = vector.broadcast %cst_230 : f32 to vector<12x12xf32>
    %327 = arith.mulf %325, %326 : vector<12x12xf32>
    %cst_231 = arith.constant -1.000000e+09 : f32
    %328 = vector.broadcast %cst_231 : f32 to vector<12x12xf32>
    %329 = arith.select %137, %327, %328 : vector<12x12xi1>, vector<12x12xf32>
    %cst_232 = arith.constant dense<0xFF800000> : vector<12xf32>
    %330 = vector.multi_reduction <maximumf>, %329, %cst_232 [1] : vector<12x12xf32> to vector<12xf32>
    %331 = vector.shape_cast %330 : vector<12xf32> to vector<12x1xf32>
    %332 = vector.broadcast %331 : vector<12x1xf32> to vector<12x12xf32>
    %333 = arith.subf %329, %332 : vector<12x12xf32>
    %334 = math.exp %333 : vector<12x12xf32>
    %cst_233 = arith.constant dense<0.000000e+00> : vector<12xf32>
    %335 = vector.multi_reduction <add>, %334, %cst_233 [1] : vector<12x12xf32> to vector<12xf32>
    %336 = vector.shape_cast %335 : vector<12xf32> to vector<12x1xf32>
    %337 = vector.broadcast %336 : vector<12x1xf32> to vector<12x12xf32>
    %338 = arith.divf %334, %337 : vector<12x12xf32>
    %cst_234 = arith.constant dense<0.000000e+00> : vector<12x8xf32>
    %339 = tpu.matmul %338, %323, %cst_234 {dimension_numbers = #tpu.dot_dimension_numbers<[1], [0], [0], [1], [0, 0, 1, 1], [], []>} : vector<12x12xf32>, vector<12x8xf32>, vector<12x8xf32> -> vector<12x8xf32>
    %c0_235 = arith.constant 0 : index
    %c3_236 = arith.constant 3 : index
    %c0_237 = arith.constant 0 : index
    %c0_238 = arith.constant 0 : index
    %340 = vector.load %arg13[%c0_235, %c3_236, %c0_237, %c0_238] : memref<2x4x8x32xf32, #tpu.memory_space<vmem>>, vector<1x1x8x32xf32>
    %341 = vector.shape_cast %340 : vector<1x1x8x32xf32> to vector<8x32xf32>
    %cst_239 = arith.constant dense<0.000000e+00> : vector<12x32xf32>
    %342 = tpu.matmul %339, %341, %cst_239 {dimension_numbers = #tpu.dot_dimension_numbers<[1], [0], [0], [1], [0, 0, 1, 1], [], []>} : vector<12x8xf32>, vector<8x32xf32>, vector<12x32xf32> -> vector<12x32xf32>
    %343 = arith.addf %299, %342 : vector<12x32xf32>
    %344 = arith.addf %138, %343 : vector<12x32xf32>
    %c0_240 = arith.constant 0 : index
    %c0_241 = arith.constant 0 : index
    %345 = vector.load %arg14[%c0_240, %c0_241] : memref<2x32xf32, #tpu.memory_space<vmem>>, vector<1x32xf32>
    %346 = vector.shape_cast %345 : vector<1x32xf32> to vector<32xf32>
    %347 = vector.shape_cast %346 : vector<32xf32> to vector<1x32xf32>
    %348 = vector.broadcast %347 : vector<1x32xf32> to vector<12x32xf32>
    %349 = arith.addf %344, %348 : vector<12x32xf32>
    %c0_242 = arith.constant 0 : index
    %c0_243 = arith.constant 0 : index
    %350 = vector.load %arg15[%c0_242, %c0_243] : memref<2x32xf32, #tpu.memory_space<vmem>>, vector<1x32xf32>
    %351 = vector.shape_cast %350 : vector<1x32xf32> to vector<32xf32>
    %c0_244 = arith.constant 0 : index
    %c0_245 = arith.constant 0 : index
    %352 = vector.load %arg16[%c0_244, %c0_245] : memref<2x32xf32, #tpu.memory_space<vmem>>, vector<1x32xf32>
    %353 = vector.shape_cast %352 : vector<1x32xf32> to vector<32xf32>
    %cst_246 = arith.constant dense<0.000000e+00> : vector<12xf32>
    %354 = vector.multi_reduction <add>, %349, %cst_246 [1] : vector<12x32xf32> to vector<12xf32>
    %355 = vector.shape_cast %354 : vector<12xf32> to vector<12x1xf32>
    %cst_247 = arith.constant 3.200000e+01 : f32
    %356 = vector.broadcast %cst_247 : f32 to vector<12x1xf32>
    %357 = arith.divf %355, %356 : vector<12x1xf32>
    %358 = vector.broadcast %357 : vector<12x1xf32> to vector<12x32xf32>
    %359 = arith.subf %349, %358 : vector<12x32xf32>
    %360 = arith.mulf %359, %359 : vector<12x32xf32>
    %cst_248 = arith.constant dense<0.000000e+00> : vector<12xf32>
    %361 = vector.multi_reduction <add>, %360, %cst_248 [1] : vector<12x32xf32> to vector<12xf32>
    %362 = vector.shape_cast %361 : vector<12xf32> to vector<12x1xf32>
    %cst_249 = arith.constant 3.200000e+01 : f32
    %363 = vector.broadcast %cst_249 : f32 to vector<12x1xf32>
    %364 = arith.divf %362, %363 : vector<12x1xf32>
    %365 = vector.broadcast %357 : vector<12x1xf32> to vector<12x32xf32>
    %366 = arith.subf %349, %365 : vector<12x32xf32>
    %cst_250 = arith.constant 9.99999974E-6 : f32
    %367 = vector.broadcast %cst_250 : f32 to vector<12x1xf32>
    %368 = arith.addf %364, %367 : vector<12x1xf32>
    %369 = math.rsqrt %368 : vector<12x1xf32>
    %370 = vector.broadcast %369 : vector<12x1xf32> to vector<12x32xf32>
    %371 = arith.mulf %366, %370 : vector<12x32xf32>
    %372 = vector.shape_cast %351 : vector<32xf32> to vector<1x32xf32>
    %373 = vector.broadcast %372 : vector<1x32xf32> to vector<12x32xf32>
    %374 = arith.mulf %371, %373 : vector<12x32xf32>
    %375 = vector.shape_cast %353 : vector<32xf32> to vector<1x32xf32>
    %376 = vector.broadcast %375 : vector<1x32xf32> to vector<12x32xf32>
    %377 = arith.addf %374, %376 : vector<12x32xf32>
    %c0_251 = arith.constant 0 : index
    %c0_252 = arith.constant 0 : index
    %c0_253 = arith.constant 0 : index
    %378 = vector.load %arg17[%c0_251, %c0_252, %c0_253] : memref<2x32x128xf32, #tpu.memory_space<vmem>>, vector<1x32x128xf32>
    %379 = vector.shape_cast %378 : vector<1x32x128xf32> to vector<32x128xf32>
    %cst_254 = arith.constant dense<0.000000e+00> : vector<12x128xf32>
    %380 = tpu.matmul %377, %379, %cst_254 {dimension_numbers = #tpu.dot_dimension_numbers<[1], [0], [0], [1], [0, 0, 1, 1], [], []>} : vector<12x32xf32>, vector<32x128xf32>, vector<12x128xf32> -> vector<12x128xf32>
    %c0_255 = arith.constant 0 : index
    %c0_256 = arith.constant 0 : index
    %381 = vector.load %arg18[%c0_255, %c0_256] : memref<2x128xf32, #tpu.memory_space<vmem>>, vector<1x128xf32>
    %382 = vector.shape_cast %381 : vector<1x128xf32> to vector<128xf32>
    %383 = vector.shape_cast %382 : vector<128xf32> to vector<1x128xf32>
    %384 = vector.broadcast %383 : vector<1x128xf32> to vector<12x128xf32>
    %385 = arith.addf %380, %384 : vector<12x128xf32>
    %cst_257 = arith.constant 5.000000e-01 : f32
    %386 = vector.broadcast %cst_257 : f32 to vector<12x128xf32>
    %387 = arith.mulf %386, %385 : vector<12x128xf32>
    %cst_258 = arith.constant 4.471500e-02 : f32
    %388 = vector.broadcast %cst_258 : f32 to vector<12x128xf32>
    %389 = arith.mulf %388, %385 : vector<12x128xf32>
    %390 = arith.mulf %389, %385 : vector<12x128xf32>
    %391 = arith.mulf %390, %385 : vector<12x128xf32>
    %392 = arith.addf %385, %391 : vector<12x128xf32>
    %cst_259 = arith.constant 0.797884583 : f32
    %393 = vector.broadcast %cst_259 : f32 to vector<12x128xf32>
    %394 = arith.mulf %393, %392 : vector<12x128xf32>
    %395 = math.tanh %394 : vector<12x128xf32>
    %cst_260 = arith.constant 1.000000e+00 : f32
    %396 = vector.broadcast %cst_260 : f32 to vector<12x128xf32>
    %397 = arith.addf %396, %395 : vector<12x128xf32>
    %398 = arith.mulf %387, %397 : vector<12x128xf32>
    %c0_261 = arith.constant 0 : index
    %c0_262 = arith.constant 0 : index
    %c0_263 = arith.constant 0 : index
    %399 = vector.load %arg19[%c0_261, %c0_262, %c0_263] : memref<2x128x32xf32, #tpu.memory_space<vmem>>, vector<1x128x32xf32>
    %400 = vector.shape_cast %399 : vector<1x128x32xf32> to vector<128x32xf32>
    %cst_264 = arith.constant dense<0.000000e+00> : vector<12x32xf32>
    %401 = tpu.matmul %398, %400, %cst_264 {dimension_numbers = #tpu.dot_dimension_numbers<[1], [0], [0], [1], [0, 0, 1, 1], [], []>} : vector<12x128xf32>, vector<128x32xf32>, vector<12x32xf32> -> vector<12x32xf32>
    %c0_265 = arith.constant 0 : index
    %c0_266 = arith.constant 0 : index
    %402 = vector.load %arg20[%c0_265, %c0_266] : memref<2x32xf32, #tpu.memory_space<vmem>>, vector<1x32xf32>
    %403 = vector.shape_cast %402 : vector<1x32xf32> to vector<32xf32>
    %404 = vector.shape_cast %403 : vector<32xf32> to vector<1x32xf32>
    %405 = vector.broadcast %404 : vector<1x32xf32> to vector<12x32xf32>
    %406 = arith.addf %401, %405 : vector<12x32xf32>
    %407 = arith.addf %349, %406 : vector<12x32xf32>
    %c0_267 = arith.constant 0 : index
    %c0_268 = arith.constant 0 : index
    %408 = vector.load %arg25[%c0_267, %c0_268] : memref<12x32xf32, #tpu.memory_space<vmem>>, vector<12x32xf32>
    tpu.vector_store %arg25[%c0_267, %c0_268], %407 {strides = array<i32>} : memref<12x32xf32, #tpu.memory_space<vmem>>, vector<12x32xf32>,
    %c0_269 = arith.constant 0 : index
    %c0_270 = arith.constant 0 : index
    %409 = vector.load %arg25[%c0_269, %c0_270] : memref<12x32xf32, #tpu.memory_space<vmem>>, vector<12x32xf32>
    %c1_271 = arith.constant 1 : index
    %c0_272 = arith.constant 0 : index
    %410 = vector.load %arg9[%c1_271, %c0_272] : memref<2x32xf32, #tpu.memory_space<vmem>>, vector<1x32xf32>
    %411 = vector.shape_cast %410 : vector<1x32xf32> to vector<32xf32>
    %c1_273 = arith.constant 1 : index
    %c0_274 = arith.constant 0 : index
    %412 = vector.load %arg10[%c1_273, %c0_274] : memref<2x32xf32, #tpu.memory_space<vmem>>, vector<1x32xf32>
    %413 = vector.shape_cast %412 : vector<1x32xf32> to vector<32xf32>
    %cst_275 = arith.constant dense<0.000000e+00> : vector<12xf32>
    %414 = vector.multi_reduction <add>, %409, %cst_275 [1] : vector<12x32xf32> to vector<12xf32>
    %415 = vector.shape_cast %414 : vector<12xf32> to vector<12x1xf32>
    %cst_276 = arith.constant 3.200000e+01 : f32
    %416 = vector.broadcast %cst_276 : f32 to vector<12x1xf32>
    %417 = arith.divf %415, %416 : vector<12x1xf32>
    %418 = vector.broadcast %417 : vector<12x1xf32> to vector<12x32xf32>
    %419 = arith.subf %409, %418 : vector<12x32xf32>
    %420 = arith.mulf %419, %419 : vector<12x32xf32>
    %cst_277 = arith.constant dense<0.000000e+00> : vector<12xf32>
    %421 = vector.multi_reduction <add>, %420, %cst_277 [1] : vector<12x32xf32> to vector<12xf32>
    %422 = vector.shape_cast %421 : vector<12xf32> to vector<12x1xf32>
    %cst_278 = arith.constant 3.200000e+01 : f32
    %423 = vector.broadcast %cst_278 : f32 to vector<12x1xf32>
    %424 = arith.divf %422, %423 : vector<12x1xf32>
    %425 = vector.broadcast %417 : vector<12x1xf32> to vector<12x32xf32>
    %426 = arith.subf %409, %425 : vector<12x32xf32>
    %cst_279 = arith.constant 9.99999974E-6 : f32
    %427 = vector.broadcast %cst_279 : f32 to vector<12x1xf32>
    %428 = arith.addf %424, %427 : vector<12x1xf32>
    %429 = math.rsqrt %428 : vector<12x1xf32>
    %430 = vector.broadcast %429 : vector<12x1xf32> to vector<12x32xf32>
    %431 = arith.mulf %426, %430 : vector<12x32xf32>
    %432 = vector.shape_cast %411 : vector<32xf32> to vector<1x32xf32>
    %433 = vector.broadcast %432 : vector<1x32xf32> to vector<12x32xf32>
    %434 = arith.mulf %431, %433 : vector<12x32xf32>
    %435 = vector.shape_cast %413 : vector<32xf32> to vector<1x32xf32>
    %436 = vector.broadcast %435 : vector<1x32xf32> to vector<12x32xf32>
    %437 = arith.addf %434, %436 : vector<12x32xf32>
    %cst_280 = arith.constant 0.000000e+00 : f32
    %438 = vector.broadcast %cst_280 : f32 to vector<12x32xf32>
    %c1_281 = arith.constant 1 : index
    %c0_282 = arith.constant 0 : index
    %c0_283 = arith.constant 0 : index
    %c0_284 = arith.constant 0 : index
    %c0_285 = arith.constant 0 : index
    %439 = vector.load %arg11[%c1_281, %c0_282, %c0_283, %c0_284, %c0_285] : memref<2x3x4x32x8xf32, #tpu.memory_space<vmem>>, vector<1x1x1x32x8xf32>
    %440 = vector.shape_cast %439 : vector<1x1x1x32x8xf32> to vector<32x8xf32>
    %cst_286 = arith.constant dense<0.000000e+00> : vector<12x8xf32>
    %441 = tpu.matmul %437, %440, %cst_286 {dimension_numbers = #tpu.dot_dimension_numbers<[1], [0], [0], [1], [0, 0, 1, 1], [], []>} : vector<12x32xf32>, vector<32x8xf32>, vector<12x8xf32> -> vector<12x8xf32>
    %c1_287 = arith.constant 1 : index
    %c0_288 = arith.constant 0 : index
    %c0_289 = arith.constant 0 : index
    %c0_290 = arith.constant 0 : index
    %442 = vector.load %arg12[%c1_287, %c0_288, %c0_289, %c0_290] : memref<2x3x4x8xf32, #tpu.memory_space<vmem>>, vector<1x1x1x8xf32>
    %443 = vector.shape_cast %442 : vector<1x1x1x8xf32> to vector<8xf32>
    %444 = vector.shape_cast %443 : vector<8xf32> to vector<1x8xf32>
    %445 = vector.broadcast %444 : vector<1x8xf32> to vector<12x8xf32>
    %446 = arith.addf %441, %445 : vector<12x8xf32>
    %c1_291 = arith.constant 1 : index
    %c1_292 = arith.constant 1 : index
    %c0_293 = arith.constant 0 : index
    %c0_294 = arith.constant 0 : index
    %c0_295 = arith.constant 0 : index
    %447 = vector.load %arg11[%c1_291, %c1_292, %c0_293, %c0_294, %c0_295] : memref<2x3x4x32x8xf32, #tpu.memory_space<vmem>>, vector<1x1x1x32x8xf32>
    %448 = vector.shape_cast %447 : vector<1x1x1x32x8xf32> to vector<32x8xf32>
    %cst_296 = arith.constant dense<0.000000e+00> : vector<12x8xf32>
    %449 = tpu.matmul %437, %448, %cst_296 {dimension_numbers = #tpu.dot_dimension_numbers<[1], [0], [0], [1], [0, 0, 1, 1], [], []>} : vector<12x32xf32>, vector<32x8xf32>, vector<12x8xf32> -> vector<12x8xf32>
    %c1_297 = arith.constant 1 : index
    %c1_298 = arith.constant 1 : index
    %c0_299 = arith.constant 0 : index
    %c0_300 = arith.constant 0 : index
    %450 = vector.load %arg12[%c1_297, %c1_298, %c0_299, %c0_300] : memref<2x3x4x8xf32, #tpu.memory_space<vmem>>, vector<1x1x1x8xf32>
    %451 = vector.shape_cast %450 : vector<1x1x1x8xf32> to vector<8xf32>
    %452 = vector.shape_cast %451 : vector<8xf32> to vector<1x8xf32>
    %453 = vector.broadcast %452 : vector<1x8xf32> to vector<12x8xf32>
    %454 = arith.addf %449, %453 : vector<12x8xf32>
    %c1_301 = arith.constant 1 : index
    %c2_302 = arith.constant 2 : index
    %c0_303 = arith.constant 0 : index
    %c0_304 = arith.constant 0 : index
    %c0_305 = arith.constant 0 : index
    %455 = vector.load %arg11[%c1_301, %c2_302, %c0_303, %c0_304, %c0_305] : memref<2x3x4x32x8xf32, #tpu.memory_space<vmem>>, vector<1x1x1x32x8xf32>
    %456 = vector.shape_cast %455 : vector<1x1x1x32x8xf32> to vector<32x8xf32>
    %cst_306 = arith.constant dense<0.000000e+00> : vector<12x8xf32>
    %457 = tpu.matmul %437, %456, %cst_306 {dimension_numbers = #tpu.dot_dimension_numbers<[1], [0], [0], [1], [0, 0, 1, 1], [], []>} : vector<12x32xf32>, vector<32x8xf32>, vector<12x8xf32> -> vector<12x8xf32>
    %c1_307 = arith.constant 1 : index
    %c2_308 = arith.constant 2 : index
    %c0_309 = arith.constant 0 : index
    %c0_310 = arith.constant 0 : index
    %458 = vector.load %arg12[%c1_307, %c2_308, %c0_309, %c0_310] : memref<2x3x4x8xf32, #tpu.memory_space<vmem>>, vector<1x1x1x8xf32>
    %459 = vector.shape_cast %458 : vector<1x1x1x8xf32> to vector<8xf32>
    %460 = vector.shape_cast %459 : vector<8xf32> to vector<1x8xf32>
    %461 = vector.broadcast %460 : vector<1x8xf32> to vector<12x8xf32>
    %462 = arith.addf %457, %461 : vector<12x8xf32>
    %463 = tpu.transpose %454, [1, 0] : vector<12x8xf32> -> vector<8x12xf32>
    %cst_311 = arith.constant dense<0.000000e+00> : vector<12x12xf32>
    %464 = tpu.matmul %446, %463, %cst_311 {dimension_numbers = #tpu.dot_dimension_numbers<[1], [0], [0], [1], [0, 0, 1, 1], [], []>} : vector<12x8xf32>, vector<8x12xf32>, vector<12x12xf32> -> vector<12x12xf32>
    %cst_312 = arith.constant 0.353553385 : f32
    %465 = vector.broadcast %cst_312 : f32 to vector<12x12xf32>
    %466 = arith.mulf %464, %465 : vector<12x12xf32>
    %cst_313 = arith.constant -1.000000e+09 : f32
    %467 = vector.broadcast %cst_313 : f32 to vector<12x12xf32>
    %468 = arith.select %137, %466, %467 : vector<12x12xi1>, vector<12x12xf32>
    %cst_314 = arith.constant dense<0xFF800000> : vector<12xf32>
    %469 = vector.multi_reduction <maximumf>, %468, %cst_314 [1] : vector<12x12xf32> to vector<12xf32>
    %470 = vector.shape_cast %469 : vector<12xf32> to vector<12x1xf32>
    %471 = vector.broadcast %470 : vector<12x1xf32> to vector<12x12xf32>
    %472 = arith.subf %468, %471 : vector<12x12xf32>
    %473 = math.exp %472 : vector<12x12xf32>
    %cst_315 = arith.constant dense<0.000000e+00> : vector<12xf32>
    %474 = vector.multi_reduction <add>, %473, %cst_315 [1] : vector<12x12xf32> to vector<12xf32>
    %475 = vector.shape_cast %474 : vector<12xf32> to vector<12x1xf32>
    %476 = vector.broadcast %475 : vector<12x1xf32> to vector<12x12xf32>
    %477 = arith.divf %473, %476 : vector<12x12xf32>
    %cst_316 = arith.constant dense<0.000000e+00> : vector<12x8xf32>
    %478 = tpu.matmul %477, %462, %cst_316 {dimension_numbers = #tpu.dot_dimension_numbers<[1], [0], [0], [1], [0, 0, 1, 1], [], []>} : vector<12x12xf32>, vector<12x8xf32>, vector<12x8xf32> -> vector<12x8xf32>
    %c1_317 = arith.constant 1 : index
    %c0_318 = arith.constant 0 : index
    %c0_319 = arith.constant 0 : index
    %c0_320 = arith.constant 0 : index
    %479 = vector.load %arg13[%c1_317, %c0_318, %c0_319, %c0_320] : memref<2x4x8x32xf32, #tpu.memory_space<vmem>>, vector<1x1x8x32xf32>
    %480 = vector.shape_cast %479 : vector<1x1x8x32xf32> to vector<8x32xf32>
    %cst_321 = arith.constant dense<0.000000e+00> : vector<12x32xf32>
    %481 = tpu.matmul %478, %480, %cst_321 {dimension_numbers = #tpu.dot_dimension_numbers<[1], [0], [0], [1], [0, 0, 1, 1], [], []>} : vector<12x8xf32>, vector<8x32xf32>, vector<12x32xf32> -> vector<12x32xf32>
    %482 = arith.addf %438, %481 : vector<12x32xf32>
    %c1_322 = arith.constant 1 : index
    %c0_323 = arith.constant 0 : index
    %c1_324 = arith.constant 1 : index
    %c0_325 = arith.constant 0 : index
    %c0_326 = arith.constant 0 : index
    %483 = vector.load %arg11[%c1_322, %c0_323, %c1_324, %c0_325, %c0_326] : memref<2x3x4x32x8xf32, #tpu.memory_space<vmem>>, vector<1x1x1x32x8xf32>
    %484 = vector.shape_cast %483 : vector<1x1x1x32x8xf32> to vector<32x8xf32>
    %cst_327 = arith.constant dense<0.000000e+00> : vector<12x8xf32>
    %485 = tpu.matmul %437, %484, %cst_327 {dimension_numbers = #tpu.dot_dimension_numbers<[1], [0], [0], [1], [0, 0, 1, 1], [], []>} : vector<12x32xf32>, vector<32x8xf32>, vector<12x8xf32> -> vector<12x8xf32>
    %c1_328 = arith.constant 1 : index
    %c0_329 = arith.constant 0 : index
    %c1_330 = arith.constant 1 : index
    %c0_331 = arith.constant 0 : index
    %486 = vector.load %arg12[%c1_328, %c0_329, %c1_330, %c0_331] : memref<2x3x4x8xf32, #tpu.memory_space<vmem>>, vector<1x1x1x8xf32>
    %487 = vector.shape_cast %486 : vector<1x1x1x8xf32> to vector<8xf32>
    %488 = vector.shape_cast %487 : vector<8xf32> to vector<1x8xf32>
    %489 = vector.broadcast %488 : vector<1x8xf32> to vector<12x8xf32>
    %490 = arith.addf %485, %489 : vector<12x8xf32>
    %c1_332 = arith.constant 1 : index
    %c1_333 = arith.constant 1 : index
    %c1_334 = arith.constant 1 : index
    %c0_335 = arith.constant 0 : index
    %c0_336 = arith.constant 0 : index
    %491 = vector.load %arg11[%c1_332, %c1_333, %c1_334, %c0_335, %c0_336] : memref<2x3x4x32x8xf32, #tpu.memory_space<vmem>>, vector<1x1x1x32x8xf32>
    %492 = vector.shape_cast %491 : vector<1x1x1x32x8xf32> to vector<32x8xf32>
    %cst_337 = arith.constant dense<0.000000e+00> : vector<12x8xf32>
    %493 = tpu.matmul %437, %492, %cst_337 {dimension_numbers = #tpu.dot_dimension_numbers<[1], [0], [0], [1], [0, 0, 1, 1], [], []>} : vector<12x32xf32>, vector<32x8xf32>, vector<12x8xf32> -> vector<12x8xf32>
    %c1_338 = arith.constant 1 : index
    %c1_339 = arith.constant 1 : index
    %c1_340 = arith.constant 1 : index
    %c0_341 = arith.constant 0 : index
    %494 = vector.load %arg12[%c1_338, %c1_339, %c1_340, %c0_341] : memref<2x3x4x8xf32, #tpu.memory_space<vmem>>, vector<1x1x1x8xf32>
    %495 = vector.shape_cast %494 : vector<1x1x1x8xf32> to vector<8xf32>
    %496 = vector.shape_cast %495 : vector<8xf32> to vector<1x8xf32>
    %497 = vector.broadcast %496 : vector<1x8xf32> to vector<12x8xf32>
    %498 = arith.addf %493, %497 : vector<12x8xf32>
    %c1_342 = arith.constant 1 : index
    %c2_343 = arith.constant 2 : index
    %c1_344 = arith.constant 1 : index
    %c0_345 = arith.constant 0 : index
    %c0_346 = arith.constant 0 : index
    %499 = vector.load %arg11[%c1_342, %c2_343, %c1_344, %c0_345, %c0_346] : memref<2x3x4x32x8xf32, #tpu.memory_space<vmem>>, vector<1x1x1x32x8xf32>
    %500 = vector.shape_cast %499 : vector<1x1x1x32x8xf32> to vector<32x8xf32>
    %cst_347 = arith.constant dense<0.000000e+00> : vector<12x8xf32>
    %501 = tpu.matmul %437, %500, %cst_347 {dimension_numbers = #tpu.dot_dimension_numbers<[1], [0], [0], [1], [0, 0, 1, 1], [], []>} : vector<12x32xf32>, vector<32x8xf32>, vector<12x8xf32> -> vector<12x8xf32>
    %c1_348 = arith.constant 1 : index
    %c2_349 = arith.constant 2 : index
    %c1_350 = arith.constant 1 : index
    %c0_351 = arith.constant 0 : index
    %502 = vector.load %arg12[%c1_348, %c2_349, %c1_350, %c0_351] : memref<2x3x4x8xf32, #tpu.memory_space<vmem>>, vector<1x1x1x8xf32>
    %503 = vector.shape_cast %502 : vector<1x1x1x8xf32> to vector<8xf32>
    %504 = vector.shape_cast %503 : vector<8xf32> to vector<1x8xf32>
    %505 = vector.broadcast %504 : vector<1x8xf32> to vector<12x8xf32>
    %506 = arith.addf %501, %505 : vector<12x8xf32>
    %507 = tpu.transpose %498, [1, 0] : vector<12x8xf32> -> vector<8x12xf32>
    %cst_352 = arith.constant dense<0.000000e+00> : vector<12x12xf32>
    %508 = tpu.matmul %490, %507, %cst_352 {dimension_numbers = #tpu.dot_dimension_numbers<[1], [0], [0], [1], [0, 0, 1, 1], [], []>} : vector<12x8xf32>, vector<8x12xf32>, vector<12x12xf32> -> vector<12x12xf32>
    %cst_353 = arith.constant 0.353553385 : f32
    %509 = vector.broadcast %cst_353 : f32 to vector<12x12xf32>
    %510 = arith.mulf %508, %509 : vector<12x12xf32>
    %cst_354 = arith.constant -1.000000e+09 : f32
    %511 = vector.broadcast %cst_354 : f32 to vector<12x12xf32>
    %512 = arith.select %137, %510, %511 : vector<12x12xi1>, vector<12x12xf32>
    %cst_355 = arith.constant dense<0xFF800000> : vector<12xf32>
    %513 = vector.multi_reduction <maximumf>, %512, %cst_355 [1] : vector<12x12xf32> to vector<12xf32>
    %514 = vector.shape_cast %513 : vector<12xf32> to vector<12x1xf32>
    %515 = vector.broadcast %514 : vector<12x1xf32> to vector<12x12xf32>
    %516 = arith.subf %512, %515 : vector<12x12xf32>
    %517 = math.exp %516 : vector<12x12xf32>
    %cst_356 = arith.constant dense<0.000000e+00> : vector<12xf32>
    %518 = vector.multi_reduction <add>, %517, %cst_356 [1] : vector<12x12xf32> to vector<12xf32>
    %519 = vector.shape_cast %518 : vector<12xf32> to vector<12x1xf32>
    %520 = vector.broadcast %519 : vector<12x1xf32> to vector<12x12xf32>
    %521 = arith.divf %517, %520 : vector<12x12xf32>
    %cst_357 = arith.constant dense<0.000000e+00> : vector<12x8xf32>
    %522 = tpu.matmul %521, %506, %cst_357 {dimension_numbers = #tpu.dot_dimension_numbers<[1], [0], [0], [1], [0, 0, 1, 1], [], []>} : vector<12x12xf32>, vector<12x8xf32>, vector<12x8xf32> -> vector<12x8xf32>
    %c1_358 = arith.constant 1 : index
    %c1_359 = arith.constant 1 : index
    %c0_360 = arith.constant 0 : index
    %c0_361 = arith.constant 0 : index
    %523 = vector.load %arg13[%c1_358, %c1_359, %c0_360, %c0_361] : memref<2x4x8x32xf32, #tpu.memory_space<vmem>>, vector<1x1x8x32xf32>
    %524 = vector.shape_cast %523 : vector<1x1x8x32xf32> to vector<8x32xf32>
    %cst_362 = arith.constant dense<0.000000e+00> : vector<12x32xf32>
    %525 = tpu.matmul %522, %524, %cst_362 {dimension_numbers = #tpu.dot_dimension_numbers<[1], [0], [0], [1], [0, 0, 1, 1], [], []>} : vector<12x8xf32>, vector<8x32xf32>, vector<12x32xf32> -> vector<12x32xf32>
    %526 = arith.addf %482, %525 : vector<12x32xf32>
    %c1_363 = arith.constant 1 : index
    %c0_364 = arith.constant 0 : index
    %c2_365 = arith.constant 2 : index
    %c0_366 = arith.constant 0 : index
    %c0_367 = arith.constant 0 : index
    %527 = vector.load %arg11[%c1_363, %c0_364, %c2_365, %c0_366, %c0_367] : memref<2x3x4x32x8xf32, #tpu.memory_space<vmem>>, vector<1x1x1x32x8xf32>
    %528 = vector.shape_cast %527 : vector<1x1x1x32x8xf32> to vector<32x8xf32>
    %cst_368 = arith.constant dense<0.000000e+00> : vector<12x8xf32>
    %529 = tpu.matmul %437, %528, %cst_368 {dimension_numbers = #tpu.dot_dimension_numbers<[1], [0], [0], [1], [0, 0, 1, 1], [], []>} : vector<12x32xf32>, vector<32x8xf32>, vector<12x8xf32> -> vector<12x8xf32>
    %c1_369 = arith.constant 1 : index
    %c0_370 = arith.constant 0 : index
    %c2_371 = arith.constant 2 : index
    %c0_372 = arith.constant 0 : index
    %530 = vector.load %arg12[%c1_369, %c0_370, %c2_371, %c0_372] : memref<2x3x4x8xf32, #tpu.memory_space<vmem>>, vector<1x1x1x8xf32>
    %531 = vector.shape_cast %530 : vector<1x1x1x8xf32> to vector<8xf32>
    %532 = vector.shape_cast %531 : vector<8xf32> to vector<1x8xf32>
    %533 = vector.broadcast %532 : vector<1x8xf32> to vector<12x8xf32>
    %534 = arith.addf %529, %533 : vector<12x8xf32>
    %c1_373 = arith.constant 1 : index
    %c1_374 = arith.constant 1 : index
    %c2_375 = arith.constant 2 : index
    %c0_376 = arith.constant 0 : index
    %c0_377 = arith.constant 0 : index
    %535 = vector.load %arg11[%c1_373, %c1_374, %c2_375, %c0_376, %c0_377] : memref<2x3x4x32x8xf32, #tpu.memory_space<vmem>>, vector<1x1x1x32x8xf32>
    %536 = vector.shape_cast %535 : vector<1x1x1x32x8xf32> to vector<32x8xf32>
    %cst_378 = arith.constant dense<0.000000e+00> : vector<12x8xf32>
    %537 = tpu.matmul %437, %536, %cst_378 {dimension_numbers = #tpu.dot_dimension_numbers<[1], [0], [0], [1], [0, 0, 1, 1], [], []>} : vector<12x32xf32>, vector<32x8xf32>, vector<12x8xf32> -> vector<12x8xf32>
    %c1_379 = arith.constant 1 : index
    %c1_380 = arith.constant 1 : index
    %c2_381 = arith.constant 2 : index
    %c0_382 = arith.constant 0 : index
    %538 = vector.load %arg12[%c1_379, %c1_380, %c2_381, %c0_382] : memref<2x3x4x8xf32, #tpu.memory_space<vmem>>, vector<1x1x1x8xf32>
    %539 = vector.shape_cast %538 : vector<1x1x1x8xf32> to vector<8xf32>
    %540 = vector.shape_cast %539 : vector<8xf32> to vector<1x8xf32>
    %541 = vector.broadcast %540 : vector<1x8xf32> to vector<12x8xf32>
    %542 = arith.addf %537, %541 : vector<12x8xf32>
    %c1_383 = arith.constant 1 : index
    %c2_384 = arith.constant 2 : index
    %c2_385 = arith.constant 2 : index
    %c0_386 = arith.constant 0 : index
    %c0_387 = arith.constant 0 : index
    %543 = vector.load %arg11[%c1_383, %c2_384, %c2_385, %c0_386, %c0_387] : memref<2x3x4x32x8xf32, #tpu.memory_space<vmem>>, vector<1x1x1x32x8xf32>
    %544 = vector.shape_cast %543 : vector<1x1x1x32x8xf32> to vector<32x8xf32>
    %cst_388 = arith.constant dense<0.000000e+00> : vector<12x8xf32>
    %545 = tpu.matmul %437, %544, %cst_388 {dimension_numbers = #tpu.dot_dimension_numbers<[1], [0], [0], [1], [0, 0, 1, 1], [], []>} : vector<12x32xf32>, vector<32x8xf32>, vector<12x8xf32> -> vector<12x8xf32>
    %c1_389 = arith.constant 1 : index
    %c2_390 = arith.constant 2 : index
    %c2_391 = arith.constant 2 : index
    %c0_392 = arith.constant 0 : index
    %546 = vector.load %arg12[%c1_389, %c2_390, %c2_391, %c0_392] : memref<2x3x4x8xf32, #tpu.memory_space<vmem>>, vector<1x1x1x8xf32>
    %547 = vector.shape_cast %546 : vector<1x1x1x8xf32> to vector<8xf32>
    %548 = vector.shape_cast %547 : vector<8xf32> to vector<1x8xf32>
    %549 = vector.broadcast %548 : vector<1x8xf32> to vector<12x8xf32>
    %550 = arith.addf %545, %549 : vector<12x8xf32>
    %551 = tpu.transpose %542, [1, 0] : vector<12x8xf32> -> vector<8x12xf32>
    %cst_393 = arith.constant dense<0.000000e+00> : vector<12x12xf32>
    %552 = tpu.matmul %534, %551, %cst_393 {dimension_numbers = #tpu.dot_dimension_numbers<[1], [0], [0], [1], [0, 0, 1, 1], [], []>} : vector<12x8xf32>, vector<8x12xf32>, vector<12x12xf32> -> vector<12x12xf32>
    %cst_394 = arith.constant 0.353553385 : f32
    %553 = vector.broadcast %cst_394 : f32 to vector<12x12xf32>
    %554 = arith.mulf %552, %553 : vector<12x12xf32>
    %cst_395 = arith.constant -1.000000e+09 : f32
    %555 = vector.broadcast %cst_395 : f32 to vector<12x12xf32>
    %556 = arith.select %137, %554, %555 : vector<12x12xi1>, vector<12x12xf32>
    %cst_396 = arith.constant dense<0xFF800000> : vector<12xf32>
    %557 = vector.multi_reduction <maximumf>, %556, %cst_396 [1] : vector<12x12xf32> to vector<12xf32>
    %558 = vector.shape_cast %557 : vector<12xf32> to vector<12x1xf32>
    %559 = vector.broadcast %558 : vector<12x1xf32> to vector<12x12xf32>
    %560 = arith.subf %556, %559 : vector<12x12xf32>
    %561 = math.exp %560 : vector<12x12xf32>
    %cst_397 = arith.constant dense<0.000000e+00> : vector<12xf32>
    %562 = vector.multi_reduction <add>, %561, %cst_397 [1] : vector<12x12xf32> to vector<12xf32>
    %563 = vector.shape_cast %562 : vector<12xf32> to vector<12x1xf32>
    %564 = vector.broadcast %563 : vector<12x1xf32> to vector<12x12xf32>
    %565 = arith.divf %561, %564 : vector<12x12xf32>
    %cst_398 = arith.constant dense<0.000000e+00> : vector<12x8xf32>
    %566 = tpu.matmul %565, %550, %cst_398 {dimension_numbers = #tpu.dot_dimension_numbers<[1], [0], [0], [1], [0, 0, 1, 1], [], []>} : vector<12x12xf32>, vector<12x8xf32>, vector<12x8xf32> -> vector<12x8xf32>
    %c1_399 = arith.constant 1 : index
    %c2_400 = arith.constant 2 : index
    %c0_401 = arith.constant 0 : index
    %c0_402 = arith.constant 0 : index
    %567 = vector.load %arg13[%c1_399, %c2_400, %c0_401, %c0_402] : memref<2x4x8x32xf32, #tpu.memory_space<vmem>>, vector<1x1x8x32xf32>
    %568 = vector.shape_cast %567 : vector<1x1x8x32xf32> to vector<8x32xf32>
    %cst_403 = arith.constant dense<0.000000e+00> : vector<12x32xf32>
    %569 = tpu.matmul %566, %568, %cst_403 {dimension_numbers = #tpu.dot_dimension_numbers<[1], [0], [0], [1], [0, 0, 1, 1], [], []>} : vector<12x8xf32>, vector<8x32xf32>, vector<12x32xf32> -> vector<12x32xf32>
    %570 = arith.addf %526, %569 : vector<12x32xf32>
    %c1_404 = arith.constant 1 : index
    %c0_405 = arith.constant 0 : index
    %c3_406 = arith.constant 3 : index
    %c0_407 = arith.constant 0 : index
    %c0_408 = arith.constant 0 : index
    %571 = vector.load %arg11[%c1_404, %c0_405, %c3_406, %c0_407, %c0_408] : memref<2x3x4x32x8xf32, #tpu.memory_space<vmem>>, vector<1x1x1x32x8xf32>
    %572 = vector.shape_cast %571 : vector<1x1x1x32x8xf32> to vector<32x8xf32>
    %cst_409 = arith.constant dense<0.000000e+00> : vector<12x8xf32>
    %573 = tpu.matmul %437, %572, %cst_409 {dimension_numbers = #tpu.dot_dimension_numbers<[1], [0], [0], [1], [0, 0, 1, 1], [], []>} : vector<12x32xf32>, vector<32x8xf32>, vector<12x8xf32> -> vector<12x8xf32>
    %c1_410 = arith.constant 1 : index
    %c0_411 = arith.constant 0 : index
    %c3_412 = arith.constant 3 : index
    %c0_413 = arith.constant 0 : index
    %574 = vector.load %arg12[%c1_410, %c0_411, %c3_412, %c0_413] : memref<2x3x4x8xf32, #tpu.memory_space<vmem>>, vector<1x1x1x8xf32>
    %575 = vector.shape_cast %574 : vector<1x1x1x8xf32> to vector<8xf32>
    %576 = vector.shape_cast %575 : vector<8xf32> to vector<1x8xf32>
    %577 = vector.broadcast %576 : vector<1x8xf32> to vector<12x8xf32>
    %578 = arith.addf %573, %577 : vector<12x8xf32>
    %c1_414 = arith.constant 1 : index
    %c1_415 = arith.constant 1 : index
    %c3_416 = arith.constant 3 : index
    %c0_417 = arith.constant 0 : index
    %c0_418 = arith.constant 0 : index
    %579 = vector.load %arg11[%c1_414, %c1_415, %c3_416, %c0_417, %c0_418] : memref<2x3x4x32x8xf32, #tpu.memory_space<vmem>>, vector<1x1x1x32x8xf32>
    %580 = vector.shape_cast %579 : vector<1x1x1x32x8xf32> to vector<32x8xf32>
    %cst_419 = arith.constant dense<0.000000e+00> : vector<12x8xf32>
    %581 = tpu.matmul %437, %580, %cst_419 {dimension_numbers = #tpu.dot_dimension_numbers<[1], [0], [0], [1], [0, 0, 1, 1], [], []>} : vector<12x32xf32>, vector<32x8xf32>, vector<12x8xf32> -> vector<12x8xf32>
    %c1_420 = arith.constant 1 : index
    %c1_421 = arith.constant 1 : index
    %c3_422 = arith.constant 3 : index
    %c0_423 = arith.constant 0 : index
    %582 = vector.load %arg12[%c1_420, %c1_421, %c3_422, %c0_423] : memref<2x3x4x8xf32, #tpu.memory_space<vmem>>, vector<1x1x1x8xf32>
    %583 = vector.shape_cast %582 : vector<1x1x1x8xf32> to vector<8xf32>
    %584 = vector.shape_cast %583 : vector<8xf32> to vector<1x8xf32>
    %585 = vector.broadcast %584 : vector<1x8xf32> to vector<12x8xf32>
    %586 = arith.addf %581, %585 : vector<12x8xf32>
    %c1_424 = arith.constant 1 : index
    %c2_425 = arith.constant 2 : index
    %c3_426 = arith.constant 3 : index
    %c0_427 = arith.constant 0 : index
    %c0_428 = arith.constant 0 : index
    %587 = vector.load %arg11[%c1_424, %c2_425, %c3_426, %c0_427, %c0_428] : memref<2x3x4x32x8xf32, #tpu.memory_space<vmem>>, vector<1x1x1x32x8xf32>
    %588 = vector.shape_cast %587 : vector<1x1x1x32x8xf32> to vector<32x8xf32>
    %cst_429 = arith.constant dense<0.000000e+00> : vector<12x8xf32>
    %589 = tpu.matmul %437, %588, %cst_429 {dimension_numbers = #tpu.dot_dimension_numbers<[1], [0], [0], [1], [0, 0, 1, 1], [], []>} : vector<12x32xf32>, vector<32x8xf32>, vector<12x8xf32> -> vector<12x8xf32>
    %c1_430 = arith.constant 1 : index
    %c2_431 = arith.constant 2 : index
    %c3_432 = arith.constant 3 : index
    %c0_433 = arith.constant 0 : index
    %590 = vector.load %arg12[%c1_430, %c2_431, %c3_432, %c0_433] : memref<2x3x4x8xf32, #tpu.memory_space<vmem>>, vector<1x1x1x8xf32>
    %591 = vector.shape_cast %590 : vector<1x1x1x8xf32> to vector<8xf32>
    %592 = vector.shape_cast %591 : vector<8xf32> to vector<1x8xf32>
    %593 = vector.broadcast %592 : vector<1x8xf32> to vector<12x8xf32>
    %594 = arith.addf %589, %593 : vector<12x8xf32>
    %595 = tpu.transpose %586, [1, 0] : vector<12x8xf32> -> vector<8x12xf32>
    %cst_434 = arith.constant dense<0.000000e+00> : vector<12x12xf32>
    %596 = tpu.matmul %578, %595, %cst_434 {dimension_numbers = #tpu.dot_dimension_numbers<[1], [0], [0], [1], [0, 0, 1, 1], [], []>} : vector<12x8xf32>, vector<8x12xf32>, vector<12x12xf32> -> vector<12x12xf32>
    %cst_435 = arith.constant 0.353553385 : f32
    %597 = vector.broadcast %cst_435 : f32 to vector<12x12xf32>
    %598 = arith.mulf %596, %597 : vector<12x12xf32>
    %cst_436 = arith.constant -1.000000e+09 : f32
    %599 = vector.broadcast %cst_436 : f32 to vector<12x12xf32>
    %600 = arith.select %137, %598, %599 : vector<12x12xi1>, vector<12x12xf32>
    %cst_437 = arith.constant dense<0xFF800000> : vector<12xf32>
    %601 = vector.multi_reduction <maximumf>, %600, %cst_437 [1] : vector<12x12xf32> to vector<12xf32>
    %602 = vector.shape_cast %601 : vector<12xf32> to vector<12x1xf32>
    %603 = vector.broadcast %602 : vector<12x1xf32> to vector<12x12xf32>
    %604 = arith.subf %600, %603 : vector<12x12xf32>
    %605 = math.exp %604 : vector<12x12xf32>
    %cst_438 = arith.constant dense<0.000000e+00> : vector<12xf32>
    %606 = vector.multi_reduction <add>, %605, %cst_438 [1] : vector<12x12xf32> to vector<12xf32>
    %607 = vector.shape_cast %606 : vector<12xf32> to vector<12x1xf32>
    %608 = vector.broadcast %607 : vector<12x1xf32> to vector<12x12xf32>
    %609 = arith.divf %605, %608 : vector<12x12xf32>
    %cst_439 = arith.constant dense<0.000000e+00> : vector<12x8xf32>
    %610 = tpu.matmul %609, %594, %cst_439 {dimension_numbers = #tpu.dot_dimension_numbers<[1], [0], [0], [1], [0, 0, 1, 1], [], []>} : vector<12x12xf32>, vector<12x8xf32>, vector<12x8xf32> -> vector<12x8xf32>
    %c1_440 = arith.constant 1 : index
    %c3_441 = arith.constant 3 : index
    %c0_442 = arith.constant 0 : index
    %c0_443 = arith.constant 0 : index
    %611 = vector.load %arg13[%c1_440, %c3_441, %c0_442, %c0_443] : memref<2x4x8x32xf32, #tpu.memory_space<vmem>>, vector<1x1x8x32xf32>
    %612 = vector.shape_cast %611 : vector<1x1x8x32xf32> to vector<8x32xf32>
    %cst_444 = arith.constant dense<0.000000e+00> : vector<12x32xf32>
    %613 = tpu.matmul %610, %612, %cst_444 {dimension_numbers = #tpu.dot_dimension_numbers<[1], [0], [0], [1], [0, 0, 1, 1], [], []>} : vector<12x8xf32>, vector<8x32xf32>, vector<12x32xf32> -> vector<12x32xf32>
    %614 = arith.addf %570, %613 : vector<12x32xf32>
    %615 = arith.addf %409, %614 : vector<12x32xf32>
    %c1_445 = arith.constant 1 : index
    %c0_446 = arith.constant 0 : index
    %616 = vector.load %arg14[%c1_445, %c0_446] : memref<2x32xf32, #tpu.memory_space<vmem>>, vector<1x32xf32>
    %617 = vector.shape_cast %616 : vector<1x32xf32> to vector<32xf32>
    %618 = vector.shape_cast %617 : vector<32xf32> to vector<1x32xf32>
    %619 = vector.broadcast %618 : vector<1x32xf32> to vector<12x32xf32>
    %620 = arith.addf %615, %619 : vector<12x32xf32>
    %c1_447 = arith.constant 1 : index
    %c0_448 = arith.constant 0 : index
    %621 = vector.load %arg15[%c1_447, %c0_448] : memref<2x32xf32, #tpu.memory_space<vmem>>, vector<1x32xf32>
    %622 = vector.shape_cast %621 : vector<1x32xf32> to vector<32xf32>
    %c1_449 = arith.constant 1 : index
    %c0_450 = arith.constant 0 : index
    %623 = vector.load %arg16[%c1_449, %c0_450] : memref<2x32xf32, #tpu.memory_space<vmem>>, vector<1x32xf32>
    %624 = vector.shape_cast %623 : vector<1x32xf32> to vector<32xf32>
    %cst_451 = arith.constant dense<0.000000e+00> : vector<12xf32>
    %625 = vector.multi_reduction <add>, %620, %cst_451 [1] : vector<12x32xf32> to vector<12xf32>
    %626 = vector.shape_cast %625 : vector<12xf32> to vector<12x1xf32>
    %cst_452 = arith.constant 3.200000e+01 : f32
    %627 = vector.broadcast %cst_452 : f32 to vector<12x1xf32>
    %628 = arith.divf %626, %627 : vector<12x1xf32>
    %629 = vector.broadcast %628 : vector<12x1xf32> to vector<12x32xf32>
    %630 = arith.subf %620, %629 : vector<12x32xf32>
    %631 = arith.mulf %630, %630 : vector<12x32xf32>
    %cst_453 = arith.constant dense<0.000000e+00> : vector<12xf32>
    %632 = vector.multi_reduction <add>, %631, %cst_453 [1] : vector<12x32xf32> to vector<12xf32>
    %633 = vector.shape_cast %632 : vector<12xf32> to vector<12x1xf32>
    %cst_454 = arith.constant 3.200000e+01 : f32
    %634 = vector.broadcast %cst_454 : f32 to vector<12x1xf32>
    %635 = arith.divf %633, %634 : vector<12x1xf32>
    %636 = vector.broadcast %628 : vector<12x1xf32> to vector<12x32xf32>
    %637 = arith.subf %620, %636 : vector<12x32xf32>
    %cst_455 = arith.constant 9.99999974E-6 : f32
    %638 = vector.broadcast %cst_455 : f32 to vector<12x1xf32>
    %639 = arith.addf %635, %638 : vector<12x1xf32>
    %640 = math.rsqrt %639 : vector<12x1xf32>
    %641 = vector.broadcast %640 : vector<12x1xf32> to vector<12x32xf32>
    %642 = arith.mulf %637, %641 : vector<12x32xf32>
    %643 = vector.shape_cast %622 : vector<32xf32> to vector<1x32xf32>
    %644 = vector.broadcast %643 : vector<1x32xf32> to vector<12x32xf32>
    %645 = arith.mulf %642, %644 : vector<12x32xf32>
    %646 = vector.shape_cast %624 : vector<32xf32> to vector<1x32xf32>
    %647 = vector.broadcast %646 : vector<1x32xf32> to vector<12x32xf32>
    %648 = arith.addf %645, %647 : vector<12x32xf32>
    %c1_456 = arith.constant 1 : index
    %c0_457 = arith.constant 0 : index
    %c0_458 = arith.constant 0 : index
    %649 = vector.load %arg17[%c1_456, %c0_457, %c0_458] : memref<2x32x128xf32, #tpu.memory_space<vmem>>, vector<1x32x128xf32>
    %650 = vector.shape_cast %649 : vector<1x32x128xf32> to vector<32x128xf32>
    %cst_459 = arith.constant dense<0.000000e+00> : vector<12x128xf32>
    %651 = tpu.matmul %648, %650, %cst_459 {dimension_numbers = #tpu.dot_dimension_numbers<[1], [0], [0], [1], [0, 0, 1, 1], [], []>} : vector<12x32xf32>, vector<32x128xf32>, vector<12x128xf32> -> vector<12x128xf32>
    %c1_460 = arith.constant 1 : index
    %c0_461 = arith.constant 0 : index
    %652 = vector.load %arg18[%c1_460, %c0_461] : memref<2x128xf32, #tpu.memory_space<vmem>>, vector<1x128xf32>
    %653 = vector.shape_cast %652 : vector<1x128xf32> to vector<128xf32>
    %654 = vector.shape_cast %653 : vector<128xf32> to vector<1x128xf32>
    %655 = vector.broadcast %654 : vector<1x128xf32> to vector<12x128xf32>
    %656 = arith.addf %651, %655 : vector<12x128xf32>
    %cst_462 = arith.constant 5.000000e-01 : f32
    %657 = vector.broadcast %cst_462 : f32 to vector<12x128xf32>
    %658 = arith.mulf %657, %656 : vector<12x128xf32>
    %cst_463 = arith.constant 4.471500e-02 : f32
    %659 = vector.broadcast %cst_463 : f32 to vector<12x128xf32>
    %660 = arith.mulf %659, %656 : vector<12x128xf32>
    %661 = arith.mulf %660, %656 : vector<12x128xf32>
    %662 = arith.mulf %661, %656 : vector<12x128xf32>
    %663 = arith.addf %656, %662 : vector<12x128xf32>
    %cst_464 = arith.constant 0.797884583 : f32
    %664 = vector.broadcast %cst_464 : f32 to vector<12x128xf32>
    %665 = arith.mulf %664, %663 : vector<12x128xf32>
    %666 = math.tanh %665 : vector<12x128xf32>
    %cst_465 = arith.constant 1.000000e+00 : f32
    %667 = vector.broadcast %cst_465 : f32 to vector<12x128xf32>
    %668 = arith.addf %667, %666 : vector<12x128xf32>
    %669 = arith.mulf %658, %668 : vector<12x128xf32>
    %c1_466 = arith.constant 1 : index
    %c0_467 = arith.constant 0 : index
    %c0_468 = arith.constant 0 : index
    %670 = vector.load %arg19[%c1_466, %c0_467, %c0_468] : memref<2x128x32xf32, #tpu.memory_space<vmem>>, vector<1x128x32xf32>
    %671 = vector.shape_cast %670 : vector<1x128x32xf32> to vector<128x32xf32>
    %cst_469 = arith.constant dense<0.000000e+00> : vector<12x32xf32>
    %672 = tpu.matmul %669, %671, %cst_469 {dimension_numbers = #tpu.dot_dimension_numbers<[1], [0], [0], [1], [0, 0, 1, 1], [], []>} : vector<12x128xf32>, vector<128x32xf32>, vector<12x32xf32> -> vector<12x32xf32>
    %c1_470 = arith.constant 1 : index
    %c0_471 = arith.constant 0 : index
    %673 = vector.load %arg20[%c1_470, %c0_471] : memref<2x32xf32, #tpu.memory_space<vmem>>, vector<1x32xf32>
    %674 = vector.shape_cast %673 : vector<1x32xf32> to vector<32xf32>
    %675 = vector.shape_cast %674 : vector<32xf32> to vector<1x32xf32>
    %676 = vector.broadcast %675 : vector<1x32xf32> to vector<12x32xf32>
    %677 = arith.addf %672, %676 : vector<12x32xf32>
    %678 = arith.addf %620, %677 : vector<12x32xf32>
    %c0_472 = arith.constant 0 : index
    %c0_473 = arith.constant 0 : index
    %679 = vector.load %arg25[%c0_472, %c0_473] : memref<12x32xf32, #tpu.memory_space<vmem>>, vector<12x32xf32>
    tpu.vector_store %arg25[%c0_472, %c0_473], %678 {strides = array<i32>} : memref<12x32xf32, #tpu.memory_space<vmem>>, vector<12x32xf32>,
    %c0_474 = arith.constant 0 : index
    %c0_475 = arith.constant 0 : index
    %680 = vector.load %arg25[%c0_474, %c0_475] : memref<12x32xf32, #tpu.memory_space<vmem>>, vector<12x32xf32>
    %c0_476 = arith.constant 0 : index
    %c0_477 = arith.constant 0 : index
    %681 = vector.load %arg21[%c0_476, %c0_477] : memref<1x32xf32, #tpu.memory_space<vmem>>, vector<1x32xf32>
    %682 = vector.shape_cast %681 : vector<1x32xf32> to vector<32xf32>
    %c0_478 = arith.constant 0 : index
    %c0_479 = arith.constant 0 : index
    %683 = vector.load %arg22[%c0_478, %c0_479] : memref<1x32xf32, #tpu.memory_space<vmem>>, vector<1x32xf32>
    %684 = vector.shape_cast %683 : vector<1x32xf32> to vector<32xf32>
    %cst_480 = arith.constant dense<0.000000e+00> : vector<12xf32>
    %685 = vector.multi_reduction <add>, %680, %cst_480 [1] : vector<12x32xf32> to vector<12xf32>
    %686 = vector.shape_cast %685 : vector<12xf32> to vector<12x1xf32>
    %cst_481 = arith.constant 3.200000e+01 : f32
    %687 = vector.broadcast %cst_481 : f32 to vector<12x1xf32>
    %688 = arith.divf %686, %687 : vector<12x1xf32>
    %689 = vector.broadcast %688 : vector<12x1xf32> to vector<12x32xf32>
    %690 = arith.subf %680, %689 : vector<12x32xf32>
    %691 = arith.mulf %690, %690 : vector<12x32xf32>
    %cst_482 = arith.constant dense<0.000000e+00> : vector<12xf32>
    %692 = vector.multi_reduction <add>, %691, %cst_482 [1] : vector<12x32xf32> to vector<12xf32>
    %693 = vector.shape_cast %692 : vector<12xf32> to vector<12x1xf32>
    %cst_483 = arith.constant 3.200000e+01 : f32
    %694 = vector.broadcast %cst_483 : f32 to vector<12x1xf32>
    %695 = arith.divf %693, %694 : vector<12x1xf32>
    %696 = vector.broadcast %688 : vector<12x1xf32> to vector<12x32xf32>
    %697 = arith.subf %680, %696 : vector<12x32xf32>
    %cst_484 = arith.constant 9.99999974E-6 : f32
    %698 = vector.broadcast %cst_484 : f32 to vector<12x1xf32>
    %699 = arith.addf %695, %698 : vector<12x1xf32>
    %700 = math.rsqrt %699 : vector<12x1xf32>
    %701 = vector.broadcast %700 : vector<12x1xf32> to vector<12x32xf32>
    %702 = arith.mulf %697, %701 : vector<12x32xf32>
    %703 = vector.shape_cast %682 : vector<32xf32> to vector<1x32xf32>
    %704 = vector.broadcast %703 : vector<1x32xf32> to vector<12x32xf32>
    %705 = arith.mulf %702, %704 : vector<12x32xf32>
    %706 = vector.shape_cast %684 : vector<32xf32> to vector<1x32xf32>
    %707 = vector.broadcast %706 : vector<1x32xf32> to vector<12x32xf32>
    %708 = arith.addf %705, %707 : vector<12x32xf32>
    %c0_485 = arith.constant 0 : index
    %c0_486 = arith.constant 0 : index
    %709 = vector.load %arg23[%c0_485, %c0_486] : memref<32x128xf32, #tpu.memory_space<vmem>>, vector<32x128xf32>
    %cst_487 = arith.constant dense<0.000000e+00> : vector<12x128xf32>
    %710 = tpu.matmul %708, %709, %cst_487 {dimension_numbers = #tpu.dot_dimension_numbers<[1], [0], [0], [1], [0, 0, 1, 1], [], []>} : vector<12x32xf32>, vector<32x128xf32>, vector<12x128xf32> -> vector<12x128xf32>
    %c0_488 = arith.constant 0 : index
    %c0_489 = arith.constant 0 : index
    %c0_490 = arith.constant 0 : index
    %711 = vector.load %arg24[%c0_488, %c0_489, %c0_490] : memref<1x12x128xf32, #tpu.memory_space<vmem>>, vector<1x12x128xf32>
    %712 = vector.shape_cast %711 : vector<1x12x128xf32> to vector<12x128xf32>
    %713 = vector.shape_cast %710 : vector<12x128xf32> to vector<1x12x128xf32>
    tpu.vector_store %arg24[%c0_488, %c0_489, %c0_490], %713 {strides = array<i32>} : memref<1x12x128xf32, #tpu.memory_space<vmem>>, vector<1x12x128xf32>,
    return
  }
  func.func @transform_0(%arg0: i32, %arg1: memref<16xi32, #tpu.memory_space<smem>>) -> (i32, i32, i32) {
    %c0_i32 = arith.constant 0 : i32
    %c0_i32_0 = arith.constant 0 : i32
    %c0_i32_1 = arith.constant 0 : i32
    return %arg0, %c0_i32, %c0_i32_0 : i32, i32, i32
  }
  func.func @transform_1(%arg0: i32, %arg1: memref<16xi32, #tpu.memory_space<smem>>) -> (i32, i32) {
    %c0_i32 = arith.constant 0 : i32
    %c0_i32_0 = arith.constant 0 : i32
    %c0_i32_1 = arith.constant 0 : i32
    return %c0_i32, %c0_i32_0 : i32, i32
  }
  func.func @transform_2(%arg0: i32, %arg1: memref<16xi32, #tpu.memory_space<smem>>) -> (i32, i32) {
    %c0_i32 = arith.constant 0 : i32
    %c0_i32_0 = arith.constant 0 : i32
    %c0_i32_1 = arith.constant 0 : i32
    return %c0_i32, %c0_i32_0 : i32, i32
  }
  func.func @transform_3(%arg0: i32, %arg1: memref<16xi32, #tpu.memory_space<smem>>) -> (i32, i32) {
    %c0_i32 = arith.constant 0 : i32
    %c0_i32_0 = arith.constant 0 : i32
    %c0_i32_1 = arith.constant 0 : i32
    return %c0_i32, %c0_i32_0 : i32, i32
  }
  func.func @transform_4(%arg0: i32, %arg1: memref<16xi32, #tpu.memory_space<smem>>) -> (i32, i32) {
    %c0_i32 = arith.constant 0 : i32
    %c0_i32_0 = arith.constant 0 : i32
    %c0_i32_1 = arith.constant 0 : i32
    return %c0_i32, %c0_i32_0 : i32, i32
  }
  func.func @transform_5(%arg0: i32, %arg1: memref<16xi32, #tpu.memory_space<smem>>) -> (i32, i32, i32) {
    %c0_i32 = arith.constant 0 : i32
    %c0_i32_0 = arith.constant 0 : i32
    %c0_i32_1 = arith.constant 0 : i32
    %c0_i32_2 = arith.constant 0 : i32
    return %c0_i32, %c0_i32_0, %c0_i32_1 : i32, i32, i32
  }
  func.func @transform_6(%arg0: i32, %arg1: memref<16xi32, #tpu.memory_space<smem>>) -> (i32, i32) {
    %c0_i32 = arith.constant 0 : i32
    %c0_i32_0 = arith.constant 0 : i32
    %c0_i32_1 = arith.constant 0 : i32
    return %c0_i32, %c0_i32_0 : i32, i32
  }
  func.func @transform_7(%arg0: i32, %arg1: memref<16xi32, #tpu.memory_space<smem>>) -> (i32, i32) {
    %c0_i32 = arith.constant 0 : i32
    %c0_i32_0 = arith.constant 0 : i32
    %c0_i32_1 = arith.constant 0 : i32
    return %c0_i32, %c0_i32_0 : i32, i32
  }
  func.func @transform_8(%arg0: i32, %arg1: memref<16xi32, #tpu.memory_space<smem>>) -> (i32, i32) {
    %c0_i32 = arith.constant 0 : i32
    %c0_i32_0 = arith.constant 0 : i32
    %c0_i32_1 = arith.constant 0 : i32
    return %c0_i32, %c0_i32_0 : i32, i32
  }
  func.func @transform_9(%arg0: i32, %arg1: memref<16xi32, #tpu.memory_space<smem>>) -> (i32, i32, i32, i32, i32) {
    %c0_i32 = arith.constant 0 : i32
    %c0_i32_0 = arith.constant 0 : i32
    %c0_i32_1 = arith.constant 0 : i32
    %c0_i32_2 = arith.constant 0 : i32
    %c0_i32_3 = arith.constant 0 : i32
    %c0_i32_4 = arith.constant 0 : i32
    return %c0_i32, %c0_i32_0, %c0_i32_1, %c0_i32_2, %c0_i32_3 : i32, i32, i32, i32, i32
  }
  func.func @transform_10(%arg0: i32, %arg1: memref<16xi32, #tpu.memory_space<smem>>) -> (i32, i32, i32, i32) {
    %c0_i32 = arith.constant 0 : i32
    %c0_i32_0 = arith.constant 0 : i32
    %c0_i32_1 = arith.constant 0 : i32
    %c0_i32_2 = arith.constant 0 : i32
    %c0_i32_3 = arith.constant 0 : i32
    return %c0_i32, %c0_i32_0, %c0_i32_1, %c0_i32_2 : i32, i32, i32, i32
  }
  func.func @transform_11(%arg0: i32, %arg1: memref<16xi32, #tpu.memory_space<smem>>) -> (i32, i32, i32, i32) {
    %c0_i32 = arith.constant 0 : i32
    %c0_i32_0 = arith.constant 0 : i32
    %c0_i32_1 = arith.constant 0 : i32
    %c0_i32_2 = arith.constant 0 : i32
    %c0_i32_3 = arith.constant 0 : i32
    return %c0_i32, %c0_i32_0, %c0_i32_1, %c0_i32_2 : i32, i32, i32, i32
  }
  func.func @transform_12(%arg0: i32, %arg1: memref<16xi32, #tpu.memory_space<smem>>) -> (i32, i32) {
    %c0_i32 = arith.constant 0 : i32
    %c0_i32_0 = arith.constant 0 : i32
    %c0_i32_1 = arith.constant 0 : i32
    return %c0_i32, %c0_i32_0 : i32, i32
  }
  func.func @transform_13(%arg0: i32, %arg1: memref<16xi32, #tpu.memory_space<smem>>) -> (i32, i32) {
    %c0_i32 = arith.constant 0 : i32
    %c0_i32_0 = arith.constant 0 : i32
    %c0_i32_1 = arith.constant 0 : i32
    return %c0_i32, %c0_i32_0 : i32, i32
  }
  func.func @transform_14(%arg0: i32, %arg1: memref<16xi32, #tpu.memory_space<smem>>) -> (i32, i32) {
    %c0_i32 = arith.constant 0 : i32
    %c0_i32_0 = arith.constant 0 : i32
    %c0_i32_1 = arith.constant 0 : i32
    return %c0_i32, %c0_i32_0 : i32, i32
  }
  func.func @transform_15(%arg0: i32, %arg1: memref<16xi32, #tpu.memory_space<smem>>) -> (i32, i32, i32) {
    %c0_i32 = arith.constant 0 : i32
    %c0_i32_0 = arith.constant 0 : i32
    %c0_i32_1 = arith.constant 0 : i32
    %c0_i32_2 = arith.constant 0 : i32
    return %c0_i32, %c0_i32_0, %c0_i32_1 : i32, i32, i32
  }
  func.func @transform_16(%arg0: i32, %arg1: memref<16xi32, #tpu.memory_space<smem>>) -> (i32, i32) {
    %c0_i32 = arith.constant 0 : i32
    %c0_i32_0 = arith.constant 0 : i32
    %c0_i32_1 = arith.constant 0 : i32
    return %c0_i32, %c0_i32_0 : i32, i32
  }
  func.func @transform_17(%arg0: i32, %arg1: memref<16xi32, #tpu.memory_space<smem>>) -> (i32, i32, i32) {
    %c0_i32 = arith.constant 0 : i32
    %c0_i32_0 = arith.constant 0 : i32
    %c0_i32_1 = arith.constant 0 : i32
    %c0_i32_2 = arith.constant 0 : i32
    return %c0_i32, %c0_i32_0, %c0_i32_1 : i32, i32, i32
  }
  func.func @transform_18(%arg0: i32, %arg1: memref<16xi32, #tpu.memory_space<smem>>) -> (i32, i32) {
    %c0_i32 = arith.constant 0 : i32
    %c0_i32_0 = arith.constant 0 : i32
    %c0_i32_1 = arith.constant 0 : i32
    return %c0_i32, %c0_i32_0 : i32, i32
  }
  func.func @transform_19(%arg0: i32, %arg1: memref<16xi32, #tpu.memory_space<smem>>) -> (i32, i32) {
    %c0_i32 = arith.constant 0 : i32
    %c0_i32_0 = arith.constant 0 : i32
    %c0_i32_1 = arith.constant 0 : i32
    return %c0_i32, %c0_i32_0 : i32, i32
  }
  func.func @transform_20(%arg0: i32, %arg1: memref<16xi32, #tpu.memory_space<smem>>) -> (i32, i32) {
    %c0_i32 = arith.constant 0 : i32
    %c0_i32_0 = arith.constant 0 : i32
    %c0_i32_1 = arith.constant 0 : i32
    return %c0_i32, %c0_i32_0 : i32, i32
  }
  func.func @transform_21(%arg0: i32, %arg1: memref<16xi32, #tpu.memory_space<smem>>) -> (i32, i32) {
    %c0_i32 = arith.constant 0 : i32
    %c0_i32_0 = arith.constant 0 : i32
    %c0_i32_1 = arith.constant 0 : i32
    return %c0_i32, %c0_i32_0 : i32, i32
  }
  func.func @transform_22(%arg0: i32, %arg1: memref<16xi32, #tpu.memory_space<smem>>) -> (i32, i32, i32) {
    %c0_i32 = arith.constant 0 : i32
    %c0_i32_0 = arith.constant 0 : i32
    %c0_i32_1 = arith.constant 0 : i32
    return %arg0, %c0_i32, %c0_i32_0 : i32, i32, i32
  }
}

</mosaic_0001>

<bundles_post_ra>
// kernel: clip_caption_forward.1
= control target key start
LH: loop header
LB: loop body
LE: loop exit
PB: predicated region body
PF: predicated region fallthrough
CT: control target
= control target key end

     0   :  { %s9380_s0 = inlined_call_operand.vmem [shape: s32[16], index: 0, kind: input, shape index: {}]   ;;  %s9381_s1 = inlined_call_operand.vmem [shape: f32[2,1,16], index: 1, kind: input, shape index: {}]   ;;  %s9382_s2 = inlined_call_operand.vmem [shape: f32[64,32], index: 2, kind: input, shape index: {}]   ;;  %s9383_s3 = inlined_call_operand.vmem [shape: f32[32,32], index: 3, kind: input, shape index: {}]   ;;  %s9384_s4 = inlined_call_operand.vmem [shape: f32[16,64], index: 4, kind: input, shape index: {}]   ;;  %s9385_s5 = inlined_call_operand.vmem [shape: f32[1,64], index: 5, kind: input, shape index: {}]   ;;  %s9386_s6 = inlined_call_operand.vmem [shape: f32[4,64,32], index: 6, kind: input, shape index: {}]   ;;  %s9387_s7 = inlined_call_operand.vmem [shape: f32[4,32], index: 7, kind: input, shape index: {}]   ;;  %s9388_s8 = inlined_call_operand.vmem [shape: f32[2,32], index: 8, kind: input, shape index: {}]   ;;  %s9389_s9 = inlined_call_operand.vmem [shape: f32[2,32], index: 9, kind: input, shape index: {}]   ;;  %s9390_s10 = inlined_call_operand.vmem [shape: f32[2,3,4,32,8], index: 10, kind: input, shape index: {}]   ;;  %s9391_s11 = inlined_call_operand.vmem [shape: f32[2,3,4,8], index: 11, kind: input, shape index: {}]   ;;  %s9392_s12 = inlined_call_operand.vmem [shape: f32[2,4,8,32], index: 12, kind: input, shape index: {}]   ;;  %s9393_s13 = inlined_call_operand.vmem [shape: f32[2,32], index: 13, kind: input, shape index: {}]   ;;  %s9394_s14 = inlined_call_operand.vmem [shape: f32[2,32], index: 14, kind: input, shape index: {}]   ;;  %s9395_s15 = inlined_call_operand.vmem [shape: f32[2,32], index: 15, kind: input, shape index: {}]   ;;  %s9396_s16 = inlined_call_operand.vmem [shape: f32[2,32,128], index: 16, kind: input, shape index: {}]   ;;  %s9397_s17 = inlined_call_operand.vmem [shape: f32[2,128], index: 17, kind: input, shape index: {}]   ;;  %s9398_s18 = inlined_call_operand.vmem [shape: f32[2,128,32], index: 18, kind: input, shape index: {}]   ;;  %s9399_s19 = inlined_call_operand.vmem [shape: f32[2,32], index: 19, kind: input, shape index: {}]   ;;  %s9400_s20 = inlined_call_operand.vmem [shape: f32[1,32], index: 20, kind: input, shape index: {}]   ;;  %s9401_s21 = inlined_call_operand.vmem [shape: f32[1,32], index: 21, kind: input, shape index: {}]   ;;  %s9402_s22 = inlined_call_operand.vmem [shape: f32[32,128], index: 22, kind: input, shape index: {}]   ;;  %s9403_s23 = inlined_call_operand.vmem [shape: f32[2,12,128], index: 23, kind: output, shape index: {}]  }
   0x1   :  { %9417 = sst [smem:[#allocation8_spill]] %s9380_s0 }
   0x2   :  { %9418 = sst [smem:[#allocation9_spill]] %s9381_s1  ;;  %s9432_s24 = sld [smem:[#allocation8_spill]] }
   0x3   :  { %9419 = sst [smem:[#allocation10_spill]] %s9382_s2 }
   0x4   :  { %9420 = sst [smem:[#allocation11_spill]] %s9383_s3 }
   0x5   :  { %9421 = sst [smem:[#allocation12_spill]] %s9384_s4 }
   0x6   :  { %9422 = sst [smem:[#allocation13_spill]] %s9385_s5 }
   0x7   :  { %9423 = sst [smem:[#allocation14_spill]] %s9386_s6 }
   0x8   :  { %9424 = sst [smem:[#allocation15_spill]] %s9387_s7 }
   0x9   :  { %9425 = sst [smem:[#allocation16_spill]] %s9395_s15 }
   0xa   :  { %9426 = sst [smem:[#allocation17_spill]] %s9397_s17  ;;  %s28_s17 = sshll.u32 %s9432_s24, 4  ;;  %s29_s17 = int_to_ptr.vmem [resolvable:$true] %s28_s17 }
   0xb   :  { %9427 = sst [smem:[#allocation18_spill]] %s9399_s19  ;;  %s8068_s25 = scalar_lea.vmem %s29_s17, 16 }
   0xc   :  { %9428 = sst [smem:[#allocation19_spill]] %s9400_s20  ;;  %p8069_p0 = scmp.ne.s32.totalorder %s29_s17, %s8068_s25 }
   0xd   :  { %9429 = sst [smem:[#allocation20_spill]] %s9401_s21  ;;  %p8073_p1 = scmp.lt.s32.totalorder %s29_s17, %s29_s17 }
   0xe   :  { %9430 = sst [smem:[#allocation21_spill]] %s9402_s22  ;;  %p8074_p2 = scmp.lt.s32.totalorder %s8068_s25, %s8068_s25 }
   0xf   :  { %9431 = sst [smem:[#allocation22_spill]] %s9403_s23 }
  0x10   :  { %p8075_p3 = por %p8074_p2, %p8073_p1 }
  0x12   :  { %p8076_p4 = pnand %p8075_p3, %p8069_p0 }
  0x14   :  { %8079 = shalt.err (!%p8076_p4)  }
  0x15   :  { %s8090_s5 = smov [#allocation4]  }
  0x16   :  { %31 = dma.vmem_to_smem %s29_s17, 16, %s8090_s5, [#allocation3] }
  0x17   :  { %8084 = dma.done.wait [#allocation3], 16 }
  0x18   :  { %8085 = vsyncadd [#allocation3], 4294967280 }
  0x19   :  { %33 = sfence }
  0x1a   :  { %s8218_s1 = smov 0  }
  0x1b LB: > { %9433 = sst [smem:[#allocation6_spill]] %s8088_s1  ;;  %s8224_s26 = sadd.s32 4294967295, %s8088_s1   ;;  %s8088_s1 = sphi %s8218_s1, %s39_s1  }
  0x1c   : > { %p6254_p5 = scmp.ge.s32.totalorder %s8088_s1, 1  ;;  %p617_p6 = scmp.lt.s32.totalorder %s8088_s1, 3 }
  0x1e   : > { %p618_p7 = pnand %p6254_p5, %p617_p6 }
  0x20   : > { %621 = sbr.rel (%p618_p7) target bundleno = 11089 (0x2b51), region = 108 }
  0x27   : > { %s9434_s6 = sld [smem:[#allocation12_spill]]  ;;  %p677_p8 = scmp.lt.s32.totalorder %s8224_s26, 1  ;;  %v8091_v2 = vmov 0.0|0.0   ;;  %vm8092_vm0 = vmmov 0   ;;  %v8093_v4 = vmov 0.0   ;;  %vm689_vm1 = vcmask 130048  }
  0x28   : > { %7522 = vmatprep.subr.bf16.mxu0 %v8091_v2  ;;  %6924 = vmatprep.mubr.msk.f32.mxu0 %vm8092_vm0, %v8093_v4  ;;  %s9435_s3 = sld [smem:[#allocation14_spill]]  ;;  %s9437_s7 = sld [smem:[#allocation9_spill]]  ;;  %vm773_vm2 = vcmask 523264   ;;  %vm847_vm3 = vcmask 253952   ;;  %vm1140_vm4 = vcmask 257024   ;;  %vm1138_vm5 = vcmask 261120  }
  0x29   : > { %s8248_s25 = scalar_select %p677_p8, %s8224_s26, 1  ;;  %7525 = vmatprep.subr.bf16.mxu1 %v8091_v2  ;;  %6943 = vmatprep.mubr.msk.f32.mxu1 %vm8092_vm0, %v8093_v4  ;;  %vm1576_vm6 = vcmask 1043456   ;;  %vm1454_vm7 = vcmask 64512   ;;  %vm8094_vm8 = vmmov 1   ;;  %vm1550_vm12 = vcmask 93184  }
  0x2a   : > { %s9438_s24 = sld [smem:[#allocation13_spill]]  ;;  %s9439_s20 = sld [smem:[#allocation10_spill]]  ;;  %vm8505_vm9 = vmpackc.low %vm1576_vm6, %vm8094_vm8  ;;  %vm1546_vm14 = vcmask 97280  }
  0x2b   : > { %9436 = sst [smem:[#allocation7_spill]] %s8248_s25  ;;  %vm8525_vm10 = vmpackc.low %vm1454_vm7, %vm1454_vm7  ;;  %s9451_s21 = sld [smem:[#allocation17_spill]] }
  0x2c   : > { %s9452_s19 = sld [smem:[#allocation18_spill]] }
  0x2d   : > { %v686_v0 = vld [vmem:[%s9434_s6] sm:$0xff]  ;;  %v687_v1 = vld [vmem:[%s9434_s6 + $0x8] sm:$0xff] }
  0x2e   : > { %v7523_v3 = vpack.c.bf16 %v687_v1, %v686_v0  ;;  %v764_v5 = vld [vmem:[%s9435_s3] sm:$0xff]  ;;  %v765_v6 = vld [vmem:[%s9435_s3 + $0x8] sm:$0xff]  ;;  %s679_s28 = scalar_lea.vmem %s9437_s7, %s8248_s25  ;;  %v766_v12 = vld [vmem:[%s9435_s3 + $0x10] sm:$0xff] }
  0x2f   : > { %v6259_v7 = vld [vmem:[%s9435_s3 + $0x40] sm:$0xff]  ;;  %v7526_v8 = vpack.c.bf16 %v765_v6, %v764_v5  ;;  %v6260_v9 = vld [vmem:[%s9435_s3 + $0x48] sm:$0xff]  ;;  %v767_v13 = vld [vmem:[%s9435_s3 + $0x18] sm:$0xff] }
  0x30   : > { %7524 = vmatpush3.bf16.msra.mxu0 %v7523_v3  ;;  %v7538_v10 = vpack.c.bf16 %v6260_v9, %v6259_v7  ;;  %v685_v11 = vld [vmem:[%s679_s28] sm:$0x1]  ;;  %v6261_v14 = vld [vmem:[%s9435_s3 + $0x50] sm:$0xff]  ;;  %v7529_v15 = vpack.c.bf16 %v767_v13, %v766_v12  ;;  %v6262_v16 = vld [vmem:[%s9435_s3 + $0x58] sm:$0xff] }
  0x31   : > { %7537 = vmatprep.subr.bf16.mxu0 %v8091_v2  ;;  %7527 = vmatpush3.bf16.msra.mxu1 %v7526_v8  ;;  %v7541_v17 = vpack.c.bf16 %v6262_v16, %v6261_v14  ;;  %v768_v18 = vld [vmem:[%s9435_s3 + $0x20] sm:$0xff]  ;;  %v769_v19 = vld [vmem:[%s9435_s3 + $0x28] sm:$0xff]  ;;  %v770_v23 = vld [vmem:[%s9435_s3 + $0x30] sm:$0xff] }
  0x32   : > { %7528 = vmatprep.subr.bf16.mxu1 %v8091_v2  ;;  %v6263_v20 = vld [vmem:[%s9435_s3 + $0x60] sm:$0xff]  ;;  %v7532_v21 = vpack.c.bf16 %v769_v19, %v768_v18  ;;  %v6264_v22 = vld [vmem:[%s9435_s3 + $0x68] sm:$0xff]  ;;  %v771_v24 = vld [vmem:[%s9435_s3 + $0x38] sm:$0xff] }
  0x33   : > { %6925 = vmatmul.mubr.msk.f32.vlgmr.msra.gmra.mrb[0].mxu0 %vm689_vm1, %v685_v11  ;;  %v7544_v25 = vpack.c.bf16 %v6264_v22, %v6263_v20  ;;  %v6265_v26 = vld [vmem:[%s9435_s3 + $0x70] sm:$0xff]  ;;  %v6266_v27 = vld [vmem:[%s9435_s3 + $0x78] sm:$0xff]  ;;  %v7535_v28 = vpack.c.bf16 %v771_v24, %v770_v23  ;;  %v688_v30 = vld [vmem:[%s9438_s24] sm:$0x1]  ;;  %s6286_s24 = sshll.u32 %s8224_s26, 3 }
  0x34   : > { %7539 = vmatpush3.bf16.msra.mxu0 %v7538_v10  ;;  %6962 = vmatprep.mubr.msk.f32.mxu0 %vm8092_vm0, %v8093_v4  ;;  %v7547_v29 = vpack.c.bf16 %v6266_v27, %v6265_v26  ;;  %v6268_v34 = vld [vmem:[%s9435_s3 + $0x80] sm:$0xff]  ;;  %v6269_v35 = vld [vmem:[%s9435_s3 + $0x88] sm:$0xff]  ;;  %v6270_v40 = vld [vmem:[%s9435_s3 + $0x90] sm:$0xff]  ;;  %s1097_s5 = sadd.s32 1, %s6286_s24  ;;  %s1102_s17 = sadd.s32 2, %s6286_s24 }
  0x35   : > { %7540 = vmatprep.subr.bf16.mxu0 %v8091_v2  ;;  %7530 = vmatpush3.bf16.msra.mxu1 %v7529_v15  ;;  %v6277_v36 = vld [vmem:[%s9435_s3 + $0xc0] sm:$0xff]  ;;  %v6278_v37 = vld [vmem:[%s9435_s3 + $0xc8] sm:$0xff]  ;;  %v7550_v38 = vpack.c.bf16 %v6269_v35, %v6268_v34  ;;  %v6271_v41 = vld [vmem:[%s9435_s3 + $0x98] sm:$0xff]  ;;  %s1093_s2 = sld [smem:[#allocation4 + %s6286_s24]]  ;;  %s1107_s28 = sadd.s32 3, %s6286_s24 }
  0x36   : > { %7531 = vmatprep.subr.bf16.mxu1 %v8091_v2  ;;  %v7562_v39 = vpack.c.bf16 %v6278_v37, %v6277_v36  ;;  %v6279_v42 = vld [vmem:[%s9435_s3 + $0xd0] sm:$0xff]  ;;  %v6280_v43 = vld [vmem:[%s9435_s3 + $0xd8] sm:$0xff]  ;;  %v7553_v45 = vpack.c.bf16 %v6271_v41, %v6270_v40  ;;  %v6272_v47 = vld [vmem:[%s9435_s3 + $0xa0] sm:$0xff]  ;;  %s1098_s27 = sld [smem:[#allocation4 + %s1097_s5]]  ;;  %s1112_s0 = sadd.s32 4, %s6286_s24 }
  0x37   : > { %v7565_v46 = vpack.c.bf16 %v6280_v43, %v6279_v42  ;;  %v6273_v48 = vld [vmem:[%s9435_s3 + $0xa8] sm:$0xff]  ;;  %v6281_v49 = vld [vmem:[%s9435_s3 + $0xe0] sm:$0xff]  ;;  %v6274_v53 = vld [vmem:[%s9435_s3 + $0xb0] sm:$0xff]  ;;  %s1103_s7 = sld [smem:[#allocation4 + %s1102_s17]]  ;;  %s1117_s4 = sadd.s32 5, %s6286_s24 }
  0x38   : > { %7542 = vmatpush3.bf16.msra.mxu0 %v7541_v17  ;;  %v6282_v50 = vld [vmem:[%s9435_s3 + $0xe8] sm:$0xff]  ;;  %v7556_v51 = vpack.c.bf16 %v6273_v48, %v6272_v47  ;;  %v6275_v54 = vld [vmem:[%s9435_s3 + $0xb8] sm:$0xff]  ;;  %v6283_v55 = vld [vmem:[%s9435_s3 + $0xf0] sm:$0xff]  ;;  %s1108_s29 = sld [smem:[#allocation4 + %s1107_s28]]  ;;  %s1122_s6 = sadd.s32 6, %s6286_s24 }
  0x39   : > { %7543 = vmatprep.subr.bf16.mxu0 %v8091_v2  ;;  %7533 = vmatpush3.bf16.msra.mxu1 %v7532_v21  ;;  %v7568_v52 = vpack.c.bf16 %v6282_v50, %v6281_v49  ;;  %v6284_v56 = vld [vmem:[%s9435_s3 + $0xf8] sm:$0xff]  ;;  %v7559_v57 = vpack.c.bf16 %v6275_v54, %v6274_v53  ;;  %s1113_s30 = sld [smem:[#allocation4 + %s1112_s0]]  ;;  %s1127_s1 = sadd.s32 7, %s6286_s24  ;;  %v1193_v40 = vld [vmem:[%s9390_s10 + $0x8] sm:$0xff]  ;;  %v6300_v42 = vld [vmem:[%s9390_s10 + $0x100] sm:$0xff] }
  0x3a   : > { %7534 = vmatprep.subr.bf16.mxu1 %v8091_v2  ;;  %v7571_v58 = vpack.c.bf16 %v6284_v56, %v6283_v55  ;;  %s1118_s3 = sld [smem:[#allocation4 + %s1117_s4]]  ;;  %v6301_v43 = vld [vmem:[%s9390_s10 + $0x108] sm:$0xff]  ;;  %v6302_v48 = vld [vmem:[%s9390_s10 + $0x110] sm:$0xff]  ;;  %v6303_v49 = vld [vmem:[%s9390_s10 + $0x118] sm:$0xff] }
  0x3b   : > { %s1094_s25 = scalar_lea.vmem %s9439_s20, %s1093_s2  ;;  %s1123_s15 = sld [smem:[#allocation4 + %s1122_s6]]  ;;  %v7593_v50 = vpack.c.bf16 %v6303_v49, %v6302_v48 }
  0x3c   : > { %7545 = vmatpush3.bf16.msra.mxu0 %v7544_v25  ;;  %s1099_s26 = scalar_lea.vmem %s9439_s20, %s1098_s27  ;;  %v1095_v59 = vld [vmem:[%s1094_s25] sm:$0x1]  ;;  %s1128_s2 = sld [smem:[#allocation4 + %s1127_s1]] }
  0x3d   : > { %7546 = vmatprep.subr.bf16.mxu0 %v8091_v2  ;;  %7536 = vmatpush3.bf16.msra.mxu1 %v7535_v28  ;;  %v1100_v60 = vld [vmem:[%s1099_s26] sm:$0x1]  ;;  %s1104_s28 = scalar_lea.vmem %s9439_s20, %s1103_s7  ;;  %1096 = vst.msk [vmem:[#allocation2 + $0x4] sm:$0x1] %vm847_vm3, %v1095_v59  ;;  %s9440_s17 = sld [smem:[#allocation11_spill]] }
  0x3e   : > { %7549 = vmatprep.subr.bf16.mxu1 %v8091_v2  ;;  %1101 = vst.msk [vmem:[#allocation2 + $0x5] sm:$0x1] %vm847_vm3, %v1100_v60  ;;  %v1105_v61 = vld [vmem:[%s1104_s28] sm:$0x1]  ;;  %s1109_s23 = scalar_lea.vmem %s9439_s20, %s1108_s29  ;;  %s9441_s24 = sld [smem:[#allocation15_spill]] }
  0x3f   : > { %1106 = vst.msk [vmem:[#allocation2 + $0x6] sm:$0x1] %vm847_vm3, %v1105_v61  ;;  %v1110_v62 = vld [vmem:[%s1109_s23] sm:$0x1]  ;;  %s1114_s25 = scalar_lea.vmem %s9439_s20, %s1113_s30  ;;  %s9450_s6 = sld [smem:[#allocation16_spill]] }
  0x40   : > { %7548 = vmatpush3.bf16.msra.mxu0 %v7547_v29  ;;  %1111 = vst.msk [vmem:[#allocation2 + $0x7] sm:$0x1] %vm847_vm3, %v1110_v62  ;;  %s1119_s7 = scalar_lea.vmem %s9439_s20, %s1118_s3  ;;  %v1115_v63 = vld [vmem:[%s1114_s25] sm:$0x1]  ;;  %s9453_s26 = sld [smem:[#allocation21_spill]] }
  0x41   : > { %7561 = vmatprep.subr.bf16.mxu0 %v8091_v2  ;;  %v1120_v0 = vld [vmem:[%s1119_s7] sm:$0x1]  ;;  %1116 = vst.msk [vmem:[#allocation2 + $0x8] sm:$0x1] %vm847_vm3, %v1115_v63  ;;  %s1124_s0 = scalar_lea.vmem %s9439_s20, %s1123_s15  ;;  %s9455_s27 = sld [smem:[#allocation19_spill]] }
  0x42   : > { %1121 = vst.msk [vmem:[#allocation2 + $0x9] sm:$0x1] %vm847_vm3, %v1120_v0  ;;  %v1125_v1 = vld [vmem:[%s1124_s0] sm:$0x1]  ;;  %s1129_s5 = scalar_lea.vmem %s9439_s20, %s1128_s2  ;;  %s9454_s2 = sld [smem:[#allocation7_spill]] }
  0x43   : > { %1126 = vst.msk [vmem:[#allocation2 + $0xa] sm:$0x1] %vm847_vm3, %v1125_v1  ;;  %v1135_v3 = vld [vmem:[%s9440_s17 + $0x8] sm:$0xf]  ;;  %v1134_v22 = vld [vmem:[%s9440_s17] sm:$0xff]  ;;  %s9456_s29 = sld [smem:[#allocation20_spill]] }
  0x44   : > { %v772_v6 = vld [vmem:[%s9441_s24] sm:$0x1]  ;;  %v858_v7 = vld [vmem:[%s9441_s24 + $0x1] sm:$0x1]  ;;  %v939_v14 = vld [vmem:[%s9441_s24 + $0x2] sm:$0x1] }
  0x45   : > { %v1020_v15 = vld [vmem:[%s9441_s24 + $0x3] sm:$0x1]  ;;  %v6287_v61 = vld [vmem:[%s9388_s8] ss:$0 sm:$0xff]  ;;  %s9457_s3 = sld [smem:[#allocation22_spill]] }
  0x46   : > { %v6288_v63 = vld [vmem:[%s9389_s9] ss:$0 sm:$0xff] }
  0x48   : > { %s6594_s0 = sshll.u32 %s9454_s2, 4 }
  0x4b   : > { %s684_s30 = scalar_lea.vmem %s9457_s3, %s6594_s0 }
 0x106   : > { %v759_v31 = vpop.f32.mrb[0].mxu0 }
 0x107   : > { %v760_v32 = vadd.f32 %v759_v31, %v688_v30  ;;  %v6926_v33 = vpop.f32.mrb[1].mxu0 }
 0x109   : > { %7974 = vtanh.f32 %v760_v32 }
 0x113   : > { %v7975_v44 = vpop.eup %7974 }
 0x114   : > { %6944 = vmatmul.mubr.msk.f32.vlgmr.msra.gmra.mrb[0].mxu1 %vm773_vm2, %v7975_v44  ;;  %6963 = vmatmul.mubr.msk.f32.vlgmr.msra.gmra.mrb[2].mxu0 %vm773_vm2, %v7975_v44 }
 0x115   : > { %7551 = vmatpush3.bf16.msra.mxu1 %v7550_v38  ;;  %7563 = vmatpush3.bf16.msra.mxu0 %v7562_v39  ;;  %v1192_v39 = vld [vmem:[%s9390_s10] sm:$0xff] }
 0x116   : > { %7552 = vmatprep.subr.bf16.mxu1 %v8091_v2  ;;  %7564 = vmatprep.subr.bf16.mxu0 %v8091_v2  ;;  %v7573_v41 = vpack.c.bf16 %v1193_v40, %v1192_v39  ;;  %v6332_v39 = vld [vmem:[%s9390_s10 + $0x130] sm:$0xff]  ;;  %v6333_v40 = vld [vmem:[%s9390_s10 + $0x138] sm:$0xff] }
 0x117   : > { %6981 = vmatprep.mubr.msk.f32.mxu1 %vm8092_vm0, %v8093_v4  ;;  %7000 = vmatprep.mubr.msk.f32.mxu0 %vm8092_vm0, %v8093_v4 }
 0x119   : > { %7554 = vmatpush3.bf16.msra.mxu1 %v7553_v45  ;;  %7566 = vmatpush3.bf16.msra.mxu0 %v7565_v46  ;;  %v1194_v45 = vld [vmem:[%s9390_s10 + $0x10] sm:$0xff]  ;;  %v1195_v46 = vld [vmem:[%s9390_s10 + $0x18] sm:$0xff] }
 0x11a   : > { %7555 = vmatprep.subr.bf16.mxu1 %v8091_v2  ;;  %7567 = vmatprep.subr.bf16.mxu0 %v8091_v2  ;;  %v7577_v47 = vpack.c.bf16 %v1195_v46, %v1194_v45 }
 0x11d   : > { %7557 = vmatpush3.bf16.msra.mxu1 %v7556_v51  ;;  %7569 = vmatpush3.bf16.msra.mxu0 %v7568_v52  ;;  %v6292_v51 = vld [vmem:[%s9390_s10 + $0x80] sm:$0xff]  ;;  %v6293_v52 = vld [vmem:[%s9390_s10 + $0x88] sm:$0xff] }
 0x11e   : > { %7558 = vmatprep.subr.bf16.mxu1 %v8091_v2  ;;  %7570 = vmatprep.subr.bf16.mxu0 %v8091_v2  ;;  %v1130_v2 = vld [vmem:[%s1129_s5] sm:$0x1]  ;;  %v7581_v53 = vpack.c.bf16 %v6293_v52, %v6292_v51 }
 0x11f   : > { %1131 = vst.msk [vmem:[#allocation2 + $0xb] sm:$0x1] %vm847_vm3, %v1130_v2 }
 0x121   : > { %7560 = vmatpush3.bf16.msra.mxu1 %v7559_v57  ;;  %7572 = vmatpush3.bf16.msra.mxu0 %v7571_v58 }
 0x122   : > { %7574 = vmatprep.subr.bf16.mxu0 %v7573_v41 }
 0x124   : > { %6982 = vmatmul.mubr.msk.f32.vlgmr.msra.gmra.mrb[2].mxu1 %vm773_vm2, %v7975_v44  ;;  %7001 = vmatmul.mubr.msk.f32.vlgmr.msra.gmra.mrb[4].mxu0 %vm773_vm2, %v7975_v44  ;;  %v7589_v44 = vpack.c.bf16 %v6301_v43, %v6300_v42  ;;  %v1142_v42 = vlaneseq }
 0x125   : > { %7576 = vmatpush3.bf16.msra.mxu0 %v7573_v41  ;;  %v7629_v41 = vpack.c.bf16 %v6333_v40, %v6332_v39 }
 0x126   : > { %v1133_v4 = vld [vmem:[#allocation2 + $0x8] sm:$0xf]  ;;  %7590 = vmatprep.subr.bf16.mxu1 %v7589_v44  ;;  %7578 = vmatprep.subr.bf16.mxu0 %v7577_v47  ;;  %v1143_v43 = vshrl.u32 %v1142_v42, 7  ;;  %v1146_v45 = vand.u32 127, %v1142_v42 }
 0x127   : > { %v1137_v5 = vadd.f32 %v1135_v3, %v1133_v4  ;;  %7592 = vmatpush3.bf16.msra.mxu1 %v7589_v44  ;;  %v6294_v4 = vld [vmem:[%s9390_s10 + $0x90] sm:$0xff] }
 0x128   : > { %7594 = vmatprep.subr.bf16.mxu1 %v7593_v50  ;;  %v1144_v44 = vadd.s32 8, %v1143_v43  ;;  %vm8564_vm13 = vcmp.le.s32.totalorder %v1146_v45, %v1143_v43 }
 0x129   : > { %1141 = vst.msk [vmem:[#allocation2 + $0x8] sm:$0xf] %vm1140_vm4, %v1137_v5  ;;  %7580 = vmatpush3.bf16.msra.mxu0 %v7577_v47  ;;  %v6295_v5 = vld [vmem:[%s9390_s10 + $0x98] sm:$0xff] }
 0x12a   : > { %7582 = vmatprep.subr.bf16.mxu0 %v7581_v53  ;;  %vm8560_vm11 = vcmp.le.s32.totalorder %v1146_v45, %v1144_v44 }
 0x12b   : > { %7596 = vmatpush3.bf16.msra.mxu1 %v7593_v50 }
 0x130   : > { %v8431_v26 = vld [vmem:[#allocation2 + $0x8] sm:$0xf] }
 0x131   : > { %v1156_v28 = vsel %vm1140_vm4, %v8431_v26, 0.0 }
 0x1e7   : > { %v843_v8 = vpop.f32.mrb[0].mxu1  ;;  %v925_v9 = vpop.f32.mrb[2].mxu0 }
 0x1e8   : > { %v844_v10 = vadd.f32 %v843_v8, %v772_v6  ;;  %v926_v11 = vadd.f32 %v925_v9, %v858_v7  ;;  %v6945_v12 = vpop.f32.mrb[1].mxu1  ;;  %v6964_v13 = vpop.f32.mrb[3].mxu0  ;;  %v7585_v8 = vpack.c.bf16 %v6295_v5, %v6294_v4  ;;  %v6305_v9 = vld [vmem:[%s9391_s11 + $0x8] ss:$0 sm:$0xff] }
 0x1ea   : > { %848 = vst.msk [vmem:[#allocation2] sm:$0x1] %vm847_vm3, %v844_v10  ;;  %929 = vst.msk [vmem:[#allocation2 + $0x1] sm:$0x1] %vm847_vm3, %v926_v11  ;;  %v6289_v10 = vld [vmem:[%s9391_s11] ss:$0 sm:$0xff] }
 0x1f7   : > { %v1006_v16 = vpop.f32.mrb[2].mxu1  ;;  %v1087_v17 = vpop.f32.mrb[4].mxu0 }
 0x1f8   : > { %v1007_v18 = vadd.f32 %v1006_v16, %v939_v14  ;;  %v1088_v19 = vadd.f32 %v1087_v17, %v1020_v15  ;;  %v6983_v20 = vpop.f32.mrb[3].mxu1  ;;  %v7002_v21 = vpop.f32.mrb[5].mxu0 }
 0x1f9   : > { %v6297_v20 = vld [vmem:[%s9391_s11 + $0x4] ss:$0 sm:$0xff] }
 0x1fa   : > { %1010 = vst.msk [vmem:[#allocation2 + $0x2] sm:$0x1] %vm847_vm3, %v1007_v18  ;;  %1091 = vst.msk [vmem:[#allocation2 + $0x3] sm:$0x1] %vm847_vm3, %v1088_v19 }
 0x201   : > { %v1132_v23 = vld [vmem:[#allocation2] sm:$0xff] }
 0x202   : > { %v1136_v24 = vadd.f32 %v1134_v22, %v1132_v23 }
 0x204   : > { %1139 = vst.msk [vmem:[#allocation2] sm:$0xff] %vm1138_vm5, %v1136_v24  ;;  %v6315_v24 = vld [vmem:[%s9390_s10 + $0x20] sm:$0xff] }
 0x20b   : > { %v8429_v25 = vld [vmem:[#allocation2] sm:$0xff] }
 0x20c   : > { %v1153_v27 = vsel %vm1138_vm5, %v8429_v25, 0.0 }
 0x20d   : > { %1154 = vadd.xlane.f32.xlu0 %v1153_v27  ;;  %v6316_v27 = vld [vmem:[%s9390_s10 + $0x28] sm:$0xff] }
 0x211   : > { %1157 = vadd.xlane.f32.xlu0 %v1156_v28 }
 0x29a   : > { %v1155_v29 = vpop.xlane.xlu0 %1154 }
 0x29b   : > { %v1160_v30 = vmul.f32 0.03125, %v1155_v29 }
 0x29d   : > { %v1162_v31 = vsub.f32 %v8429_v25, %v1160_v30 }
 0x29e   : > { %v1158_v32 = vpop.xlane.xlu0 %1157 }
 0x29f   : > { %v1161_v33 = vmul.f32 0.03125, %v1158_v32  ;;  %v1164_v34 = vmul.f32 %v1162_v31, %v1162_v31  ;;  %v6317_v32 = vld [vmem:[%s9390_s10 + $0x30] sm:$0xff] }
 0x2a1   : > { %v1163_v35 = vsub.f32 %v8431_v26, %v1161_v33  ;;  %v1166_v36 = vsel %vm1138_vm5, %v1164_v34, 0.0  ;;  %v6318_v33 = vld [vmem:[%s9390_s10 + $0x38] sm:$0xff] }
 0x2a2   : > { %1167 = vadd.xlane.f32.xlu1 %v1166_v36  ;;  %v6330_v36 = vld [vmem:[%s9390_s10 + $0x120] sm:$0xff] }
 0x2a3   : > { %v1165_v37 = vmul.f32 %v1163_v35, %v1163_v35 }
 0x2a5   : > { %v1169_v38 = vsel %vm1140_vm4, %v1165_v37, 0.0  ;;  %v6331_v37 = vld [vmem:[%s9390_s10 + $0x128] sm:$0xff] }
 0x2a6   : > { %1170 = vadd.xlane.f32.xlu1 %v1169_v38  ;;  %v7625_v38 = vpack.c.bf16 %v6331_v37, %v6330_v36 }
 0x32f   : > { %v1168_v54 = vpop.xlane.xlu1 %1167 }
 0x330   : > { %v1172_v55 = vmul.f32 0.03125, %v1168_v54 }
 0x332   : > { %v1174_v56 = vadd.f32 1e-05, %v1172_v55 }
 0x333   : > { %v1171_v57 = vpop.xlane.xlu1 %1170 }
 0x334   : > { %7976 = vrsqrt.f32 %v1174_v56  ;;  %v1173_v58 = vmul.f32 0.03125, %v1171_v57  ;;  %v6319_v56 = vld [vmem:[%s9391_s11 + $0x1] ss:$0 sm:$0xff] }
 0x336   : > { %v1175_v59 = vadd.f32 1e-05, %v1173_v58 }
 0x338   : > { %7978 = vrsqrt.f32 %v1175_v59 }
 0x33e   : > { %v7977_v60 = vpop.eup %7976 }
 0x33f   : > { %v1178_v62 = vmul.f32 %v7977_v60, %v1162_v31  ;;  %v7609_v31 = vpack.c.bf16 %v6316_v27, %v6315_v24  ;;  %v6335_v60 = vld [vmem:[%s9391_s11 + $0x9] ss:$0 sm:$0xff] }
 0x341   : > { %v1184_v0 = vmul.f32 %v6287_v61, %v1178_v62 }
 0x342   : > { %v7979_v1 = vpop.eup %7978 }
 0x343   : > { %v8477_v2 = vadd.f32 %v6288_v63, %v1184_v0  ;;  %v1179_v3 = vmul.f32 %v7979_v1, %v1163_v35  ;;  %v7613_v35 = vpack.c.bf16 %v6318_v33, %v6317_v32  ;;  %v6327_v33 = vld [vmem:[%s9391_s11 + $0x5] ss:$0 sm:$0xff] }
 0x345   : > { %v1185_v6 = vmul.f32 %v6287_v61, %v1179_v3  ;;  %7011 = vmatprep.mubr.msk.f32.mxu0 %vm1138_vm5, %v8477_v2  ;;  %7033 = vmatprep.mubr.msk.f32.mxu1 %vm1138_vm5, %v8477_v2 }
 0x347   : > { %v8489_v7 = vadd.f32 %v6288_v63, %v1185_v6 }
 0x349   : > { %7012 = vmatmul.mubr.msk.f32.vlgmr.msra.gmra.mrb[6].mxu0 %vm1138_vm5, %v8489_v7  ;;  %7034 = vmatmul.mubr.msk.f32.vlgmr.msra.gmra.mrb[4].mxu1 %vm1138_vm5, %v8489_v7 }
 0x34a   : > { %7584 = vmatpush3.bf16.msra.mxu0 %v7581_v53  ;;  %7022 = vmatprep.mubr.msk.f32.mxu0 %vm1138_vm5, %v8477_v2 }
 0x34b   : > { %7586 = vmatprep.subr.bf16.mxu0 %v7585_v8 }
 0x34e   : > { %7588 = vmatpush3.bf16.msra.mxu0 %v7585_v8 }
 0x351   : > { %7023 = vmatmul.mubr.msk.f32.vlgmr.msra.gmra.mrb[8].mxu0 %vm1138_vm5, %v8489_v7 }
 0x41c   : > { %v7013_v11 = vpop.f32.mrb[6].mxu0  ;;  %v7035_v12 = vpop.f32.mrb[4].mxu1 }
 0x41d   : > { %v1451_v13 = vadd.f32 %v7035_v12, %v6305_v9  ;;  %v1273_v14 = vpop.f32.mrb[7].mxu0  ;;  %v1445_v15 = vpop.f32.mrb[5].mxu1  ;;  %v1279_v34 = vadd.f32 %v7013_v11, %v6289_v10 }
 0x41e   : > { %v1274_v16 = vadd.f32 %v6289_v10, %v1273_v14  ;;  %v1446_v17 = vadd.f32 %v6305_v9, %v1445_v15  ;;  %v6322_v14 = vld [vmem:[%s9390_s10 + $0xa0] sm:$0xff]  ;;  %v6323_v15 = vld [vmem:[%s9390_s10 + $0xa8] sm:$0xff] }
 0x420   : > { %v7603_v19 = vpack.c.bf16 %v1451_v13, %v1446_v17  ;;  %7040 = vmatprep.mubr.msk.f32.mxu0 %vm1454_vm7, %v1274_v16  ;;  %v7617_v16 = vpack.c.bf16 %v6323_v15, %v6322_v14  ;;  %v6368_v14 = vld [vmem:[%s9390_s10 + $0x158] sm:$0xff] }
 0x422   : > { %7605 = vmatprep.subr.msk.bf16.mxu1 %vm8505_vm9, %v7603_v19 }
 0x423   : > { %7608 = vmatpush3.bf16.msk.msra.mxu1 %vm8505_vm9, %v7603_v19 }
 0x424   : > { %v7024_v21 = vpop.f32.mrb[8].mxu0  ;;  %7618 = vmatprep.subr.bf16.mxu1 %v7617_v16 }
 0x425   : > { %v1365_v22 = vadd.f32 %v7024_v21, %v6297_v20  ;;  %v1359_v23 = vpop.f32.mrb[9].mxu0  ;;  %v6324_v21 = vld [vmem:[%s9390_s10 + $0xb0] sm:$0xff] }
 0x426   : > { %v1360_v28 = vadd.f32 %v6297_v20, %v1359_v23 }
 0x428   : > { %v7597_v30 = vpack.c.bf16 %v1365_v22, %v1360_v28  ;;  %v6325_v22 = vld [vmem:[%s9390_s10 + $0xb8] sm:$0xff] }
 0x429   : > { %v7621_v28 = vpack.c.bf16 %v6325_v22, %v6324_v21 }
 0x42a   : > { %7599 = vmatprep.subr.msk.bf16.mxu0 %vm8525_vm10, %v7597_v30 }
 0x42b   : > { %7602 = vmatpush3.bf16.xpose.msk.msra.mxu0 %vm8525_vm10, %v7597_v30 }
 0x42c   : > { %7610 = vmatprep.subr.bf16.mxu0 %v7609_v31 }
 0x432   : > { %7041 = vmatmul.mubr.msk.f32.vlgmr.msra.gmra.mrb[10].mxu0 %vm1454_vm7, %v1279_v34 }
 0x433   : > { %7612 = vmatpush3.bf16.msra.mxu0 %v7609_v31  ;;  %7058 = vmatprep.mubr.msk.f32.mxu0 %vm1138_vm5, %v8477_v2 }
 0x434   : > { %7614 = vmatprep.subr.bf16.mxu0 %v7613_v35 }
 0x437   : > { %7616 = vmatpush3.bf16.msra.mxu0 %v7613_v35 }
 0x438   : > { %7626 = vmatprep.subr.bf16.mxu0 %v7625_v38 }
 0x43a   : > { %7059 = vmatmul.mubr.msk.f32.vlgmr.msra.gmra.mrb[12].mxu0 %vm1138_vm5, %v8489_v7 }
 0x43b   : > { %7628 = vmatpush3.bf16.msra.mxu0 %v7625_v38  ;;  %7080 = vmatprep.mubr.msk.f32.mxu0 %vm1138_vm5, %v8477_v2 }
 0x43c   : > { %7630 = vmatprep.subr.bf16.mxu0 %v7629_v41 }
 0x43f   : > { %7632 = vmatpush3.bf16.msra.mxu0 %v7629_v41 }
 0x442   : > { %7081 = vmatmul.mubr.msk.f32.vlgmr.msra.gmra.mrb[14].mxu0 %vm1138_vm5, %v8489_v7 }
 0x505   : > { %v7042_v46 = vpop.f32.mrb[10].mxu0 }
 0x506   : > { %v1543_v48 = vmul.f32 0.35355338, %v7042_v46  ;;  %v1533_v49 = vpop.f32.mrb[11].mxu0 }
 0x507   : > { %v1542_v51 = vmul.f32 0.35355338, %v1533_v49 }
 0x508   : > { %v1545_v52 = vsel %vm8560_vm11, %v1543_v48, -1e+09 }
 0x509   : > { %v1551_v53 = vsel %vm1550_vm12, %v1545_v52, -inf  ;;  %v1544_v54 = vsel %vm8564_vm13, %v1542_v51, -1e+09 }
 0x50a   : > { %1552 = vmax.xlane.f32.xlu1 %v1551_v53  ;;  %v1547_v55 = vsel %vm1546_vm14, %v1544_v54, -inf }
 0x50b   : > { %1548 = vmax.xlane.f32.xlu0 %v1547_v55 }
 0x50d   : > { %v7060_v57 = vpop.f32.mrb[12].mxu0 }
 0x50e   : > { %v1738_v58 = vadd.f32 %v7060_v57, %v6319_v56  ;;  %v1732_v59 = vpop.f32.mrb[13].mxu0 }
 0x50f   : > { %v1733_v30 = vadd.f32 %v6319_v56, %v1732_v59  ;;  %v6350_v59 = vld [vmem:[%s9390_s10 + $0x40] sm:$0xff] }
 0x515   : > { %v7082_v61 = vpop.f32.mrb[14].mxu0 }
 0x516   : > { %v1908_v62 = vadd.f32 %v7082_v61, %v6335_v60  ;;  %v1902_v63 = vpop.f32.mrb[15].mxu0 }
 0x517   : > { %v1903_v0 = vadd.f32 %v6335_v60, %v1902_v63  ;;  %v6351_v60 = vld [vmem:[%s9390_s10 + $0x48] sm:$0xff] }
 0x518   : > { %v7645_v61 = vpack.c.bf16 %v6351_v60, %v6350_v59 }
 0x519   : > { %v7639_v1 = vpack.c.bf16 %v1908_v62, %v1903_v0  ;;  %v6345_v62 = vld [vmem:[%s9392_s12 + $0x8] sm:$0xff] }
 0x51b   : > { %7641 = vmatprep.subr.msk.bf16.mxu0 %vm8505_vm9, %v7639_v1 }
 0x51c   : > { %7644 = vmatpush3.bf16.msk.msra.mxu0 %vm8505_vm9, %v7639_v1 }
 0x51d   : > { %7646 = vmatprep.subr.bf16.mxu0 %v7645_v61 }
 0x597   : > { %v1553_v3 = vpop.xlane.xlu1 %1552 }
 0x598   : > { %v1555_v4 = vsub.f32 %v1545_v52, %v1553_v3  ;;  %v1549_v5 = vpop.xlane.xlu0 %1548  ;;  %v6352_v3 = vld [vmem:[%s9390_s10 + $0x50] sm:$0xff] }
 0x599   : > { %v1554_v6 = vsub.f32 %v1544_v54, %v1549_v5 }
 0x59a   : > { %v1558_v8 = vmul.f32 1.442695, %v1555_v4  ;;  %v6353_v4 = vld [vmem:[%s9390_s10 + $0x58] sm:$0xff] }
 0x59b   : > { %v1556_v9 = vmul.f32 1.442695, %v1554_v6 }
 0x59c   : > { %7980 = vpow2.f32 %v1558_v8 }
 0x59d   : > { %7982 = vpow2.f32 %v1556_v9  ;;  %v7649_v9 = vpack.c.bf16 %v6353_v4, %v6352_v3  ;;  %v6383_v3 = vld [vmem:[%s9390_s10 + $0x60] sm:$0xff]  ;;  %v6384_v4 = vld [vmem:[%s9390_s10 + $0x68] sm:$0xff] }
 0x5a6   : > { %v7981_v10 = vpop.eup %7980 }
 0x5a7   : > { %v7983_v11 = vpop.eup %7982  ;;  %v1563_v12 = vsel %vm1550_vm12, %v7981_v10, 0.0 }
 0x5a8   : > { %1564 = vadd.xlane.f32.xlu1 %v1563_v12  ;;  %v1560_v13 = vsel %vm1546_vm14, %v7983_v11, 0.0 }
 0x5a9   : > { %1561 = vadd.xlane.f32.xlu0 %v1560_v13  ;;  %v6367_v13 = vld [vmem:[%s9390_s10 + $0x150] sm:$0xff] }
 0x5aa   : > { %v7665_v15 = vpack.c.bf16 %v6368_v14, %v6367_v13 }
 0x635   : > { %v1565_v17 = vpop.xlane.xlu1 %1564 }
 0x636   : > { %7984 = vrcp.f32 %v1565_v17  ;;  %v1562_v19 = vpop.xlane.xlu0 %1561  ;;  %v6357_v17 = vld [vmem:[%s9390_s10 + $0xc0] sm:$0xff] }
 0x637   : > { %7986 = vrcp.f32 %v1562_v19  ;;  %v6358_v19 = vld [vmem:[%s9390_s10 + $0xc8] sm:$0xff] }
 0x638   : > { %v7653_v22 = vpack.c.bf16 %v6358_v19, %v6357_v17  ;;  %v6398_v17 = vld [vmem:[%s9390_s10 + $0x160] sm:$0xff]  ;;  %v6399_v19 = vld [vmem:[%s9390_s10 + $0x168] sm:$0xff] }
 0x640   : > { %v7985_v20 = vpop.eup %7984 }
 0x641   : > { %v7987_v23 = vpop.eup %7986  ;;  %v1569_v27 = vmul.f32 %v7985_v20, %v7981_v10  ;;  %v6365_v10 = vld [vmem:[%s9390_s10 + $0x140] sm:$0xff] }
 0x642   : > { %v1567_v24 = vmul.f32 %v7987_v23, %v7983_v11  ;;  %v6366_v11 = vld [vmem:[%s9390_s10 + $0x148] sm:$0xff]  ;;  %v6354_v23 = vld [vmem:[%s9391_s11 + $0x2] ss:$0 sm:$0xff] }
 0x643   : > { %v7661_v12 = vpack.c.bf16 %v6366_v11, %v6365_v10  ;;  %v6385_v11 = vld [vmem:[%s9390_s10 + $0x70] sm:$0xff] }
 0x644   : > { %7047 = vmatprep.mubr.msk.f32.mxu1 %vm1546_vm14, %v1567_v24  ;;  %v6359_v24 = vld [vmem:[%s9390_s10 + $0xd0] sm:$0xff] }
 0x645   : > { %7048 = vmatmul.mubr.msk.f32.vlgmr.msra.gmra.mrb[6].mxu1 %vm1546_vm14, %v1569_v27  ;;  %v6360_v27 = vld [vmem:[%s9390_s10 + $0xd8] sm:$0xff] }
 0x646   : > { %7620 = vmatpush3.bf16.msra.mxu1 %v7617_v16  ;;  %7069 = vmatprep.mubr.msk.f32.mxu1 %vm1138_vm5, %v8477_v2  ;;  %v1655_v16 = vld [vmem:[%s9392_s12] sm:$0xff] }
 0x647   : > { %7622 = vmatprep.subr.bf16.mxu1 %v7621_v28 }
 0x64a   : > { %7624 = vmatpush3.bf16.msra.mxu1 %v7621_v28 }
 0x64d   : > { %7070 = vmatmul.mubr.msk.f32.vlgmr.msra.gmra.mrb[8].mxu1 %vm1138_vm5, %v8489_v7 }
 0x64e   : > { %7087 = vmatprep.mubr.msk.f32.mxu1 %vm1454_vm7, %v1733_v30 }
 0x718   : > { %v8605_v31 = vpop.f32.mrb[6].mxu1 }
 0x719   : > { %v8607_v32 = vpop.f32.mrb[7].mxu1 }
 0x720   : > { %v7071_v34 = vpop.f32.mrb[8].mxu1 }
 0x721   : > { %v1823_v35 = vadd.f32 %v7071_v34, %v6327_v33  ;;  %v1817_v36 = vpop.f32.mrb[9].mxu1  ;;  %v7657_v34 = vpack.c.bf16 %v6360_v27, %v6359_v24  ;;  %v6390_v24 = vld [vmem:[%s9390_s10 + $0xe0] sm:$0xff]  ;;  %v6391_v27 = vld [vmem:[%s9390_s10 + $0xe8] sm:$0xff] }
 0x722   : > { %v1818_v37 = vadd.f32 %v6327_v33, %v1817_v36 }
 0x724   : > { %v7633_v38 = vpack.c.bf16 %v1823_v35, %v1818_v37 }
 0x726   : > { %7635 = vmatprep.subr.msk.bf16.mxu1 %vm8525_vm10, %v7633_v38 }
 0x727   : > { %7638 = vmatpush3.bf16.xpose.msk.msra.mxu1 %vm8525_vm10, %v7633_v38 }
 0x728   : > { %7097 = vmatprep.subr.mxu1 %v6345_v62 }
 0x72e   : > { %7088 = vmatmul.mubr.msk.f32.vlgmr.msra.gmra.mrb[10].mxu1 %vm1454_vm7, %v1738_v58 }
 0x72f   : > { %7098 = vmatpush3.msra.mxu1 %v6345_v62 }
 0x730   : > { %7102 = vmatprep.subr.mxu1 %v1655_v16 }
 0x801   : > { %v7089_v39 = vpop.f32.mrb[10].mxu1 }
 0x802   : > { %v1999_v40 = vmul.f32 0.35355338, %v7089_v39  ;;  %v1989_v41 = vpop.f32.mrb[11].mxu1 }
 0x803   : > { %v1998_v42 = vmul.f32 0.35355338, %v1989_v41 }
 0x804   : > { %v2001_v43 = vsel %vm8560_vm11, %v1999_v40, -1e+09 }
 0x805   : > { %v2005_v44 = vsel %vm1550_vm12, %v2001_v43, -inf  ;;  %v2000_v45 = vsel %vm8564_vm13, %v1998_v42, -1e+09 }
 0x806   : > { %2006 = vmax.xlane.f32.xlu1 %v2005_v44  ;;  %v2002_v46 = vsel %vm1546_vm14, %v2000_v45, -inf }
 0x807   : > { %2003 = vmax.xlane.f32.xlu0 %v2002_v46 }
 0x893   : > { %v2007_v48 = vpop.xlane.xlu1 %2006 }
 0x894   : > { %v2009_v49 = vsub.f32 %v2001_v43, %v2007_v48  ;;  %v2004_v51 = vpop.xlane.xlu0 %2003 }
 0x895   : > { %v2008_v52 = vsub.f32 %v2000_v45, %v2004_v51 }
 0x896   : > { %v2012_v53 = vmul.f32 1.442695, %v2009_v49 }
 0x897   : > { %v2010_v54 = vmul.f32 1.442695, %v2008_v52 }
 0x898   : > { %7988 = vpow2.f32 %v2012_v53 }
 0x899   : > { %7990 = vpow2.f32 %v2010_v54 }
 0x8a2   : > { %v7989_v55 = vpop.eup %7988 }
 0x8a3   : > { %v7991_v56 = vpop.eup %7990  ;;  %v2017_v57 = vsel %vm1550_vm12, %v7989_v55, 0.0 }
 0x8a4   : > { %2018 = vadd.xlane.f32.xlu1 %v2017_v57  ;;  %v2014_v58 = vsel %vm1546_vm14, %v7991_v56, 0.0 }
 0x8a5   : > { %2015 = vadd.xlane.f32.xlu0 %v2014_v58 }
 0x931   : > { %v2019_v63 = vpop.xlane.xlu1 %2018 }
 0x932   : > { %7992 = vrcp.f32 %v2019_v63  ;;  %v2016_v0 = vpop.xlane.xlu0 %2015 }
 0x933   : > { %7994 = vrcp.f32 %v2016_v0 }
 0x93c   : > { %v7993_v1 = vpop.eup %7992 }
 0x93d   : > { %v7995_v5 = vpop.eup %7994  ;;  %v2023_v8 = vmul.f32 %v7993_v1, %v7989_v55 }
 0x93e   : > { %v2021_v6 = vmul.f32 %v7995_v5, %v7991_v56  ;;  %v7681_v5 = vpack.c.bf16 %v6384_v4, %v6383_v3 }
 0x940   : > { %7094 = vmatprep.mubr.msk.f32.mxu0 %vm1546_vm14, %v2021_v6  ;;  %v6380_v6 = vld [vmem:[%s9392_s12 + $0x10] sm:$0xff] }
 0x941   : > { %7095 = vmatmul.mubr.msk.f32.vlgmr.msra.gmra.mrb[16].mxu0 %vm1546_vm14, %v2023_v8 }
 0x942   : > { %7648 = vmatpush3.bf16.msra.mxu0 %v7645_v61  ;;  %7115 = vmatprep.mubr.msk.f32.mxu0 %vm1138_vm5, %v8477_v2 }
 0x943   : > { %7650 = vmatprep.subr.bf16.mxu0 %v7649_v9 }
 0x946   : > { %7652 = vmatpush3.bf16.msra.mxu0 %v7649_v9 }
 0x947   : > { %7662 = vmatprep.subr.bf16.mxu0 %v7661_v12 }
 0x949   : > { %7116 = vmatmul.mubr.msk.f32.vlgmr.msra.gmra.mrb[18].mxu0 %vm1138_vm5, %v8489_v7 }
 0x94a   : > { %7664 = vmatpush3.bf16.msra.mxu0 %v7661_v12  ;;  %7137 = vmatprep.mubr.msk.f32.mxu0 %vm1138_vm5, %v8477_v2  ;;  %v6386_v12 = vld [vmem:[%s9390_s10 + $0x78] sm:$0xff] }
 0x94b   : > { %7666 = vmatprep.subr.bf16.mxu0 %v7665_v15 }
 0x94e   : > { %7668 = vmatpush3.bf16.msra.mxu0 %v7665_v15 }
 0x951   : > { %7138 = vmatmul.mubr.msk.f32.vlgmr.msra.gmra.mrb[20].mxu0 %vm1138_vm5, %v8489_v7 }
 0xa14   : > { %v7096_v20 = vpop.f32.mrb[16].mxu0 }
 0xa15   : > { %v2099_v21 = vpop.f32.mrb[17].mxu0 }
 0xa16   : > { %7099 = vmatprep.mubr.msk.f32.mxu1 %vm1454_vm7, %v2099_v21  ;;  %v6400_v21 = vld [vmem:[%s9390_s10 + $0x170] sm:$0xff] }
 0xa17   : > { %7100 = vmatmul.mubr.msk.f32.vlgmr.msra.gmra.mrb[12].mxu1 %vm1454_vm7, %v7096_v20  ;;  %v7697_v20 = vpack.c.bf16 %v6399_v19, %v6398_v17  ;;  %v6416_v19 = vld [vmem:[%s9393_s13] ss:$0 sm:$0xff] }
 0xa18   : > { %7103 = vmatpush3.msra.mxu1 %v1655_v16  ;;  %7104 = vmatprep.mubr.msk.f32.mxu1 %vm1454_vm7, %v8607_v32  ;;  %v6370_v32 = vld [vmem:[%s9391_s11 + $0xa] ss:$0 sm:$0xff]  ;;  %v7685_v16 = vpack.c.bf16 %v6386_v12, %v6385_v11 }
 0xa19   : > { %7654 = vmatprep.subr.bf16.mxu1 %v7653_v22 }
 0xa1c   : > { %v7117_v28 = vpop.f32.mrb[18].mxu0 }
 0xa1d   : > { %v2354_v30 = vadd.f32 %v7117_v28, %v6354_v23  ;;  %v2348_v33 = vpop.f32.mrb[19].mxu0  ;;  %v7689_v28 = vpack.c.bf16 %v6391_v27, %v6390_v24 }
 0xa1e   : > { %v2349_v38 = vadd.f32 %v6354_v23, %v2348_v33  ;;  %v6393_v33 = vld [vmem:[%s9390_s10 + $0xf8] sm:$0xff] }
 0xa1f   : > { %7105 = vmatmul.mubr.msk.f32.vlgmr.msra.gmra.mrb[12].mxu1 %vm1454_vm7, %v8605_v31  ;;  %v6362_v31 = vld [vmem:[%s9391_s11 + $0x6] ss:$0 sm:$0xff] }
 0xa20   : > { %7656 = vmatpush3.bf16.msra.mxu1 %v7653_v22  ;;  %7126 = vmatprep.mubr.msk.f32.mxu1 %vm1138_vm5, %v8477_v2  ;;  %v6401_v22 = vld [vmem:[%s9390_s10 + $0x178] sm:$0xff] }
 0xa21   : > { %7658 = vmatprep.subr.bf16.mxu1 %v7657_v34  ;;  %v7701_v23 = vpack.c.bf16 %v6401_v22, %v6400_v21 }
 0xa24   : > { %7660 = vmatpush3.bf16.msra.mxu1 %v7657_v34  ;;  %v7139_v35 = vpop.f32.mrb[20].mxu0 }
 0xa25   : > { %v2524_v36 = vadd.f32 %v7139_v35, %v6370_v32  ;;  %v2518_v37 = vpop.f32.mrb[21].mxu0 }
 0xa26   : > { %v2519_v39 = vadd.f32 %v6370_v32, %v2518_v37 }
 0xa27   : > { %7127 = vmatmul.mubr.msk.f32.vlgmr.msra.gmra.mrb[14].mxu1 %vm1138_vm5, %v8489_v7 }
 0xa28   : > { %v7675_v40 = vpack.c.bf16 %v2524_v36, %v2519_v39  ;;  %7144 = vmatprep.mubr.msk.f32.mxu1 %vm1454_vm7, %v2349_v38  ;;  %v6387_v36 = vld [vmem:[%s9391_s11 + $0x3] ss:$0 sm:$0xff] }
 0xa2a   : > { %7677 = vmatprep.subr.msk.bf16.mxu0 %vm8505_vm9, %v7675_v40 }
 0xa2b   : > { %7680 = vmatpush3.bf16.msk.msra.mxu0 %vm8505_vm9, %v7675_v40 }
 0xa2c   : > { %7682 = vmatprep.subr.bf16.mxu0 %v7681_v5 }
 0xafa   : > { %v7128_v41 = vpop.f32.mrb[14].mxu1 }
 0xafb   : > { %v2439_v42 = vadd.f32 %v7128_v41, %v6362_v31  ;;  %v2433_v43 = vpop.f32.mrb[15].mxu1 }
 0xafc   : > { %v2434_v44 = vadd.f32 %v6362_v31, %v2433_v43  ;;  %v6403_v31 = vld [vmem:[%s9391_s11 + $0xb] ss:$0 sm:$0xff] }
 0xafe   : > { %v7669_v45 = vpack.c.bf16 %v2439_v42, %v2434_v44 }
 0xb00   : > { %7671 = vmatprep.subr.msk.bf16.mxu1 %vm8525_vm10, %v7669_v45 }
 0xb01   : > { %7674 = vmatpush3.bf16.xpose.msk.msra.mxu1 %vm8525_vm10, %v7669_v45 }
 0xb02   : > { %7154 = vmatprep.subr.mxu1 %v6380_v6 }
 0xb08   : > { %7145 = vmatmul.mubr.msk.f32.vlgmr.msra.gmra.mrb[16].mxu1 %vm1454_vm7, %v2354_v30  ;;  %v6392_v30 = vld [vmem:[%s9390_s10 + $0xf0] sm:$0xff] }
 0xb09   : > { %7155 = vmatpush3.msra.mxu1 %v6380_v6  ;;  %v7693_v35 = vpack.c.bf16 %v6393_v33, %v6392_v30 }
 0xb0a   : > { %7690 = vmatprep.subr.bf16.mxu1 %v7689_v28 }
 0xbdb   : > { %v7146_v46 = vpop.f32.mrb[16].mxu1 }
 0xbdc   : > { %v2615_v48 = vmul.f32 0.35355338, %v7146_v46  ;;  %v2605_v49 = vpop.f32.mrb[17].mxu1 }
 0xbdd   : > { %v2614_v51 = vmul.f32 0.35355338, %v2605_v49 }
 0xbde   : > { %v2617_v52 = vsel %vm8560_vm11, %v2615_v48, -1e+09 }
 0xbdf   : > { %v2621_v53 = vsel %vm1550_vm12, %v2617_v52, -inf  ;;  %v2616_v54 = vsel %vm8564_vm13, %v2614_v51, -1e+09 }
 0xbe0   : > { %2622 = vmax.xlane.f32.xlu1 %v2621_v53  ;;  %v2618_v55 = vsel %vm1546_vm14, %v2616_v54, -inf }
 0xbe1   : > { %2619 = vmax.xlane.f32.xlu0 %v2618_v55 }
 0xc6d   : > { %v2623_v56 = vpop.xlane.xlu1 %2622 }
 0xc6e   : > { %v2625_v57 = vsub.f32 %v2617_v52, %v2623_v56  ;;  %v2620_v58 = vpop.xlane.xlu0 %2619 }
 0xc6f   : > { %v2624_v59 = vsub.f32 %v2616_v54, %v2620_v58 }
 0xc70   : > { %v2628_v60 = vmul.f32 1.442695, %v2625_v57 }
 0xc71   : > { %v2626_v61 = vmul.f32 1.442695, %v2624_v59 }
 0xc72   : > { %7996 = vpow2.f32 %v2628_v60 }
 0xc73   : > { %7998 = vpow2.f32 %v2626_v61 }
 0xc7c   : > { %v7997_v62 = vpop.eup %7996 }
 0xc7d   : > { %v7999_v63 = vpop.eup %7998  ;;  %v2633_v0 = vsel %vm1550_vm12, %v7997_v62, 0.0 }
 0xc7e   : > { %2634 = vadd.xlane.f32.xlu1 %v2633_v0  ;;  %v2630_v1 = vsel %vm1546_vm14, %v7999_v63, 0.0 }
 0xc7f   : > { %2631 = vadd.xlane.f32.xlu0 %v2630_v1 }
 0xd0b   : > { %v2635_v8 = vpop.xlane.xlu1 %2634 }
 0xd0c   : > { %8000 = vrcp.f32 %v2635_v8  ;;  %v2632_v9 = vpop.xlane.xlu0 %2631  ;;  %v6413_v8 = vld [vmem:[%s9392_s12 + $0x18] sm:$0xff] }
 0xd0d   : > { %8002 = vrcp.f32 %v2632_v9 }
 0xd16   : > { %v8001_v10 = vpop.eup %8000 }
 0xd17   : > { %v8003_v13 = vpop.eup %8002  ;;  %v2639_v15 = vmul.f32 %v8001_v10, %v7997_v62 }
 0xd18   : > { %v2637_v14 = vmul.f32 %v8003_v13, %v7999_v63 }
 0xd1a   : > { %7151 = vmatprep.mubr.msk.f32.mxu0 %vm1546_vm14, %v2637_v14 }
 0xd1b   : > { %7152 = vmatmul.mubr.msk.f32.vlgmr.msra.gmra.mrb[22].mxu0 %vm1546_vm14, %v2639_v15 }
 0xd1c   : > { %7684 = vmatpush3.bf16.msra.mxu0 %v7681_v5  ;;  %7167 = vmatprep.mubr.msk.f32.mxu0 %vm1138_vm5, %v8477_v2 }
 0xd1d   : > { %7686 = vmatprep.subr.bf16.mxu0 %v7685_v16 }
 0xd20   : > { %7688 = vmatpush3.bf16.msra.mxu0 %v7685_v16 }
 0xd21   : > { %7698 = vmatprep.subr.bf16.mxu0 %v7697_v20 }
 0xd23   : > { %7168 = vmatmul.mubr.msk.f32.vlgmr.msra.gmra.mrb[24].mxu0 %vm1138_vm5, %v8489_v7 }
 0xd24   : > { %7700 = vmatpush3.bf16.msra.mxu0 %v7697_v20  ;;  %7189 = vmatprep.mubr.msk.f32.mxu0 %vm1138_vm5, %v8477_v2 }
 0xd25   : > { %7702 = vmatprep.subr.bf16.mxu0 %v7701_v23 }
 0xd28   : > { %7704 = vmatpush3.bf16.msra.mxu0 %v7701_v23 }
 0xd2b   : > { %7190 = vmatmul.mubr.msk.f32.vlgmr.msra.gmra.mrb[26].mxu0 %vm1138_vm5, %v8489_v7 }
 0xdee   : > { %v7153_v34 = vpop.f32.mrb[22].mxu0 }
 0xdef   : > { %v2715_v32 = vpop.f32.mrb[23].mxu0 }
 0xdf0   : > { %7156 = vmatprep.mubr.msk.f32.mxu1 %vm1454_vm7, %v2715_v32 }
 0xdf1   : > { %7157 = vmatmul.mubr.msk.f32.vlgmr.msra.gmra.mrb[12].mxu1 %vm1454_vm7, %v7153_v34 }
 0xdf2   : > { %7692 = vmatpush3.bf16.msra.mxu1 %v7689_v28  ;;  %7178 = vmatprep.mubr.msk.f32.mxu1 %vm1138_vm5, %v8477_v2 }
 0xdf3   : > { %7694 = vmatprep.subr.bf16.mxu1 %v7693_v35 }
 0xdf6   : > { %v7169_v37 = vpop.f32.mrb[24].mxu0  ;;  %7696 = vmatpush3.bf16.msra.mxu1 %v7693_v35 }
 0xdf7   : > { %v2891_v38 = vadd.f32 %v7169_v37, %v6387_v36  ;;  %v2885_v39 = vpop.f32.mrb[25].mxu0 }
 0xdf8   : > { %v2886_v40 = vadd.f32 %v6387_v36, %v2885_v39  ;;  %v3395_v39 = vld [vmem:[%s9396_s16] sm:$0xff] }
 0xdf9   : > { %7179 = vmatmul.mubr.msk.f32.vlgmr.msra.gmra.mrb[18].mxu1 %vm1138_vm5, %v8489_v7  ;;  %v6395_v7 = vld [vmem:[%s9391_s11 + $0x7] ss:$0 sm:$0xff] }
 0xdfa   : > { %7196 = vmatprep.mubr.msk.f32.mxu1 %vm1454_vm7, %v2886_v40  ;;  %v3396_v40 = vld [vmem:[%s9396_s16 + $0x8] sm:$0xff] }
 0xdfe   : > { %v7191_v2 = vpop.f32.mrb[26].mxu0 }
 0xdff   : > { %v3061_v41 = vadd.f32 %v7191_v2, %v6403_v31  ;;  %v3055_v42 = vpop.f32.mrb[27].mxu0  ;;  %v3397_v2 = vld [vmem:[%s9396_s16 + $0x10] sm:$0xff] }
 0xe00   : > { %v3056_v43 = vadd.f32 %v6403_v31, %v3055_v42  ;;  %v7717_v31 = vpack.c.bf16 %v3396_v40, %v3395_v39 }
 0xe02   : > { %v7711_v44 = vpack.c.bf16 %v3061_v41, %v3056_v43  ;;  %v3398_v41 = vld [vmem:[%s9396_s16 + $0x18] sm:$0xff]  ;;  %v3503_v43 = vld [vmem:[%s9398_s18] sm:$0xff] }
 0xe03   : > { %v7721_v42 = vpack.c.bf16 %v3398_v41, %v3397_v2 }
 0xe04   : > { %7713 = vmatprep.subr.msk.bf16.mxu0 %vm8505_vm9, %v7711_v44 }
 0xe05   : > { %7716 = vmatpush3.bf16.msk.msra.mxu0 %vm8505_vm9, %v7711_v44  ;;  %v3504_v44 = vld [vmem:[%s9398_s18 + $0x8] sm:$0xff] }
 0xe06   : > { %7718 = vmatprep.subr.bf16.mxu0 %v7717_v31 }
 0xecc   : > { %v7180_v45 = vpop.f32.mrb[18].mxu1 }
 0xecd   : > { %v2976_v46 = vadd.f32 %v7180_v45, %v6395_v7  ;;  %v2970_v48 = vpop.f32.mrb[19].mxu1 }
 0xece   : > { %v2971_v49 = vadd.f32 %v6395_v7, %v2970_v48  ;;  %v7725_v7 = vpack.c.bf16 %v3504_v44, %v3503_v43 }
 0xed0   : > { %v7705_v51 = vpack.c.bf16 %v2976_v46, %v2971_v49 }
 0xed2   : > { %7707 = vmatprep.subr.msk.bf16.mxu1 %vm8525_vm10, %v7705_v51 }
 0xed3   : > { %7710 = vmatpush3.bf16.xpose.msk.msra.mxu1 %vm8525_vm10, %v7705_v51 }
 0xed4   : > { %7206 = vmatprep.subr.mxu1 %v6413_v8 }
 0xeda   : > { %7197 = vmatmul.mubr.msk.f32.vlgmr.msra.gmra.mrb[20].mxu1 %vm1454_vm7, %v2891_v38 }
 0xedb   : > { %7207 = vmatpush3.msra.mxu1 %v6413_v8  ;;  %v3510_v8 = vld [vmem:[%s9398_s18 + $0x38] sm:$0xff] }
 0xedc   : > { %7726 = vmatprep.subr.bf16.mxu1 %v7725_v7 }
 0xfad   : > { %v7198_v52 = vpop.f32.mrb[20].mxu1 }
 0xfae   : > { %v3152_v53 = vmul.f32 0.35355338, %v7198_v52  ;;  %v3142_v54 = vpop.f32.mrb[21].mxu1 }
 0xfaf   : > { %v3151_v55 = vmul.f32 0.35355338, %v3142_v54  ;;  %v6417_v54 = vld [vmem:[%s9394_s14] ss:$0 sm:$0xff] }
 0xfb0   : > { %v3154_v56 = vsel %vm8560_vm11, %v3152_v53, -1e+09 }
 0xfb1   : > { %v3158_v57 = vsel %vm1550_vm12, %v3154_v56, -inf  ;;  %v3153_v58 = vsel %vm8564_vm13, %v3151_v55, -1e+09 }
 0xfb2   : > { %3159 = vmax.xlane.f32.xlu1 %v3158_v57  ;;  %v3155_v59 = vsel %vm1546_vm14, %v3153_v58, -inf }
 0xfb3   : > { %3156 = vmax.xlane.f32.xlu0 %v3155_v59 }
0x103f   : > { %v3160_v60 = vpop.xlane.xlu1 %3159 }
0x1040   : > { %v3162_v61 = vsub.f32 %v3154_v56, %v3160_v60  ;;  %v3157_v62 = vpop.xlane.xlu0 %3156 }
0x1041   : > { %v3161_v63 = vsub.f32 %v3153_v58, %v3157_v62  ;;  %v6418_v58 = vld [vmem:[%s9450_s6] ss:$0 sm:$0xff] }
0x1042   : > { %v3165_v0 = vmul.f32 1.442695, %v3162_v61 }
0x1043   : > { %v3163_v1 = vmul.f32 1.442695, %v3161_v63  ;;  %v3505_v63 = vld [vmem:[%s9398_s18 + $0x10] sm:$0xff] }
0x1044   : > { %8004 = vpow2.f32 %v3165_v0  ;;  %v3506_v0 = vld [vmem:[%s9398_s18 + $0x18] sm:$0xff] }
0x1045   : > { %8006 = vpow2.f32 %v3163_v1  ;;  %v7729_v1 = vpack.c.bf16 %v3506_v0, %v3505_v63 }
0x104e   : > { %v8005_v3 = vpop.eup %8004 }
0x104f   : > { %v8007_v4 = vpop.eup %8006  ;;  %v3170_v5 = vsel %vm1550_vm12, %v8005_v3, 0.0 }
0x1050   : > { %3171 = vadd.xlane.f32.xlu1 %v3170_v5  ;;  %v3167_v6 = vsel %vm1546_vm14, %v8007_v4, 0.0 }
0x1051   : > { %3168 = vadd.xlane.f32.xlu0 %v3167_v6  ;;  %v3509_v6 = vld [vmem:[%s9398_s18 + $0x30] sm:$0xff] }
0x10dd   : > { %v3172_v9 = vpop.xlane.xlu1 %3171 }
0x10de   : > { %8008 = vrcp.f32 %v3172_v9  ;;  %v3169_v10 = vpop.xlane.xlu0 %3168  ;;  %v7737_v9 = vpack.c.bf16 %v3510_v8, %v3509_v6  ;;  %v6426_v6 = vld [vmem:[%s9390_s10 + $0x188] sm:$0xff] }
0x10df   : > { %8010 = vrcp.f32 %v3169_v10  ;;  %v3511_v10 = vld [vmem:[%s9398_s18 + $0x40] sm:$0xff] }
0x10e8   : > { %v8009_v11 = vpop.eup %8008 }
0x10e9   : > { %v8011_v12 = vpop.eup %8010  ;;  %v3176_v14 = vmul.f32 %v8009_v11, %v8005_v3  ;;  %v3507_v3 = vld [vmem:[%s9398_s18 + $0x20] sm:$0xff]  ;;  %v3512_v11 = vld [vmem:[%s9398_s18 + $0x48] sm:$0xff] }
0x10ea   : > { %v3174_v13 = vmul.f32 %v8011_v12, %v8007_v4  ;;  %v3508_v4 = vld [vmem:[%s9398_s18 + $0x28] sm:$0xff]  ;;  %v3513_v12 = vld [vmem:[%s9398_s18 + $0x50] sm:$0xff] }
0x10eb   : > { %v7733_v5 = vpack.c.bf16 %v3508_v4, %v3507_v3 }
0x10ec   : > { %7203 = vmatprep.mubr.msk.f32.mxu0 %vm1546_vm14, %v3174_v13  ;;  %v7741_v13 = vpack.c.bf16 %v3512_v11, %v3511_v10  ;;  %v6428_v10 = vld [vmem:[%s9390_s10 + $0x198] sm:$0xff] }
0x10ed   : > { %7204 = vmatmul.mubr.msk.f32.vlgmr.msra.gmra.mrb[28].mxu0 %vm1546_vm14, %v3176_v14  ;;  %v3514_v14 = vld [vmem:[%s9398_s18 + $0x58] sm:$0xff] }
0x10ee   : > { %7720 = vmatpush3.bf16.msra.mxu0 %v7717_v31 }
0x10ef   : > { %7722 = vmatprep.subr.bf16.mxu0 %v7721_v42 }
0x10f2   : > { %7724 = vmatpush3.bf16.msra.mxu0 %v7721_v42 }
0x11c0   : > { %v7205_v15 = vpop.f32.mrb[28].mxu0 }
0x11c1   : > { %v3252_v16 = vpop.f32.mrb[29].mxu0 }
0x11c2   : > { %7208 = vmatprep.mubr.msk.f32.mxu1 %vm1454_vm7, %v3252_v16  ;;  %v3515_v16 = vld [vmem:[%s9398_s18 + $0x60] sm:$0xff] }
0x11c3   : > { %7209 = vmatmul.mubr.msk.f32.vlgmr.msra.gmra.mrb[12].mxu1 %vm1454_vm7, %v7205_v15  ;;  %v7745_v15 = vpack.c.bf16 %v3514_v14, %v3513_v12  ;;  %v6433_v12 = vld [vmem:[%s9390_s10 + $0x200] sm:$0xff] }
0x11c4   : > { %7728 = vmatpush3.bf16.msra.mxu1 %v7725_v7 }
0x11c5   : > { %7730 = vmatprep.subr.bf16.mxu1 %v7729_v1 }
0x11c8   : > { %7732 = vmatpush3.bf16.msra.mxu1 %v7729_v1 }
0x11c9   : > { %7734 = vmatprep.subr.bf16.mxu1 %v7733_v5 }
0x11cc   : > { %7736 = vmatpush3.bf16.msra.mxu1 %v7733_v5  ;;  %v6425_v5 = vld [vmem:[%s9390_s10 + $0x180] sm:$0xff] }
0x11cd   : > { %7738 = vmatprep.subr.bf16.mxu1 %v7737_v9  ;;  %v7757_v8 = vpack.c.bf16 %v6426_v6, %v6425_v5  ;;  %v6474_v5 = vld [vmem:[%s9390_s10 + $0x2a8] sm:$0xff] }
0x11cf   : > { %7758 = vmatprep.subr.bf16.mxu0 %v7757_v8 }
0x11d0   : > { %7740 = vmatpush3.bf16.msra.mxu1 %v7737_v9  ;;  %v6427_v9 = vld [vmem:[%s9390_s10 + $0x190] sm:$0xff] }
0x11d1   : > { %7742 = vmatprep.subr.bf16.mxu1 %v7741_v13  ;;  %v7761_v11 = vpack.c.bf16 %v6428_v10, %v6427_v9  ;;  %v6476_v9 = vld [vmem:[%s9390_s10 + $0x2b8] sm:$0xff] }
0x11d4   : > { %7744 = vmatpush3.bf16.msra.mxu1 %v7741_v13  ;;  %v6434_v13 = vld [vmem:[%s9390_s10 + $0x208] sm:$0xff] }
0x11d5   : > { %7746 = vmatprep.subr.bf16.mxu1 %v7745_v15  ;;  %v7765_v14 = vpack.c.bf16 %v6434_v13, %v6433_v12 }
0x11d8   : > { %7748 = vmatpush3.bf16.msra.mxu1 %v7745_v15 }
0x1296   : > { %v7210_v17 = vpop.f32.mrb[12].mxu1 }
0x1297   : > { %v3347_v20 = vadd.f32 %v7210_v17, %v8431_v26  ;;  %v3335_v21 = vpop.f32.mrb[13].mxu1  ;;  %v3516_v17 = vld [vmem:[%s9398_s18 + $0x68] sm:$0xff] }
0x1298   : > { %v3346_v22 = vadd.f32 %v3335_v21, %v8429_v25  ;;  %v3518_v21 = vld [vmem:[%s9398_s18 + $0x78] sm:$0xff] }
0x1299   : > { %v8808_v23 = vadd.f32 %v6416_v19, %v3347_v20  ;;  %v3517_v20 = vld [vmem:[%s9398_s18 + $0x70] sm:$0xff] }
0x129a   : > { %v8810_v24 = vadd.f32 %v6416_v19, %v3346_v22  ;;  %v7749_v19 = vpack.c.bf16 %v3516_v17, %v3515_v16  ;;  %v7753_v22 = vpack.c.bf16 %v3518_v21, %v3517_v20 }
0x129b   : > { %v3360_v27 = vsel %vm1140_vm4, %v8808_v23, 0.0 }
0x129c   : > { %3361 = vadd.xlane.f32.xlu1 %v3360_v27  ;;  %v3357_v28 = vsel %vm1138_vm5, %v8810_v24, 0.0  ;;  %7750 = vmatprep.subr.bf16.mxu1 %v7749_v19  ;;  %v6419_v27 = vld [vmem:[%s9451_s21] ss:$0 sm:$0xff] }
0x129d   : > { %3358 = vadd.xlane.f32.xlu0 %v3357_v28  ;;  %7752 = vmatpush3.bf16.msra.mxu1 %v7749_v19 }
0x129e   : > { %7754 = vmatprep.subr.bf16.mxu1 %v7753_v22 }
0x12a1   : > { %7756 = vmatpush3.bf16.msra.mxu1 %v7753_v22 }
0x1329   : > { %v3362_v30 = vpop.xlane.xlu1 %3361 }
0x132a   : > { %v3364_v33 = vmul.f32 0.03125, %v3362_v30  ;;  %v3359_v34 = vpop.xlane.xlu0 %3358 }
0x132b   : > { %v3363_v32 = vmul.f32 0.03125, %v3359_v34 }
0x132c   : > { %v3366_v26 = vsub.f32 %v8808_v23, %v3364_v33 }
0x132d   : > { %v3365_v25 = vsub.f32 %v8810_v24, %v3363_v32 }
0x132e   : > { %v3368_v35 = vmul.f32 %v3366_v26, %v3366_v26 }
0x132f   : > { %v3367_v36 = vmul.f32 %v3365_v25, %v3365_v25 }
0x1330   : > { %v3372_v37 = vsel %vm1140_vm4, %v3368_v35, 0.0 }
0x1331   : > { %3373 = vadd.xlane.f32.xlu1 %v3372_v37  ;;  %v3369_v38 = vsel %vm1138_vm5, %v3367_v36, 0.0 }
0x1332   : > { %3370 = vadd.xlane.f32.xlu0 %v3369_v38 }
0x13be   : > { %v3374_v45 = vpop.xlane.xlu1 %3373 }
0x13bf   : > { %v3376_v46 = vmul.f32 0.03125, %v3374_v45  ;;  %v3371_v48 = vpop.xlane.xlu0 %3370 }
0x13c0   : > { %v3375_v49 = vmul.f32 0.03125, %v3371_v48  ;;  %v6422_v48 = vld [vmem:[%s9452_s19] ss:$0 sm:$0xff] }
0x13c1   : > { %v3378_v51 = vadd.f32 1e-05, %v3376_v46 }
0x13c2   : > { %v3377_v52 = vadd.f32 1e-05, %v3375_v49 }
0x13c3   : > { %8012 = vrsqrt.f32 %v3378_v51 }
0x13c4   : > { %8014 = vrsqrt.f32 %v3377_v52 }
0x13cd   : > { %v8013_v53 = vpop.eup %8012 }
0x13ce   : > { %v8015_v55 = vpop.eup %8014  ;;  %v3382_v56 = vmul.f32 %v8013_v53, %v3366_v26 }
0x13cf   : > { %v3381_v57 = vmul.f32 %v8015_v55, %v3365_v25 }
0x13d0   : > { %v3388_v59 = vmul.f32 %v6417_v54, %v3382_v56 }
0x13d1   : > { %v3387_v60 = vmul.f32 %v6417_v54, %v3381_v57 }
0x13d2   : > { %v3394_v62 = vadd.f32 %v6418_v58, %v3388_v59 }
0x13d3   : > { %v3393_v61 = vadd.f32 %v6418_v58, %v3387_v60 }
0x13d5   : > { %7219 = vmatprep.mubr.msk.f32.mxu0 %vm1138_vm5, %v3393_v61 }
0x13d6   : > { %7220 = vmatmul.mubr.msk.f32.vlgmr.msra.gmra.mrb[30].mxu0 %vm1138_vm5, %v3394_v62 }
0x13d7   : > { %7760 = vmatpush3.bf16.msra.mxu0 %v7757_v8  ;;  %v6475_v8 = vld [vmem:[%s9390_s10 + $0x2b0] sm:$0xff] }
0x13d8   : > { %7762 = vmatprep.subr.bf16.mxu0 %v7761_v11  ;;  %v7813_v10 = vpack.c.bf16 %v6476_v9, %v6475_v8 }
0x13db   : > { %7764 = vmatpush3.bf16.msra.mxu0 %v7761_v11 }
0x13dc   : > { %7766 = vmatprep.subr.bf16.mxu0 %v7765_v14 }
0x14a9   : > { %v7221_v28 = vpop.f32.mrb[30].mxu0 }
0x14aa   : > { %v3482_v30 = vadd.f32 %v7221_v28, %v6419_v27  ;;  %v3476_v33 = vpop.f32.mrb[31].mxu0 }
0x14ab   : > { %v3477_v34 = vadd.f32 %v6419_v27, %v3476_v33  ;;  %v6423_v27 = vld [vmem:[%s9388_s8 + $0x1] ss:$0 sm:$0xff] }
0x14ac   : > { %v3488_v32 = vmul.f32 0.044715, %v3482_v30  ;;  %v3486_v7 = vmul.f32 0.5, %v3482_v30 }
0x14ad   : > { %v3487_v26 = vmul.f32 0.044715, %v3477_v34  ;;  %v3485_v43 = vmul.f32 0.5, %v3477_v34 }
0x14ae   : > { %v3490_v25 = vmul.f32 %v3488_v32, %v3482_v30 }
0x14af   : > { %v3489_v35 = vmul.f32 %v3487_v26, %v3477_v34 }
0x14b0   : > { %v3492_v36 = vmul.f32 %v3490_v25, %v3482_v30  ;;  %v6435_v25 = vld [vmem:[%s9390_s10 + $0x210] sm:$0xff] }
0x14b1   : > { %v3491_v37 = vmul.f32 %v3489_v35, %v3477_v34  ;;  %v6436_v35 = vld [vmem:[%s9390_s10 + $0x218] sm:$0xff] }
0x14b2   : > { %v3494_v38 = vadd.f32 %v3492_v36, %v3482_v30 }
0x14b3   : > { %v3493_v39 = vadd.f32 %v3491_v37, %v3477_v34  ;;  %v6424_v34 = vld [vmem:[%s9389_s9 + $0x1] ss:$0 sm:$0xff] }
0x14b4   : > { %v3496_v40 = vmul.f32 0.7978846, %v3494_v38  ;;  %v7769_v38 = vpack.c.bf16 %v6436_v35, %v6435_v25 }
0x14b5   : > { %v3495_v31 = vmul.f32 0.7978846, %v3493_v39  ;;  %v6441_v39 = vld [vmem:[%s9390_s10 + $0x280] sm:$0xff] }
0x14b6   : > { %8016 = vtanh.f32 %v3496_v40  ;;  %v6442_v40 = vld [vmem:[%s9390_s10 + $0x288] sm:$0xff] }
0x14b7   : > { %8018 = vtanh.f32 %v3495_v31  ;;  %v7773_v31 = vpack.c.bf16 %v6442_v40, %v6441_v39 }
0x14c0   : > { %v8017_v2 = vpop.eup %8016 }
0x14c1   : > { %v8019_v41 = vpop.eup %8018  ;;  %v3500_v42 = vadd.f32 1.0, %v8017_v2  ;;  %v6443_v2 = vld [vmem:[%s9390_s10 + $0x290] sm:$0xff] }
0x14c2   : > { %v3499_v44 = vadd.f32 1.0, %v8019_v41  ;;  %v6444_v41 = vld [vmem:[%s9390_s10 + $0x298] sm:$0xff] }
0x14c3   : > { %v3502_v46 = vmul.f32 %v3500_v42, %v3486_v7  ;;  %v7777_v42 = vpack.c.bf16 %v6444_v41, %v6443_v2 }
0x14c4   : > { %v3501_v45 = vmul.f32 %v3499_v44, %v3485_v43  ;;  %v6430_v43 = vld [vmem:[%s9391_s11 + $0xc] ss:$0 sm:$0xff] }
0x14c6   : > { %7254 = vmatprep.mubr.f32.mxu1 %v3501_v45 }
0x14c7   : > { %7255 = vmatmul.mubr.f32.vlgmr.msra.gmra.mrb[22].mxu1 %v3502_v46  ;;  %v6438_v46 = vld [vmem:[%s9391_s11 + $0x10] ss:$0 sm:$0xff] }
0x159a   : > { %v7256_v49 = vpop.f32.mrb[22].mxu1 }
0x159b   : > { %v3596_v51 = vadd.f32 %v7256_v49, %v6422_v48  ;;  %v3590_v52 = vpop.f32.mrb[23].mxu1 }
0x159c   : > { %v3591_v53 = vadd.f32 %v6422_v48, %v3590_v52  ;;  %v6457_v52 = vld [vmem:[%s9390_s10 + $0x1a0] sm:$0xff] }
0x159d   : > { %v3600_v54 = vadd.f32 %v3596_v51, %v8808_v23 }
0x159e   : > { %v3599_v55 = vadd.f32 %v3591_v53, %v8810_v24  ;;  %v6458_v53 = vld [vmem:[%s9390_s10 + $0x1a8] sm:$0xff] }
0x159f   : > { %3602 = vst.msk [vmem:[#allocation2 + $0x8] sm:$0xf] %vm1140_vm4, %v3600_v54 }
0x15a0   : > { %3601 = vst.msk [vmem:[#allocation2] sm:$0xff] %vm1138_vm5, %v3599_v55 }
0x15a6   : > { %v8898_v56 = vld [vmem:[#allocation2 + $0x8] sm:$0xf] }
0x15a7   : > { %v3610_v57 = vsel %vm1140_vm4, %v8898_v56, 0.0  ;;  %v8902_v58 = vld [vmem:[#allocation2] sm:$0xff] }
0x15a8   : > { %3611 = vadd.xlane.f32.xlu1 %v3610_v57  ;;  %v3607_v59 = vsel %vm1138_vm5, %v8902_v58, 0.0  ;;  %v7793_v57 = vpack.c.bf16 %v6458_v53, %v6457_v52  ;;  %v6468_v52 = vld [vmem:[%s9390_s10 + $0x238] sm:$0xff] }
0x15a9   : > { %3608 = vadd.xlane.f32.xlu0 %v3607_v59  ;;  %v6446_v59 = vld [vmem:[%s9391_s11 + $0x14] ss:$0 sm:$0xff] }
0x1635   : > { %v3612_v60 = vpop.xlane.xlu1 %3611 }
0x1636   : > { %v3614_v23 = vmul.f32 0.03125, %v3612_v60  ;;  %v3609_v61 = vpop.xlane.xlu0 %3608 }
0x1637   : > { %v3613_v24 = vmul.f32 0.03125, %v3609_v61 }
0x1638   : > { %v3616_v62 = vsub.f32 %v8898_v56, %v3614_v23 }
0x1639   : > { %v3615_v63 = vsub.f32 %v8902_v58, %v3613_v24  ;;  %v6459_v24 = vld [vmem:[%s9390_s10 + $0x1b0] sm:$0xff] }
0x163a   : > { %v3618_v0 = vmul.f32 %v3616_v62, %v3616_v62 }
0x163b   : > { %v3617_v1 = vmul.f32 %v3615_v63, %v3615_v63 }
0x163c   : > { %v3622_v3 = vsel %vm1140_vm4, %v3618_v0, 0.0 }
0x163d   : > { %3623 = vadd.xlane.f32.xlu1 %v3622_v3  ;;  %v3619_v4 = vsel %vm1138_vm5, %v3617_v1, 0.0 }
0x163e   : > { %3620 = vadd.xlane.f32.xlu0 %v3619_v4  ;;  %v6473_v4 = vld [vmem:[%s9390_s10 + $0x2a0] sm:$0xff] }
0x163f   : > { %v7809_v6 = vpack.c.bf16 %v6474_v5, %v6473_v4 }
0x16ca   : > { %v3624_v15 = vpop.xlane.xlu1 %3623 }
0x16cb   : > { %v3626_v16 = vmul.f32 0.03125, %v3624_v15  ;;  %v3621_v17 = vpop.xlane.xlu0 %3620 }
0x16cc   : > { %v3625_v19 = vmul.f32 0.03125, %v3621_v17 }
0x16cd   : > { %v3628_v20 = vadd.f32 1e-05, %v3626_v16 }
0x16ce   : > { %v3627_v21 = vadd.f32 1e-05, %v3625_v19 }
0x16cf   : > { %8020 = vrsqrt.f32 %v3628_v20  ;;  %v6462_v20 = vld [vmem:[%s9391_s11 + $0xd] ss:$0 sm:$0xff] }
0x16d0   : > { %8022 = vrsqrt.f32 %v3627_v21 }
0x16d9   : > { %v8021_v22 = vpop.eup %8020 }
0x16da   : > { %v8023_v28 = vpop.eup %8022  ;;  %v3632_v30 = vmul.f32 %v8021_v22, %v3616_v62  ;;  %v6460_v62 = vld [vmem:[%s9390_s10 + $0x1b8] sm:$0xff] }
0x16db   : > { %v3631_v33 = vmul.f32 %v8023_v28, %v3615_v63  ;;  %v7797_v3 = vpack.c.bf16 %v6460_v62, %v6459_v24  ;;  %v6478_v28 = vld [vmem:[%s9391_s11 + $0x15] ss:$0 sm:$0xff] }
0x16dc   : > { %v3638_v32 = vmul.f32 %v6423_v27, %v3632_v30 }
0x16dd   : > { %v3637_v26 = vmul.f32 %v6423_v27, %v3631_v33 }
0x16de   : > { %v8942_v37 = vadd.f32 %v6424_v34, %v3638_v32 }
0x16df   : > { %v8940_v36 = vadd.f32 %v6424_v34, %v3637_v26 }
0x16e1   : > { %7265 = vmatprep.mubr.msk.f32.mxu0 %vm1138_vm5, %v8940_v36 }
0x16e2   : > { %7266 = vmatmul.mubr.msk.f32.vlgmr.msra.gmra.mrb[32].mxu0 %vm1138_vm5, %v8942_v37 }
0x16e3   : > { %7768 = vmatpush3.bf16.msra.mxu0 %v7765_v14  ;;  %7276 = vmatprep.mubr.msk.f32.mxu0 %vm1138_vm5, %v8940_v36 }
0x16e4   : > { %7770 = vmatprep.subr.bf16.mxu0 %v7769_v38 }
0x16e7   : > { %7772 = vmatpush3.bf16.msra.mxu0 %v7769_v38 }
0x16e8   : > { %7774 = vmatprep.subr.bf16.mxu0 %v7773_v31 }
0x16ea   : > { %7277 = vmatmul.mubr.msk.f32.vlgmr.msra.gmra.mrb[34].mxu0 %vm1138_vm5, %v8942_v37 }
0x16eb   : > { %7776 = vmatpush3.bf16.msra.mxu0 %v7773_v31  ;;  %7287 = vmatprep.mubr.msk.f32.mxu0 %vm1138_vm5, %v8940_v36 }
0x16ec   : > { %7778 = vmatprep.subr.bf16.mxu0 %v7777_v42 }
0x16ef   : > { %7780 = vmatpush3.bf16.msra.mxu0 %v7777_v42 }
0x16f2   : > { %7288 = vmatmul.mubr.msk.f32.vlgmr.msra.gmra.mrb[36].mxu0 %vm1138_vm5, %v8942_v37 }
0x17b5   : > { %v7267_v44 = vpop.f32.mrb[32].mxu0 }
0x17b6   : > { %v3728_v7 = vpop.f32.mrb[33].mxu0  ;;  %v3734_v0 = vadd.f32 %v7267_v44, %v6430_v43  ;;  %v6465_v44 = vld [vmem:[%s9390_s10 + $0x220] sm:$0xff] }
0x17b7   : > { %v3729_v45 = vadd.f32 %v6430_v43, %v3728_v7  ;;  %v6466_v7 = vld [vmem:[%s9390_s10 + $0x228] sm:$0xff] }
0x17b9   : > { %7294 = vmatprep.mubr.msk.f32.mxu0 %vm1454_vm7, %v3729_v45  ;;  %v7801_v45 = vpack.c.bf16 %v6466_v7, %v6465_v44  ;;  %v6512_v44 = vld [vmem:[%s9390_s10 + $0x2d8] sm:$0xff] }
0x17bd   : > { %v7278_v48 = vpop.f32.mrb[34].mxu0 }
0x17be   : > { %v3820_v49 = vadd.f32 %v7278_v48, %v6438_v46  ;;  %v3814_v51 = vpop.f32.mrb[35].mxu0 }
0x17bf   : > { %v3815_v54 = vadd.f32 %v6438_v46, %v3814_v51  ;;  %v6467_v51 = vld [vmem:[%s9390_s10 + $0x230] sm:$0xff] }
0x17c1   : > { %v7781_v55 = vpack.c.bf16 %v3820_v49, %v3815_v54 }
0x17c3   : > { %7783 = vmatprep.subr.msk.bf16.mxu0 %vm8525_vm10, %v7781_v55 }
0x17c4   : > { %7786 = vmatpush3.bf16.xpose.msk.msra.mxu0 %vm8525_vm10, %v7781_v55 }
0x17c5   : > { %v7289_v60 = vpop.f32.mrb[36].mxu0  ;;  %7794 = vmatprep.subr.bf16.mxu0 %v7793_v57 }
0x17c6   : > { %v3906_v23 = vadd.f32 %v7289_v60, %v6446_v59  ;;  %v3900_v61 = vpop.f32.mrb[37].mxu0 }
0x17c7   : > { %v3901_v63 = vadd.f32 %v6446_v59, %v3900_v61  ;;  %v6470_v61 = vld [vmem:[%s9391_s11 + $0x11] ss:$0 sm:$0xff] }
0x17c9   : > { %v7787_v1 = vpack.c.bf16 %v3906_v23, %v3901_v63 }
0x17cb   : > { %7295 = vmatmul.mubr.msk.f32.vlgmr.msra.gmra.mrb[38].mxu0 %vm1454_vm7, %v3734_v0  ;;  %7789 = vmatprep.subr.msk.bf16.mxu1 %vm8505_vm9, %v7787_v1 }
0x17cc   : > { %7792 = vmatpush3.bf16.msk.msra.mxu1 %vm8505_vm9, %v7787_v1  ;;  %7796 = vmatpush3.bf16.msra.mxu0 %v7793_v57  ;;  %v7805_v57 = vpack.c.bf16 %v6468_v52, %v6467_v51 }
0x17cd   : > { %7312 = vmatprep.mubr.msk.f32.mxu0 %vm1138_vm5, %v8940_v36  ;;  %7798 = vmatprep.subr.bf16.mxu0 %v7797_v3 }
0x17ce   : > { %7802 = vmatprep.subr.bf16.mxu1 %v7801_v45 }
0x17d0   : > { %7800 = vmatpush3.bf16.msra.mxu0 %v7797_v3 }
0x17d1   : > { %7810 = vmatprep.subr.bf16.mxu0 %v7809_v6 }
0x17d3   : > { %7313 = vmatmul.mubr.msk.f32.vlgmr.msra.gmra.mrb[40].mxu0 %vm1138_vm5, %v8942_v37 }
0x17d4   : > { %7812 = vmatpush3.bf16.msra.mxu0 %v7809_v6  ;;  %7334 = vmatprep.mubr.msk.f32.mxu0 %vm1138_vm5, %v8940_v36 }
0x17d5   : > { %7814 = vmatprep.subr.bf16.mxu0 %v7813_v10 }
0x17d8   : > { %7816 = vmatpush3.bf16.msra.mxu0 %v7813_v10 }
0x17db   : > { %7335 = vmatmul.mubr.msk.f32.vlgmr.msra.gmra.mrb[42].mxu0 %vm1138_vm5, %v8942_v37 }
0x189e   : > { %v7296_v11 = vpop.f32.mrb[38].mxu0 }
0x189f   : > { %v3997_v12 = vmul.f32 0.35355338, %v7296_v11  ;;  %v3987_v13 = vpop.f32.mrb[39].mxu0 }
0x18a0   : > { %v3996_v14 = vmul.f32 0.35355338, %v3987_v13 }
0x18a1   : > { %v3999_v15 = vsel %vm8560_vm11, %v3997_v12, -1e+09 }
0x18a2   : > { %v4003_v16 = vsel %vm1550_vm12, %v3999_v15, -inf  ;;  %v3998_v17 = vsel %vm8564_vm13, %v3996_v14, -1e+09 }
0x18a3   : > { %4004 = vmax.xlane.f32.xlu1 %v4003_v16  ;;  %v4000_v19 = vsel %vm1546_vm14, %v3998_v17, -inf }
0x18a4   : > { %4001 = vmax.xlane.f32.xlu0 %v4000_v19 }
0x18a6   : > { %v7314_v21 = vpop.f32.mrb[40].mxu0 }
0x18a7   : > { %v4190_v22 = vadd.f32 %v7314_v21, %v6462_v20  ;;  %v4184_v27 = vpop.f32.mrb[41].mxu0 }
0x18a8   : > { %v4185_v59 = vadd.f32 %v6462_v20, %v4184_v27  ;;  %v6493_v27 = vld [vmem:[%s9390_s10 + $0x1c0] sm:$0xff] }
0x18ae   : > { %v7336_v30 = vpop.f32.mrb[42].mxu0 }
0x18af   : > { %v4360_v33 = vadd.f32 %v7336_v30, %v6478_v28  ;;  %v4354_v34 = vpop.f32.mrb[43].mxu0 }
0x18b0   : > { %v4355_v32 = vadd.f32 %v6478_v28, %v4354_v34  ;;  %v6494_v28 = vld [vmem:[%s9390_s10 + $0x1c8] sm:$0xff] }
0x18b1   : > { %v7829_v30 = vpack.c.bf16 %v6494_v28, %v6493_v27 }
0x18b2   : > { %v7823_v26 = vpack.c.bf16 %v4360_v33, %v4355_v32  ;;  %v6488_v33 = vld [vmem:[%s9392_s12 + $0x28] sm:$0xff] }
0x18b4   : > { %7825 = vmatprep.subr.msk.bf16.mxu0 %vm8505_vm9, %v7823_v26 }
0x18b5   : > { %7828 = vmatpush3.bf16.msk.msra.mxu0 %vm8505_vm9, %v7823_v26 }
0x18b6   : > { %7830 = vmatprep.subr.bf16.mxu0 %v7829_v30 }
0x1930   : > { %v4005_v25 = vpop.xlane.xlu1 %4004 }
0x1931   : > { %v4007_v35 = vsub.f32 %v3999_v15, %v4005_v25  ;;  %v4002_v38 = vpop.xlane.xlu0 %4001  ;;  %v6495_v25 = vld [vmem:[%s9390_s10 + $0x1d0] sm:$0xff] }
0x1932   : > { %v4006_v39 = vsub.f32 %v3998_v17, %v4002_v38 }
0x1933   : > { %v4010_v40 = vmul.f32 1.442695, %v4007_v35  ;;  %v6496_v35 = vld [vmem:[%s9390_s10 + $0x1d8] sm:$0xff] }
0x1934   : > { %v4008_v31 = vmul.f32 1.442695, %v4006_v39 }
0x1935   : > { %8024 = vpow2.f32 %v4010_v40 }
0x1936   : > { %8026 = vpow2.f32 %v4008_v31  ;;  %v7833_v31 = vpack.c.bf16 %v6496_v35, %v6495_v25  ;;  %v6527_v25 = vld [vmem:[%s9390_s10 + $0x1e0] sm:$0xff]  ;;  %v6528_v35 = vld [vmem:[%s9390_s10 + $0x1e8] sm:$0xff] }
0x193f   : > { %v8025_v2 = vpop.eup %8024 }
0x1940   : > { %v8027_v41 = vpop.eup %8026  ;;  %v4015_v42 = vsel %vm1550_vm12, %v8025_v2, 0.0 }
0x1941   : > { %4016 = vadd.xlane.f32.xlu1 %v4015_v42  ;;  %v4012_v43 = vsel %vm1546_vm14, %v8027_v41, 0.0 }
0x1942   : > { %4013 = vadd.xlane.f32.xlu0 %v4012_v43  ;;  %v6511_v43 = vld [vmem:[%s9390_s10 + $0x2d0] sm:$0xff] }
0x1943   : > { %v7849_v7 = vpack.c.bf16 %v6512_v44, %v6511_v43 }
0x19ce   : > { %v4017_v46 = vpop.xlane.xlu1 %4016 }
0x19cf   : > { %8028 = vrcp.f32 %v4017_v46  ;;  %v4014_v48 = vpop.xlane.xlu0 %4013  ;;  %v6501_v46 = vld [vmem:[%s9390_s10 + $0x240] sm:$0xff] }
0x19d0   : > { %8030 = vrcp.f32 %v4014_v48  ;;  %v6502_v48 = vld [vmem:[%s9390_s10 + $0x248] sm:$0xff] }
0x19d1   : > { %v7837_v52 = vpack.c.bf16 %v6502_v48, %v6501_v46  ;;  %v6543_v46 = vld [vmem:[%s9390_s10 + $0x2e0] sm:$0xff]  ;;  %v6544_v48 = vld [vmem:[%s9390_s10 + $0x2e8] sm:$0xff] }
0x19d9   : > { %v8029_v49 = vpop.eup %8028 }
0x19da   : > { %v8031_v53 = vpop.eup %8030  ;;  %v4021_v55 = vmul.f32 %v8029_v49, %v8025_v2  ;;  %v6509_v2 = vld [vmem:[%s9390_s10 + $0x2c0] sm:$0xff] }
0x19db   : > { %v4019_v54 = vmul.f32 %v8031_v53, %v8027_v41  ;;  %v6510_v41 = vld [vmem:[%s9390_s10 + $0x2c8] sm:$0xff] }
0x19dc   : > { %v7845_v42 = vpack.c.bf16 %v6510_v41, %v6509_v2  ;;  %v6498_v53 = vld [vmem:[%s9391_s11 + $0xe] ss:$0 sm:$0xff]  ;;  %v6529_v41 = vld [vmem:[%s9390_s10 + $0x1f0] sm:$0xff] }
0x19dd   : > { %7301 = vmatprep.mubr.msk.f32.mxu1 %vm1546_vm14, %v4019_v54  ;;  %v6503_v54 = vld [vmem:[%s9390_s10 + $0x250] sm:$0xff] }
0x19de   : > { %7302 = vmatmul.mubr.msk.f32.vlgmr.msra.gmra.mrb[24].mxu1 %vm1546_vm14, %v4021_v55  ;;  %v6504_v55 = vld [vmem:[%s9390_s10 + $0x258] sm:$0xff] }
0x19df   : > { %7804 = vmatpush3.bf16.msra.mxu1 %v7801_v45  ;;  %7323 = vmatprep.mubr.msk.f32.mxu1 %vm1138_vm5, %v8940_v36  ;;  %v6456_v45 = vld [vmem:[%s9392_s12 + $0x20] sm:$0xff] }
0x19e0   : > { %7806 = vmatprep.subr.bf16.mxu1 %v7805_v57 }
0x19e3   : > { %7808 = vmatpush3.bf16.msra.mxu1 %v7805_v57 }
0x19e6   : > { %7324 = vmatmul.mubr.msk.f32.vlgmr.msra.gmra.mrb[26].mxu1 %vm1138_vm5, %v8942_v37 }
0x19e7   : > { %7341 = vmatprep.mubr.msk.f32.mxu1 %vm1454_vm7, %v4185_v59 }
0x1ab1   : > { %v9056_v60 = vpop.f32.mrb[24].mxu1 }
0x1ab2   : > { %v9058_v23 = vpop.f32.mrb[25].mxu1 }
0x1ab9   : > { %v7325_v24 = vpop.f32.mrb[26].mxu1 }
0x1aba   : > { %v4275_v62 = vadd.f32 %v7325_v24, %v6470_v61  ;;  %v4269_v63 = vpop.f32.mrb[27].mxu1  ;;  %v7841_v24 = vpack.c.bf16 %v6504_v55, %v6503_v54  ;;  %v6535_v54 = vld [vmem:[%s9390_s10 + $0x260] sm:$0xff]  ;;  %v6536_v55 = vld [vmem:[%s9390_s10 + $0x268] sm:$0xff] }
0x1abb   : > { %v4270_v0 = vadd.f32 %v6470_v61, %v4269_v63 }
0x1abd   : > { %v7817_v1 = vpack.c.bf16 %v4275_v62, %v4270_v0 }
0x1abf   : > { %7819 = vmatprep.subr.msk.bf16.mxu1 %vm8525_vm10, %v7817_v1 }
0x1ac0   : > { %7822 = vmatpush3.bf16.xpose.msk.msra.mxu1 %vm8525_vm10, %v7817_v1 }
0x1ac1   : > { %7351 = vmatprep.subr.mxu1 %v6488_v33 }
0x1ac7   : > { %7342 = vmatmul.mubr.msk.f32.vlgmr.msra.gmra.mrb[28].mxu1 %vm1454_vm7, %v4190_v22 }
0x1ac8   : > { %7352 = vmatpush3.msra.mxu1 %v6488_v33 }
0x1ac9   : > { %7356 = vmatprep.subr.mxu1 %v6456_v45 }
0x1b9a   : > { %v7343_v3 = vpop.f32.mrb[28].mxu1 }
0x1b9b   : > { %v4451_v4 = vmul.f32 0.35355338, %v7343_v3  ;;  %v4441_v5 = vpop.f32.mrb[29].mxu1 }
0x1b9c   : > { %v4450_v6 = vmul.f32 0.35355338, %v4441_v5 }
0x1b9d   : > { %v4453_v8 = vsel %vm8560_vm11, %v4451_v4, -1e+09 }
0x1b9e   : > { %v4457_v9 = vsel %vm1550_vm12, %v4453_v8, -inf  ;;  %v4452_v10 = vsel %vm8564_vm13, %v4450_v6, -1e+09 }
0x1b9f   : > { %4458 = vmax.xlane.f32.xlu1 %v4457_v9  ;;  %v4454_v11 = vsel %vm1546_vm14, %v4452_v10, -inf }
0x1ba0   : > { %4455 = vmax.xlane.f32.xlu0 %v4454_v11 }
0x1c2c   : > { %v4459_v12 = vpop.xlane.xlu1 %4458 }
0x1c2d   : > { %v4461_v13 = vsub.f32 %v4453_v8, %v4459_v12  ;;  %v4456_v14 = vpop.xlane.xlu0 %4455 }
0x1c2e   : > { %v4460_v15 = vsub.f32 %v4452_v10, %v4456_v14 }
0x1c2f   : > { %v4464_v16 = vmul.f32 1.442695, %v4461_v13 }
0x1c30   : > { %v4462_v17 = vmul.f32 1.442695, %v4460_v15 }
0x1c31   : > { %8032 = vpow2.f32 %v4464_v16 }
0x1c32   : > { %8034 = vpow2.f32 %v4462_v17 }
0x1c3b   : > { %v8033_v19 = vpop.eup %8032 }
0x1c3c   : > { %v8035_v20 = vpop.eup %8034  ;;  %v4469_v21 = vsel %vm1550_vm12, %v8033_v19, 0.0 }
0x1c3d   : > { %4470 = vadd.xlane.f32.xlu1 %v4469_v21  ;;  %v4466_v22 = vsel %vm1546_vm14, %v8035_v20, 0.0 }
0x1c3e   : > { %4467 = vadd.xlane.f32.xlu0 %v4466_v22 }
0x1cca   : > { %v4471_v34 = vpop.xlane.xlu1 %4470 }
0x1ccb   : > { %8036 = vrcp.f32 %v4471_v34  ;;  %v4468_v32 = vpop.xlane.xlu0 %4467 }
0x1ccc   : > { %8038 = vrcp.f32 %v4468_v32 }
0x1cd5   : > { %v8037_v26 = vpop.eup %8036 }
0x1cd6   : > { %v8039_v38 = vpop.eup %8038  ;;  %v4475_v40 = vmul.f32 %v8037_v26, %v8033_v19 }
0x1cd7   : > { %v4473_v39 = vmul.f32 %v8039_v38, %v8035_v20  ;;  %v7865_v38 = vpack.c.bf16 %v6528_v35, %v6527_v25  ;;  %v6558_v25 = vld [vmem:[%s9392_s12 + $0x38] sm:$0xff] }
0x1cd9   : > { %7348 = vmatprep.mubr.msk.f32.mxu0 %vm1546_vm14, %v4473_v39  ;;  %v6524_v39 = vld [vmem:[%s9392_s12 + $0x30] sm:$0xff] }
0x1cda   : > { %7349 = vmatmul.mubr.msk.f32.vlgmr.msra.gmra.mrb[44].mxu0 %vm1546_vm14, %v4475_v40 }
0x1cdb   : > { %7832 = vmatpush3.bf16.msra.mxu0 %v7829_v30  ;;  %7369 = vmatprep.mubr.msk.f32.mxu0 %vm1138_vm5, %v8940_v36 }
0x1cdc   : > { %7834 = vmatprep.subr.bf16.mxu0 %v7833_v31 }
0x1cdf   : > { %7836 = vmatpush3.bf16.msra.mxu0 %v7833_v31 }
0x1ce0   : > { %7846 = vmatprep.subr.bf16.mxu0 %v7845_v42 }
0x1ce2   : > { %7370 = vmatmul.mubr.msk.f32.vlgmr.msra.gmra.mrb[46].mxu0 %vm1138_vm5, %v8942_v37 }
0x1ce3   : > { %7848 = vmatpush3.bf16.msra.mxu0 %v7845_v42  ;;  %7391 = vmatprep.mubr.msk.f32.mxu0 %vm1138_vm5, %v8940_v36  ;;  %v6530_v42 = vld [vmem:[%s9390_s10 + $0x1f8] sm:$0xff] }
0x1ce4   : > { %7850 = vmatprep.subr.bf16.mxu0 %v7849_v7 }
0x1ce7   : > { %7852 = vmatpush3.bf16.msra.mxu0 %v7849_v7 }
0x1cea   : > { %7392 = vmatmul.mubr.msk.f32.vlgmr.msra.gmra.mrb[48].mxu0 %vm1138_vm5, %v8942_v37 }
0x1dad   : > { %v7350_v49 = vpop.f32.mrb[44].mxu0 }
0x1dae   : > { %v4551_v51 = vpop.f32.mrb[45].mxu0 }
0x1daf   : > { %7353 = vmatprep.mubr.msk.f32.mxu1 %vm1454_vm7, %v4551_v51  ;;  %v6545_v51 = vld [vmem:[%s9390_s10 + $0x2f0] sm:$0xff] }
0x1db0   : > { %7354 = vmatmul.mubr.msk.f32.vlgmr.msra.gmra.mrb[30].mxu1 %vm1454_vm7, %v7350_v49  ;;  %v7881_v49 = vpack.c.bf16 %v6544_v48, %v6543_v46 }
0x1db1   : > { %7357 = vmatpush3.msra.mxu1 %v6456_v45  ;;  %7358 = vmatprep.mubr.msk.f32.mxu1 %vm1454_vm7, %v9058_v23  ;;  %v6514_v23 = vld [vmem:[%s9391_s11 + $0x16] ss:$0 sm:$0xff]  ;;  %v7869_v45 = vpack.c.bf16 %v6530_v42, %v6529_v41 }
0x1db2   : > { %7838 = vmatprep.subr.bf16.mxu1 %v7837_v52 }
0x1db5   : > { %v7371_v57 = vpop.f32.mrb[46].mxu0 }
0x1db6   : > { %v4806_v59 = vadd.f32 %v7371_v57, %v6498_v53  ;;  %v4800_v61 = vpop.f32.mrb[47].mxu0  ;;  %v7873_v57 = vpack.c.bf16 %v6536_v55, %v6535_v54 }
0x1db7   : > { %v4801_v1 = vadd.f32 %v6498_v53, %v4800_v61  ;;  %v6538_v61 = vld [vmem:[%s9390_s10 + $0x278] sm:$0xff] }
0x1db8   : > { %7359 = vmatmul.mubr.msk.f32.vlgmr.msra.gmra.mrb[30].mxu1 %vm1454_vm7, %v9056_v60  ;;  %v6506_v60 = vld [vmem:[%s9391_s11 + $0x12] ss:$0 sm:$0xff] }
0x1db9   : > { %7840 = vmatpush3.bf16.msra.mxu1 %v7837_v52  ;;  %7380 = vmatprep.mubr.msk.f32.mxu1 %vm1138_vm5, %v8940_v36  ;;  %v6546_v52 = vld [vmem:[%s9390_s10 + $0x2f8] sm:$0xff] }
0x1dba   : > { %7842 = vmatprep.subr.bf16.mxu1 %v7841_v24  ;;  %v7885_v53 = vpack.c.bf16 %v6546_v52, %v6545_v51 }
0x1dbd   : > { %7844 = vmatpush3.bf16.msra.mxu1 %v7841_v24  ;;  %v7393_v62 = vpop.f32.mrb[48].mxu0 }
0x1dbe   : > { %v4976_v63 = vadd.f32 %v7393_v62, %v6514_v23  ;;  %v4970_v0 = vpop.f32.mrb[49].mxu0 }
0x1dbf   : > { %v4971_v3 = vadd.f32 %v6514_v23, %v4970_v0 }
0x1dc0   : > { %7381 = vmatmul.mubr.msk.f32.vlgmr.msra.gmra.mrb[32].mxu1 %vm1138_vm5, %v8942_v37 }
0x1dc1   : > { %v7859_v4 = vpack.c.bf16 %v4976_v63, %v4971_v3  ;;  %7398 = vmatprep.mubr.msk.f32.mxu1 %vm1454_vm7, %v4801_v1  ;;  %v6532_v63 = vld [vmem:[%s9391_s11 + $0xf] ss:$0 sm:$0xff] }
0x1dc3   : > { %7861 = vmatprep.subr.msk.bf16.mxu0 %vm8505_vm9, %v7859_v4 }
0x1dc4   : > { %7864 = vmatpush3.bf16.msk.msra.mxu0 %vm8505_vm9, %v7859_v4 }
0x1dc5   : > { %7866 = vmatprep.subr.bf16.mxu0 %v7865_v38 }
0x1e93   : > { %v7382_v5 = vpop.f32.mrb[32].mxu1 }
0x1e94   : > { %v4891_v6 = vadd.f32 %v7382_v5, %v6506_v60  ;;  %v4885_v8 = vpop.f32.mrb[33].mxu1 }
0x1e95   : > { %v4886_v9 = vadd.f32 %v6506_v60, %v4885_v8  ;;  %v6548_v60 = vld [vmem:[%s9391_s11 + $0x17] ss:$0 sm:$0xff] }
0x1e97   : > { %v7853_v10 = vpack.c.bf16 %v4891_v6, %v4886_v9 }
0x1e99   : > { %7855 = vmatprep.subr.msk.bf16.mxu1 %vm8525_vm10, %v7853_v10 }
0x1e9a   : > { %7858 = vmatpush3.bf16.xpose.msk.msra.mxu1 %vm8525_vm10, %v7853_v10 }
0x1e9b   : > { %7408 = vmatprep.subr.mxu1 %v6524_v39 }
0x1ea1   : > { %7399 = vmatmul.mubr.msk.f32.vlgmr.msra.gmra.mrb[34].mxu1 %vm1454_vm7, %v4806_v59  ;;  %v6537_v59 = vld [vmem:[%s9390_s10 + $0x270] sm:$0xff] }
0x1ea2   : > { %7409 = vmatpush3.msra.mxu1 %v6524_v39  ;;  %v7877_v62 = vpack.c.bf16 %v6538_v61, %v6537_v59 }
0x1ea3   : > { %7874 = vmatprep.subr.bf16.mxu1 %v7873_v57 }
0x1f74   : > { %v7400_v11 = vpop.f32.mrb[34].mxu1 }
0x1f75   : > { %v5067_v12 = vmul.f32 0.35355338, %v7400_v11  ;;  %v5057_v13 = vpop.f32.mrb[35].mxu1 }
0x1f76   : > { %v5066_v14 = vmul.f32 0.35355338, %v5057_v13 }
0x1f77   : > { %v5069_v15 = vsel %vm8560_vm11, %v5067_v12, -1e+09 }
0x1f78   : > { %v5073_v16 = vsel %vm1550_vm12, %v5069_v15, -inf  ;;  %v5068_v17 = vsel %vm8564_vm13, %v5066_v14, -1e+09 }
0x1f79   : > { %5074 = vmax.xlane.f32.xlu1 %v5073_v16  ;;  %v5070_v19 = vsel %vm1546_vm14, %v5068_v17, -inf }
0x1f7a   : > { %5071 = vmax.xlane.f32.xlu0 %v5070_v19 }
0x2006   : > { %v5075_v20 = vpop.xlane.xlu1 %5074 }
0x2007   : > { %v5077_v21 = vsub.f32 %v5069_v15, %v5075_v20  ;;  %v5072_v22 = vpop.xlane.xlu0 %5071 }
0x2008   : > { %v5076_v27 = vsub.f32 %v5068_v17, %v5072_v22 }
0x2009   : > { %v5080_v28 = vmul.f32 1.442695, %v5077_v21 }
0x200a   : > { %v5078_v30 = vmul.f32 1.442695, %v5076_v27 }
0x200b   : > { %8040 = vpow2.f32 %v5080_v28 }
0x200c   : > { %8042 = vpow2.f32 %v5078_v30 }
0x2015   : > { %v8041_v33 = vpop.eup %8040 }
0x2016   : > { %v8043_v34 = vpop.eup %8042  ;;  %v5085_v32 = vsel %vm1550_vm12, %v8041_v33, 0.0 }
0x2017   : > { %5086 = vadd.xlane.f32.xlu1 %v5085_v32  ;;  %v5082_v26 = vsel %vm1546_vm14, %v8043_v34, 0.0 }
0x2018   : > { %5083 = vadd.xlane.f32.xlu0 %v5082_v26 }
0x20a4   : > { %v5087_v40 = vpop.xlane.xlu1 %5086 }
0x20a5   : > { %8044 = vrcp.f32 %v5087_v40  ;;  %v5084_v31 = vpop.xlane.xlu0 %5083 }
0x20a6   : > { %8046 = vrcp.f32 %v5084_v31 }
0x20af   : > { %v8045_v2 = vpop.eup %8044 }
0x20b0   : > { %v8047_v43 = vpop.eup %8046  ;;  %v5091_v7 = vmul.f32 %v8045_v2, %v8041_v33 }
0x20b1   : > { %v5089_v44 = vmul.f32 %v8047_v43, %v8043_v34 }
0x20b3   : > { %7405 = vmatprep.mubr.msk.f32.mxu0 %vm1546_vm14, %v5089_v44  ;;  %v6561_v44 = vld [vmem:[%s9393_s13 + $0x1] ss:$0 sm:$0xff] }
0x20b4   : > { %7406 = vmatmul.mubr.msk.f32.vlgmr.msra.gmra.mrb[50].mxu0 %vm1546_vm14, %v5091_v7 }
0x20b5   : > { %7868 = vmatpush3.bf16.msra.mxu0 %v7865_v38  ;;  %7421 = vmatprep.mubr.msk.f32.mxu0 %vm1138_vm5, %v8940_v36 }
0x20b6   : > { %7870 = vmatprep.subr.bf16.mxu0 %v7869_v45 }
0x20b9   : > { %7872 = vmatpush3.bf16.msra.mxu0 %v7869_v45 }
0x20ba   : > { %7882 = vmatprep.subr.bf16.mxu0 %v7881_v49 }
0x20bc   : > { %7422 = vmatmul.mubr.msk.f32.vlgmr.msra.gmra.mrb[52].mxu0 %vm1138_vm5, %v8942_v37 }
0x20bd   : > { %7884 = vmatpush3.bf16.msra.mxu0 %v7881_v49  ;;  %7443 = vmatprep.mubr.msk.f32.mxu0 %vm1138_vm5, %v8940_v36 }
0x20be   : > { %7886 = vmatprep.subr.bf16.mxu0 %v7885_v53 }
0x20c1   : > { %7888 = vmatpush3.bf16.msra.mxu0 %v7885_v53 }
0x20c4   : > { %7444 = vmatmul.mubr.msk.f32.vlgmr.msra.gmra.mrb[54].mxu0 %vm1138_vm5, %v8942_v37 }
0x2187   : > { %v7407_v24 = vpop.f32.mrb[50].mxu0 }
0x2188   : > { %v5167_v23 = vpop.f32.mrb[51].mxu0 }
0x2189   : > { %7410 = vmatprep.mubr.msk.f32.mxu1 %vm1454_vm7, %v5167_v23 }
0x218a   : > { %7411 = vmatmul.mubr.msk.f32.vlgmr.msra.gmra.mrb[30].mxu1 %vm1454_vm7, %v7407_v24 }
0x218b   : > { %7876 = vmatpush3.bf16.msra.mxu1 %v7873_v57  ;;  %7432 = vmatprep.mubr.msk.f32.mxu1 %vm1138_vm5, %v8940_v36 }
0x218c   : > { %7878 = vmatprep.subr.bf16.mxu1 %v7877_v62 }
0x218f   : > { %v7423_v0 = vpop.f32.mrb[52].mxu0  ;;  %7880 = vmatpush3.bf16.msra.mxu1 %v7877_v62  ;;  %v6564_v62 = vld [vmem:[%s9396_s16 + $0x20] sm:$0xff] }
0x2190   : > { %v5343_v1 = vadd.f32 %v7423_v0, %v6532_v63  ;;  %v5337_v3 = vpop.f32.mrb[53].mxu0 }
0x2191   : > { %v5338_v4 = vadd.f32 %v6532_v63, %v5337_v3  ;;  %v6565_v63 = vld [vmem:[%s9396_s16 + $0x28] sm:$0xff]  ;;  %v6567_v3 = vld [vmem:[%s9396_s16 + $0x38] sm:$0xff] }
0x2192   : > { %7433 = vmatmul.mubr.msk.f32.vlgmr.msra.gmra.mrb[36].mxu1 %vm1138_vm5, %v8942_v37  ;;  %v6540_v37 = vld [vmem:[%s9391_s11 + $0x13] ss:$0 sm:$0xff]  ;;  %v7901_v0 = vpack.c.bf16 %v6565_v63, %v6564_v62 }
0x2193   : > { %7450 = vmatprep.mubr.msk.f32.mxu1 %vm1454_vm7, %v5338_v4 }
0x2197   : > { %v7445_v36 = vpop.f32.mrb[54].mxu0 }
0x2198   : > { %v5513_v5 = vadd.f32 %v7445_v36, %v6548_v60  ;;  %v5507_v6 = vpop.f32.mrb[55].mxu0  ;;  %v6572_v36 = vld [vmem:[%s9398_s18 + $0x88] sm:$0xff] }
0x2199   : > { %v5508_v8 = vadd.f32 %v6548_v60, %v5507_v6  ;;  %v6571_v60 = vld [vmem:[%s9398_s18 + $0x80] sm:$0xff] }
0x219b   : > { %v7895_v9 = vpack.c.bf16 %v5513_v5, %v5508_v8  ;;  %v7909_v5 = vpack.c.bf16 %v6572_v36, %v6571_v60  ;;  %v6587_v36 = vld [vmem:[%s9452_s19 + $0x1] ss:$0 sm:$0xff] }
0x219d   : > { %7897 = vmatprep.subr.msk.bf16.mxu0 %vm8505_vm9, %v7895_v9 }
0x219e   : > { %7900 = vmatpush3.bf16.msk.msra.mxu0 %vm8505_vm9, %v7895_v9 }
0x219f   : > { %7902 = vmatprep.subr.bf16.mxu0 %v7901_v0 }
0x2265   : > { %v7434_v10 = vpop.f32.mrb[36].mxu1 }
0x2266   : > { %v5428_v11 = vadd.f32 %v7434_v10, %v6540_v37  ;;  %v5422_v12 = vpop.f32.mrb[37].mxu1 }
0x2267   : > { %v5423_v13 = vadd.f32 %v6540_v37, %v5422_v12 }
0x2269   : > { %v7889_v14 = vpack.c.bf16 %v5428_v11, %v5423_v13  ;;  %v6562_v13 = vld [vmem:[%s9394_s14 + $0x1] ss:$0 sm:$0xff] }
0x226b   : > { %7891 = vmatprep.subr.msk.bf16.mxu1 %vm8525_vm10, %v7889_v14 }
0x226c   : > { %7894 = vmatpush3.bf16.xpose.msk.msra.mxu1 %vm8525_vm10, %v7889_v14 }
0x226d   : > { %7460 = vmatprep.subr.mxu1 %v6558_v25 }
0x2273   : > { %7451 = vmatmul.mubr.msk.f32.vlgmr.msra.gmra.mrb[38].mxu1 %vm1454_vm7, %v5343_v1  ;;  %v6566_v1 = vld [vmem:[%s9396_s16 + $0x30] sm:$0xff] }
0x2274   : > { %7461 = vmatpush3.msra.mxu1 %v6558_v25  ;;  %v7905_v4 = vpack.c.bf16 %v6567_v3, %v6566_v1  ;;  %v6581_v25 = vld [vmem:[%s9398_s18 + $0xd0] sm:$0xff] }
0x2275   : > { %7910 = vmatprep.subr.bf16.mxu1 %v7909_v5 }
0x2346   : > { %v7452_v15 = vpop.f32.mrb[38].mxu1 }
0x2347   : > { %v5604_v18 = vmul.f32 0.35355338, %v7452_v15  ;;  %v5594_v16 = vpop.f32.mrb[39].mxu1 }
0x2348   : > { %v5603_v17 = vmul.f32 0.35355338, %v5594_v16  ;;  %v6563_v16 = vld [vmem:[%s9450_s6 + $0x1] ss:$0 sm:$0xff] }
0x2349   : > { %v5606_v19 = vsel %vm8560_vm11, %v5604_v18, -1e+09 }
0x234a   : > { %v5610_v20 = vsel %vm1550_vm12, %v5606_v19, -inf  ;;  %v5605_v21 = vsel %vm8564_vm13, %v5603_v17, -1e+09 }
0x234b   : > { %5611 = vmax.xlane.f32.xlu1 %v5610_v20  ;;  %v5607_v22 = vsel %vm1546_vm14, %v5605_v21, -inf }
0x234c   : > { %5608 = vmax.xlane.f32.xlu0 %v5607_v22  ;;  %v6573_v22 = vld [vmem:[%s9398_s18 + $0x90] sm:$0xff] }
0x23d8   : > { %v5612_v29 = vpop.xlane.xlu1 %5611 }
0x23d9   : > { %v5614_v27 = vsub.f32 %v5606_v19, %v5612_v29  ;;  %v5609_v28 = vpop.xlane.xlu0 %5608  ;;  %v6574_v29 = vld [vmem:[%s9398_s18 + $0x98] sm:$0xff] }
0x23da   : > { %v5613_v30 = vsub.f32 %v5605_v21, %v5609_v28  ;;  %v6575_v28 = vld [vmem:[%s9398_s18 + $0xa0] sm:$0xff] }
0x23db   : > { %v5617_v33 = vmul.f32 1.442695, %v5614_v27  ;;  %v7913_v27 = vpack.c.bf16 %v6574_v29, %v6573_v22  ;;  %v6103_v29 = vld [vmem:[%s9453_s26] sm:$0xff] }
0x23dc   : > { %v5615_v34 = vmul.f32 1.442695, %v5613_v30  ;;  %v6576_v30 = vld [vmem:[%s9398_s18 + $0xa8] sm:$0xff] }
0x23dd   : > { %8048 = vpow2.f32 %v5617_v33  ;;  %v7917_v33 = vpack.c.bf16 %v6576_v30, %v6575_v28  ;;  %v6105_v30 = vld [vmem:[%s9453_s26 + $0x10] sm:$0xff] }
0x23de   : > { %8050 = vpow2.f32 %v5615_v34  ;;  %v6577_v34 = vld [vmem:[%s9398_s18 + $0xb0] sm:$0xff] }
0x23e7   : > { %v8049_v32 = vpop.eup %8048 }
0x23e8   : > { %v8051_v47 = vpop.eup %8050  ;;  %v5622_v26 = vsel %vm1550_vm12, %v8049_v32, 0.0 }
0x23e9   : > { %5623 = vadd.xlane.f32.xlu1 %v5622_v26  ;;  %v5619_v50 = vsel %vm1546_vm14, %v8051_v47, 0.0  ;;  %v6579_v26 = vld [vmem:[%s9398_s18 + $0xc0] sm:$0xff] }
0x23ea   : > { %5620 = vadd.xlane.f32.xlu0 %v5619_v50  ;;  %v6580_v50 = vld [vmem:[%s9398_s18 + $0xc8] sm:$0xff] }
0x2476   : > { %v5624_v35 = vpop.xlane.xlu1 %5623 }
0x2477   : > { %8052 = vrcp.f32 %v5624_v35  ;;  %v5621_v38 = vpop.xlane.xlu0 %5620  ;;  %v7925_v35 = vpack.c.bf16 %v6580_v50, %v6579_v26 }
0x2478   : > { %8054 = vrcp.f32 %v5621_v38  ;;  %v6582_v38 = vld [vmem:[%s9398_s18 + $0xd8] sm:$0xff] }
0x2481   : > { %v8053_v39 = vpop.eup %8052 }
0x2482   : > { %v8055_v40 = vpop.eup %8054  ;;  %v5628_v2 = vmul.f32 %v8053_v39, %v8049_v32  ;;  %v6578_v32 = vld [vmem:[%s9398_s18 + $0xb8] sm:$0xff]  ;;  %v7929_v39 = vpack.c.bf16 %v6582_v38, %v6581_v25 }
0x2483   : > { %v5626_v31 = vmul.f32 %v8055_v40, %v8051_v47  ;;  %v7921_v47 = vpack.c.bf16 %v6578_v32, %v6577_v34  ;;  %v6583_v40 = vld [vmem:[%s9398_s18 + $0xe0] sm:$0xff] }
0x2485   : > { %7457 = vmatprep.mubr.msk.f32.mxu0 %vm1546_vm14, %v5626_v31  ;;  %v6584_v31 = vld [vmem:[%s9398_s18 + $0xe8] sm:$0xff] }
0x2486   : > { %7458 = vmatmul.mubr.msk.f32.vlgmr.msra.gmra.mrb[56].mxu0 %vm1546_vm14, %v5628_v2  ;;  %v7933_v2 = vpack.c.bf16 %v6584_v31, %v6583_v40 }
0x2487   : > { %7904 = vmatpush3.bf16.msra.mxu0 %v7901_v0 }
0x2488   : > { %7906 = vmatprep.subr.bf16.mxu0 %v7905_v4 }
0x248b   : > { %7908 = vmatpush3.bf16.msra.mxu0 %v7905_v4 }
0x2559   : > { %v7459_v41 = vpop.f32.mrb[56].mxu0 }
0x255a   : > { %v5704_v42 = vpop.f32.mrb[57].mxu0 }
0x255b   : > { %7462 = vmatprep.mubr.msk.f32.mxu1 %vm1454_vm7, %v5704_v42  ;;  %v6586_v42 = vld [vmem:[%s9398_s18 + $0xf8] sm:$0xff] }
0x255c   : > { %7463 = vmatmul.mubr.msk.f32.vlgmr.msra.gmra.mrb[30].mxu1 %vm1454_vm7, %v7459_v41  ;;  %v6585_v41 = vld [vmem:[%s9398_s18 + $0xf0] sm:$0xff] }
0x255d   : > { %7912 = vmatpush3.bf16.msra.mxu1 %v7909_v5 }
0x255e   : > { %7914 = vmatprep.subr.bf16.mxu1 %v7913_v27 }
0x2561   : > { %7916 = vmatpush3.bf16.msra.mxu1 %v7913_v27  ;;  %v6104_v27 = vld [vmem:[%s9453_s26 + $0x8] sm:$0xff] }
0x2562   : > { %7918 = vmatprep.subr.bf16.mxu1 %v7917_v33  ;;  %v7941_v28 = vpack.c.bf16 %v6104_v27, %v6103_v29 }
0x2564   : > { %7942 = vmatprep.subr.bf16.mxu0 %v7941_v28 }
0x2565   : > { %7920 = vmatpush3.bf16.msra.mxu1 %v7917_v33  ;;  %v6106_v33 = vld [vmem:[%s9453_s26 + $0x18] sm:$0xff] }
0x2566   : > { %7922 = vmatprep.subr.bf16.mxu1 %v7921_v47  ;;  %v7945_v34 = vpack.c.bf16 %v6106_v33, %v6105_v30 }
0x2569   : > { %7924 = vmatpush3.bf16.msra.mxu1 %v7921_v47 }
0x256a   : > { %7926 = vmatprep.subr.bf16.mxu1 %v7925_v35 }
0x256d   : > { %7928 = vmatpush3.bf16.msra.mxu1 %v7925_v35 }
0x256e   : > { %7930 = vmatprep.subr.bf16.mxu1 %v7929_v39 }
0x2571   : > { %7932 = vmatpush3.bf16.msra.mxu1 %v7929_v39  ;;  %v6588_v39 = vld [vmem:[%s9455_s27] ss:$0 sm:$0xff] }
0x2572   : > { %7934 = vmatprep.subr.bf16.mxu1 %v7933_v2 }
0x2575   : > { %7936 = vmatpush3.bf16.msra.mxu1 %v7933_v2 }
0x262f   : > { %v7464_v43 = vpop.f32.mrb[30].mxu1 }
0x2630   : > { %v5799_v7 = vadd.f32 %v7464_v43, %v8898_v56  ;;  %v5787_v45 = vpop.f32.mrb[31].mxu1  ;;  %v7937_v43 = vpack.c.bf16 %v6586_v42, %v6585_v41  ;;  %v6589_v41 = vld [vmem:[%s9456_s29] ss:$0 sm:$0xff] }
0x2631   : > { %v5798_v46 = vadd.f32 %v5787_v45, %v8902_v58 }
0x2632   : > { %v9259_v48 = vadd.f32 %v6561_v44, %v5799_v7  ;;  %7938 = vmatprep.subr.bf16.mxu1 %v7937_v43 }
0x2633   : > { %v9261_v49 = vadd.f32 %v6561_v44, %v5798_v46  ;;  %7940 = vmatpush3.bf16.msra.mxu1 %v7937_v43  ;;  %v6568_v44 = vld [vmem:[%s9451_s21 + $0x1] ss:$0 sm:$0xff] }
0x2634   : > { %v5812_v51 = vsel %vm1140_vm4, %v9259_v48, 0.0 }
0x2635   : > { %5813 = vadd.xlane.f32.xlu1 %v5812_v51  ;;  %v5809_v52 = vsel %vm1138_vm5, %v9261_v49, 0.0 }
0x2636   : > { %5810 = vadd.xlane.f32.xlu0 %v5809_v52 }
0x26c2   : > { %v5814_v53 = vpop.xlane.xlu1 %5813 }
0x26c3   : > { %v5816_v54 = vmul.f32 0.03125, %v5814_v53  ;;  %v5811_v55 = vpop.xlane.xlu0 %5810 }
0x26c4   : > { %v5815_v57 = vmul.f32 0.03125, %v5811_v55 }
0x26c5   : > { %v5818_v56 = vsub.f32 %v9259_v48, %v5816_v54 }
0x26c6   : > { %v5817_v58 = vsub.f32 %v9261_v49, %v5815_v57 }
0x26c7   : > { %v5820_v59 = vmul.f32 %v5818_v56, %v5818_v56 }
0x26c8   : > { %v5819_v61 = vmul.f32 %v5817_v58, %v5817_v58 }
0x26c9   : > { %v5824_v24 = vsel %vm1140_vm4, %v5820_v59, 0.0 }
0x26ca   : > { %5825 = vadd.xlane.f32.xlu1 %v5824_v24  ;;  %v5821_v23 = vsel %vm1138_vm5, %v5819_v61, 0.0 }
0x26cb   : > { %5822 = vadd.xlane.f32.xlu0 %v5821_v23 }
0x2757   : > { %v5826_v6 = vpop.xlane.xlu1 %5825 }
0x2758   : > { %v5828_v8 = vmul.f32 0.03125, %v5826_v6  ;;  %v5823_v9 = vpop.xlane.xlu0 %5822 }
0x2759   : > { %v5827_v37 = vmul.f32 0.03125, %v5823_v9 }
0x275a   : > { %v5830_v10 = vadd.f32 1e-05, %v5828_v8 }
0x275b   : > { %v5829_v11 = vadd.f32 1e-05, %v5827_v37 }
0x275c   : > { %8056 = vrsqrt.f32 %v5830_v10 }
0x275d   : > { %8058 = vrsqrt.f32 %v5829_v11 }
0x2766   : > { %v8057_v12 = vpop.eup %8056 }
0x2767   : > { %v8059_v14 = vpop.eup %8058  ;;  %v5834_v15 = vmul.f32 %v8057_v12, %v5818_v56 }
0x2768   : > { %v5833_v18 = vmul.f32 %v8059_v14, %v5817_v58 }
0x2769   : > { %v5840_v17 = vmul.f32 %v6562_v13, %v5834_v15 }
0x276a   : > { %v5839_v19 = vmul.f32 %v6562_v13, %v5833_v18 }
0x276b   : > { %v5846_v21 = vadd.f32 %v6563_v16, %v5840_v17 }
0x276c   : > { %v5845_v20 = vadd.f32 %v6563_v16, %v5839_v19 }
0x276e   : > { %7473 = vmatprep.mubr.msk.f32.mxu0 %vm1138_vm5, %v5845_v20 }
0x276f   : > { %7474 = vmatmul.mubr.msk.f32.vlgmr.msra.gmra.mrb[58].mxu0 %vm1138_vm5, %v5846_v21 }
0x2770   : > { %7944 = vmatpush3.bf16.msra.mxu0 %v7941_v28 }
0x2771   : > { %7946 = vmatprep.subr.bf16.mxu0 %v7945_v34 }
0x2774   : > { %7948 = vmatpush3.bf16.msra.mxu0 %v7945_v34 }
0x2842   : > { %v7475_v7 = vpop.f32.mrb[58].mxu0 }
0x2843   : > { %v5935_v45 = vadd.f32 %v7475_v7, %v6568_v44  ;;  %v5929_v46 = vpop.f32.mrb[59].mxu0 }
0x2844   : > { %v5930_v51 = vadd.f32 %v6568_v44, %v5929_v46 }
0x2845   : > { %v5941_v52 = vmul.f32 0.044715, %v5935_v45  ;;  %v5939_v3 = vmul.f32 0.5, %v5935_v45 }
0x2846   : > { %v5940_v53 = vmul.f32 0.044715, %v5930_v51  ;;  %v5938_v0 = vmul.f32 0.5, %v5930_v51 }
0x2847   : > { %v5943_v54 = vmul.f32 %v5941_v52, %v5935_v45 }
0x2848   : > { %v5942_v55 = vmul.f32 %v5940_v53, %v5930_v51 }
0x2849   : > { %v5945_v57 = vmul.f32 %v5943_v54, %v5935_v45 }
0x284a   : > { %v5944_v56 = vmul.f32 %v5942_v55, %v5930_v51 }
0x284b   : > { %v5947_v58 = vadd.f32 %v5945_v57, %v5935_v45 }
0x284c   : > { %v5946_v59 = vadd.f32 %v5944_v56, %v5930_v51 }
0x284d   : > { %v5949_v61 = vmul.f32 0.7978846, %v5947_v58 }
0x284e   : > { %v5948_v24 = vmul.f32 0.7978846, %v5946_v59 }
0x284f   : > { %8060 = vtanh.f32 %v5949_v61 }
0x2850   : > { %8062 = vtanh.f32 %v5948_v24 }
0x2859   : > { %v8061_v23 = vpop.eup %8060 }
0x285a   : > { %v8063_v62 = vpop.eup %8062  ;;  %v5953_v63 = vadd.f32 1.0, %v8061_v23 }
0x285b   : > { %v5952_v1 = vadd.f32 1.0, %v8063_v62 }
0x285c   : > { %v5955_v60 = vmul.f32 %v5953_v63, %v5939_v3 }
0x285d   : > { %v5954_v4 = vmul.f32 %v5952_v1, %v5938_v0 }
0x285f   : > { %7508 = vmatprep.mubr.f32.mxu1 %v5954_v4 }
0x2860   : > { %7509 = vmatmul.mubr.f32.vlgmr.msra.gmra.mrb[40].mxu1 %v5955_v60 }
0x2933   : > { %v7510_v5 = vpop.f32.mrb[40].mxu1 }
0x2934   : > { %v6050_v6 = vadd.f32 %v7510_v5, %v6587_v36  ;;  %v6044_v8 = vpop.f32.mrb[41].mxu1 }
0x2935   : > { %v6045_v9 = vadd.f32 %v6587_v36, %v6044_v8 }
0x2936   : > { %v6054_v37 = vadd.f32 %v6050_v6, %v9259_v48 }
0x2937   : > { %v6053_v10 = vadd.f32 %v6045_v9, %v9261_v49 }
0x2938   : > { %6056 = vst.msk [vmem:[#allocation2 + $0x8] sm:$0xf] %vm1140_vm4, %v6054_v37 }
0x2939   : > { %6055 = vst.msk [vmem:[#allocation2] sm:$0xff] %vm1138_vm5, %v6053_v10 }
0x293f   : > { %v6058_v11 = vld [vmem:[#allocation2 + $0x8] sm:$0xf] }
0x2940   : > { %v6064_v12 = vsel %vm1140_vm4, %v6058_v11, 0.0  ;;  %v6057_v13 = vld [vmem:[#allocation2] sm:$0xff] }
0x2941   : > { %6065 = vadd.xlane.f32.xlu1 %v6064_v12  ;;  %v6061_v14 = vsel %vm1138_vm5, %v6057_v13, 0.0 }
0x2942   : > { %6062 = vadd.xlane.f32.xlu0 %v6061_v14 }
0x29ce   : > { %v6066_v15 = vpop.xlane.xlu1 %6065 }
0x29cf   : > { %v6068_v18 = vmul.f32 0.03125, %v6066_v15  ;;  %v6063_v16 = vpop.xlane.xlu0 %6062 }
0x29d0   : > { %v6067_v17 = vmul.f32 0.03125, %v6063_v16 }
0x29d1   : > { %v6070_v19 = vsub.f32 %v6058_v11, %v6068_v18 }
0x29d2   : > { %v6069_v48 = vsub.f32 %v6057_v13, %v6067_v17 }
0x29d3   : > { %v6072_v20 = vmul.f32 %v6070_v19, %v6070_v19 }
0x29d4   : > { %v6071_v49 = vmul.f32 %v6069_v48, %v6069_v48 }
0x29d5   : > { %v6076_v21 = vsel %vm1140_vm4, %v6072_v20, 0.0 }
0x29d6   : > { %6077 = vadd.xlane.f32.xlu1 %v6076_v21  ;;  %v6073_v22 = vsel %vm1138_vm5, %v6071_v49, 0.0 }
0x29d7   : > { %6074 = vadd.xlane.f32.xlu0 %v6073_v22 }
0x2a63   : > { %v6078_v32 = vpop.xlane.xlu1 %6077 }
0x2a64   : > { %v6080_v47 = vmul.f32 0.03125, %v6078_v32  ;;  %v6075_v26 = vpop.xlane.xlu0 %6074 }
0x2a65   : > { %v6079_v50 = vmul.f32 0.03125, %v6075_v26 }
0x2a66   : > { %v6082_v25 = vadd.f32 1e-05, %v6080_v47 }
0x2a67   : > { %v6081_v35 = vadd.f32 1e-05, %v6079_v50 }
0x2a68   : > { %8064 = vrsqrt.f32 %v6082_v25 }
0x2a69   : > { %8066 = vrsqrt.f32 %v6081_v35 }
0x2a72   : > { %v8065_v38 = vpop.eup %8064 }
0x2a73   : > { %v8067_v40 = vpop.eup %8066  ;;  %v6086_v31 = vmul.f32 %v8065_v38, %v6070_v19 }
0x2a74   : > { %v6085_v2 = vmul.f32 %v8067_v40, %v6069_v48 }
0x2a75   : > { %v6094_v42 = vmul.f32 %v6588_v39, %v6086_v31 }
0x2a76   : > { %v6093_v43 = vmul.f32 %v6588_v39, %v6085_v2 }
0x2a77   : > { %v6102_v7 = vadd.f32 %v6589_v41, %v6094_v42 }
0x2a78   : > { %v6101_v44 = vadd.f32 %v6589_v41, %v6093_v43 }
0x2a7a   : > { %7519 = vmatprep.mubr.msk.f32.mxu0 %vm1138_vm5, %v6101_v44 }
0x2a7b   : > { %7520 = vmatmul.mubr.msk.f32.vlgmr.msra.gmra.mrb[60].mxu0 %vm1138_vm5, %v6102_v7 }
0x2b4e   : > { %v7521_v45 = vpop.f32.mrb[60].mxu0 }
0x2b4f   : > { %6189 = vst [vmem:[%s684_s30 + $0x8] sm:$0xf] %v7521_v45  ;;  %v6179_v46 = vpop.f32.mrb[61].mxu0 }
0x2b50   : > { %6188 = vst [vmem:[%s684_s30] sm:$0xff] %v6179_v46 }
0x2b51 PF: > { %s9458_s15 = sld [smem:[#allocation6_spill]] }
0x2b57   : > { %s39_s1 = sadd.s32 1, %s9458_s15  }
0x2b58   : > { %p36_p9 = scmp.ge.s32.totalorder %s39_s1, 4  }
0x2b5a   :  { %38 = sbr.rel (!%p36_p9) target bundleno = 27 (0x1b), region = 186 }

</bundles_post_ra>
